<compile_context>
chip_gen: v5e
topology: v5e:2x2
jax: 0.10.0
libtpu: 0.0.40
codegen_flags: <defaults>
</compile_context>

<pallas_src>
import math

import jax
import jax.numpy as jnp
from jax.experimental import pallas as pl
from jax.experimental.pallas import tpu as pltpu

F = 4                      # spatial compression factor per dim (latent_shape_factor)
LATENT_CHANNELS = 8
TEMPORAL_WEIGHT = 0.1
KL_WEIGHT = 0.01

FF = F * F                 # pixels per 4x4 patch
C = LATENT_CHANNELS
ATANH_CLIP = float(math.atanh(0.999))

# ---- layout of the packed SMEM weight vector -------------------------------
_I_W_MU = 0                       # (FF,) encoder patch weights -> mu
_I_W_LV = _I_W_MU + FF            # (FF,) encoder patch weights -> logvar
_I_W_DEC = _I_W_LV + FF           # (FF,) decoder patch weights
_I_B_DEC = _I_W_DEC + FF          # (FF,) decoder patch bias
_I_W_EXP = _I_B_DEC + FF          # (C,)  channel_exp weight (Conv2d(1,C,1))
_I_B_EXP = _I_W_EXP + C           # (C,)  channel_exp bias
_I_W_RED = _I_B_EXP + C           # (C,)  channel_red weight (Conv2d(C,1,1))
_I_B_MU = _I_W_RED + C
_I_B_LV = _I_B_MU + 1
_I_B_RED = _I_B_LV + 1
_I_SCALE = _I_B_RED + 1
_I_SHIFT = _I_SCALE + 1
_I_INV_SCALE = _I_SHIFT + 1
_NW = _I_INV_SCALE + 1


# ----------------------------------------------------------------------------
# Fused kernel: one (b, t-block of TT frames) per grid step.
#   xp_ref    : (TT, FF, h, w)  patchified input frames
#   eps_ref   : (TT, h, w)      reparam noise
#   w_ref     : (_NW,)          packed weights in SMEM
#   z_ref     : (TT, C, h, w)   tanh-scaled multi-channel latent
#   mu_ref    : (TT, h, w)
#   lv_ref    : (TT, h, w)
#   recon_ref : (TT, FF, h, w)  reconstructed patch pixels
#   loss_ref  : (3, h, w)       per-batch [recon SSE, KL sum, temporal SSE]
#   zprev_ref : (C, h, w)       VMEM carry of previous frame's latent
# ----------------------------------------------------------------------------
def _fused_vae_kernel(xp_ref, eps_ref, w_ref,
                      z_ref, mu_ref, lv_ref, recon_ref, loss_ref,
                      zprev_ref):
    tb = pl.program_id(1)
    TT, FF_, h, w = xp_ref.shape
    C_ = z_ref.shape[1]

    @pl.when(tb == 0)
    def _init_prev():
        zprev_ref[...] = jnp.zeros_like(zprev_ref)

    # ---- base-VAE encode: 4x4/stride-4 patch conv -> mu, logvar (1 channel) ----
    x0 = xp_ref[:, 0]
    mu = x0 * w_ref[_I_W_MU]
    lv = x0 * w_ref[_I_W_LV]
    for i in range(1, FF_):
        xi = xp_ref[:, i]
        mu = mu + xi * w_ref[_I_W_MU + i]
        lv = lv + xi * w_ref[_I_W_LV + i]
    mu = mu + w_ref[_I_B_MU]
    lv = lv + w_ref[_I_B_LV]
    mu_ref[...] = mu
    lv_ref[...] = lv

    # reparameterized sample: z1 = mu + eps * exp(0.5 * logvar)   (exp reused for KL)
    s = jnp.exp(0.5 * lv)
    z1 = mu + eps_ref[...] * s

    scale = w_ref[_I_SCALE]
    shift = w_ref[_I_SHIFT]
    inv_scale = w_ref[_I_INV_SCALE]

    # ---- channel_exp + tanh scaling, fused with the (atanh-free) inverse ----
    z1d = jnp.zeros_like(z1)                       # channel_red accumulator
    t_in = jnp.zeros((h, w), jnp.float32)          # in-block temporal SSE
    t_cross = jnp.zeros((h, w), jnp.float32)       # cross-block temporal SSE
    for c in range(C_):
        a_c = w_ref[_I_W_EXP + c] * scale
        b_c = w_ref[_I_B_EXP + c] * scale + shift
        y = z1 * a_c + b_c                         # (TT, h, w) pre-tanh activation
        zc = jnp.tanh(y)
        z_ref[:, c] = zc
        # decode inverse of the tanh scaling without the atanh round trip:
        #   atanh(clip(tanh(y), +/-0.999)) == clip(y, +/-atanh(0.999))
        zs = (jnp.clip(y, -ATANH_CLIP, ATANH_CLIP) - shift) * inv_scale
        z1d = z1d + zs * w_ref[_I_W_RED + c]
        # temporal consistency partial sums
        if TT > 1:
            dz = zc[1:] - zc[:-1]
            t_in = t_in + jnp.sum(dz * dz, axis=0)
        d0 = zc[0] - zprev_ref[c]
        t_cross = t_cross + d0 * d0
        zprev_ref[c] = zc[TT - 1]
    z1d = z1d + w_ref[_I_B_RED]

    # ---- patch decode + recon SSE ----
    rsum = jnp.zeros((h, w), jnp.float32)
    for i in range(FF_):
        ri = z1d * w_ref[_I_W_DEC + i] + w_ref[_I_B_DEC + i]
        recon_ref[:, i] = ri
        d = ri - xp_ref[:, i]
        rsum = rsum + jnp.sum(d * d, axis=0)

    # KL term: 1 + logvar - mu^2 - exp(logvar), with exp(logvar) = s*s
    ksum = jnp.sum(1.0 + lv - mu * mu - s * s, axis=0)

    @pl.when(tb == 0)
    def _init_loss():
        loss_ref[0] = rsum
        loss_ref[1] = ksum
        loss_ref[2] = t_in

    @pl.when(tb > 0)
    def _acc_loss():
        loss_ref[0] += rsum
        loss_ref[1] += ksum
        loss_ref[2] += t_in + t_cross


# ----------------------------------------------------------------------------
# Parameters (deterministic, in-script synthetic MedVAE stand-in)
# ----------------------------------------------------------------------------
def init_params(key, latent_channels=LATENT_CHANNELS):
    ks = jax.random.split(key, 5)
    p = {}
    p['w_mu'] = jax.random.normal(ks[0], (FF,), jnp.float32) * 0.1
    p['b_mu'] = jnp.asarray(0.0, jnp.float32)
    p['w_lv'] = jax.random.normal(ks[1], (FF,), jnp.float32) * 0.1
    p['b_lv'] = jnp.asarray(-2.0, jnp.float32)
    p['w_exp'] = jax.random.normal(ks[2], (latent_channels,), jnp.float32) * 0.5
    p['b_exp'] = jnp.zeros((latent_channels,), jnp.float32)
    p['w_red'] = jax.random.normal(ks[3], (latent_channels,), jnp.float32) * 0.5
    p['b_red'] = jnp.asarray(0.0, jnp.float32)
    p['w_dec'] = jax.random.normal(ks[4], (FF,), jnp.float32) * 0.1
    p['b_dec'] = jnp.zeros((FF,), jnp.float32)
    p['latent_scale'] = jnp.asarray(1.0, jnp.float32)   # torch.ones(1)
    p['latent_shift'] = jnp.asarray(0.0, jnp.float32)   # torch.zeros(1)
    return p


def _pack_weights(params):
    scalars = jnp.stack([params['b_mu'], params['b_lv'], params['b_red'],
                         params['latent_scale'], params['latent_shift'],
                         1.0 / params['latent_scale']])
    wvec = jnp.concatenate([params['w_mu'], params['w_lv'], params['w_dec'],
                            params['b_dec'], params['w_exp'], params['b_exp'],
                            params['w_red'], scalars]).astype(jnp.float32)
    assert wvec.shape == (_NW,)
    return wvec


# ----------------------------------------------------------------------------
# Forward pass (thin JAX glue around one fused pallas_call)
# ----------------------------------------------------------------------------
def lungct_vae_forward(x, eps, params):
    """x: (B, 1, T, H, W) f32.  eps: (B, T, h, w) reparam noise (h=H//4, w=W//4)."""
    B, cin, T, H, W = x.shape
    assert cin == 1 and H % F == 0 and W % F == 0
    h, w = H // F, W // F
    assert eps.shape == (B, T, h, w)

    TT = max(tt for tt in (1, 2, 4) if T % tt == 0)   # frames per grid step
    Tb = T // TT

    # patchified layout: xp[b, t, dy*F+dx, hh, ww] = x[b, 0, t, F*hh+dy, F*ww+dx]
    # (allow_input_fusion lets XLA fuse this transpose into the operand read)
    xp = (x[:, 0].astype(jnp.float32)
          .reshape(B, T, h, F, w, F)
          .transpose(0, 1, 3, 5, 2, 4)
          .reshape(B, T, FF, h, w))
    eps = eps.astype(jnp.float32)
    wvec = _pack_weights(params)

    def frame_spec(rows):
        return pl.BlockSpec((None, TT, rows, h, w),
                            lambda b, t: (b, t, 0, 0, 0))

    def map_spec():
        return pl.BlockSpec((None, TT, h, w), lambda b, t: (b, t, 0, 0))

    def acc_spec():
        return pl.BlockSpec((None, 3, h, w), lambda b, t: (b, 0, 0, 0))

    in_specs = [frame_spec(FF), map_spec(),
                pl.BlockSpec(memory_space=pltpu.MemorySpace.SMEM)]
    out_specs = (frame_spec(C), map_spec(), map_spec(), frame_spec(FF), acc_spec())
    out_shape = (
        jax.ShapeDtypeStruct((B, T, C, h, w), jnp.float32),    # z (tanh latent)
        jax.ShapeDtypeStruct((B, T, h, w), jnp.float32),       # mu
        jax.ShapeDtypeStruct((B, T, h, w), jnp.float32),       # logvar
        jax.ShapeDtypeStruct((B, T, FF, h, w), jnp.float32),   # recon patches
        jax.ShapeDtypeStruct((B, 3, h, w), jnp.float32),       # loss partial sums
    )

    z_o, mu_o, lv_o, rec_o, loss_o = pl.pallas_call(
        _fused_vae_kernel,
        grid=(B, Tb),
        in_specs=in_specs,
        out_specs=out_specs,
        out_shape=out_shape,
        scratch_shapes=[pltpu.VMEM((C, h, w), jnp.float32)],   # z_prev carry
        compiler_params=pltpu.CompilerParams(
            dimension_semantics=("parallel", "arbitrary"),
            allow_input_fusion=[True, False, False],
            vmem_limit_bytes=48 * 1024 * 1024,
        ),
    )(xp, eps, wvec)

    # ---- finalize losses with GLOBAL element counts (tiny XLA reductions) ----
    recon_loss = jnp.sum(loss_o[:, 0]) / (B * T * H * W)
    kl_loss = -0.5 * jnp.sum(loss_o[:, 1]) / (B * T * h * w)
    if T > 1:
        temporal_loss = jnp.sum(loss_o[:, 2]) / (B * C * (T - 1) * h * w)
    else:
        temporal_loss = jnp.float32(0.0)
    total = recon_loss + KL_WEIGHT * kl_loss + TEMPORAL_WEIGHT * temporal_loss

    # ---- back to the PyTorch module's output conventions ----
    recon = (rec_o.reshape(B, T, F, F, h, w)
             .transpose(0, 1, 4, 2, 5, 3)
             .reshape(B, T, H, W)[:, None])                    # (B,1,T,H,W)
    latent = jnp.transpose(z_o, (0, 2, 1, 3, 4))               # (B,C,T,h,w)
    mu = mu_o[:, None]                                         # (B,1,T,h,w)
    logvar = lv_o[:, None]

    return {
        'reconstruction': recon,
        'latent': latent,
        'mu': mu,
        'logvar': logvar,
        'loss_recon': recon_loss,
        'loss_kl': kl_loss,
        'loss_temporal': temporal_loss,
        'loss_total': total,
    }


# ----------------------------------------------------------------------------
# Pure-JAX reference (same synthetic model) for a numerical cross-check.
# ----------------------------------------------------------------------------
def reference_forward(x, eps, params):
    B, _, T, H, W = x.shape
    h, w = H // F, W // F
    xp = (x[:, 0].astype(jnp.float32)
          .reshape(B, T, h, F, w, F)
          .transpose(0, 1, 3, 5, 2, 4)
          .reshape(B, T, FF, h, w))
    wm = params['w_mu'][None, None, :, None, None]
    wl = params['w_lv'][None, None, :, None, None]
    mu = jnp.sum(xp * wm, axis=2) + params['b_mu']
    lv = jnp.sum(xp * wl, axis=2) + params['b_lv']
    z1 = mu + eps.astype(jnp.float32) * jnp.exp(0.5 * lv)
    we = params['w_exp'][None, None, :, None, None]
    be = params['b_exp'][None, None, :, None, None]
    y = (z1[:, :, None] * we + be) * params['latent_scale'] + params['latent_shift']
    z = jnp.tanh(y)
    zs = (jnp.clip(y, -ATANH_CLIP, ATANH_CLIP) - params['latent_shift']) / params['latent_scale']
    wr = params['w_red'][None, None, :, None, None]
    z1d = jnp.sum(zs * wr, axis=2) + params['b_red']
    wd = params['w_dec'][None, None, :, None, None]
    bd = params['b_dec'][None, None, :, None, None]
    reconp = z1d[:, :, None] * wd + bd
    recon = (reconp.reshape(B, T, F, F, h, w)
             .transpose(0, 1, 4, 2, 5, 3)
             .reshape(B, T, H, W)[:, None])
    recon_loss = jnp.mean((reconp - xp) ** 2)
    kl_loss = -0.5 * jnp.mean(1.0 + lv - mu * mu - jnp.exp(lv))
    zl = jnp.transpose(z, (0, 2, 1, 3, 4))
    if T > 1:
        temporal_loss = jnp.mean((zl[:, :, 1:] - zl[:, :, :-1]) ** 2)
    else:
        temporal_loss = jnp.float32(0.0)
    total = recon_loss + KL_WEIGHT * kl_loss + TEMPORAL_WEIGHT * temporal_loss
    return {
        'reconstruction': recon,
        'latent': zl,
        'mu': mu[:, None],
        'logvar': lv[:, None],
        'loss_recon': recon_loss,
        'loss_kl': kl_loss,
        'loss_temporal': temporal_loss,
        'loss_total': total,
    }


# ----------------------------------------------------------------------------
if __name__ == "__main__":
    key = jax.random.PRNGKey(0)
    kx, ke, kp = jax.random.split(key, 3)

    B, T, H, W = 2, 8, 16, 16
    h, w = H // F, W // F

    x = jax.random.normal(kx, (B, 1, T, H, W), jnp.float32)
    eps = jax.random.normal(ke, (B, T, h, w), jnp.float32)
    params = init_params(kp)

    out = jax.jit(lungct_vae_forward)(x, eps, params)
    out = jax.block_until_ready(out)

    assert out['reconstruction'].shape == (B, 1, T, H, W)
    assert out['latent'].shape == (B, LATENT_CHANNELS, T, h, w)
    assert out['mu'].shape == (B, 1, T, h, w)
    assert out['logvar'].shape == (B, 1, T, h, w)
    assert out['loss_total'].shape == ()
    for k in ('loss_total', 'loss_recon', 'loss_kl', 'loss_temporal'):
        assert bool(jnp.isfinite(out[k])), k

    # cross-check against the pure-JAX reference
    ref = jax.block_until_ready(jax.jit(reference_forward)(x, eps, params))
    for k in ('reconstruction', 'latent', 'mu', 'logvar'):
        err = float(jnp.max(jnp.abs(out[k] - ref[k])))
        assert err < 1e-3, (k, err)
    for k in ('loss_recon', 'loss_kl', 'loss_temporal', 'loss_total'):
        err = abs(float(out[k]) - float(ref[k]))
        assert err < 1e-3, (k, err)

    print("KERNEL_OK")
</pallas_src>

<mosaic_0001>
module attributes {stable_mosaic.version = 11 : i64} {
  func.func @_fused_vae_kernel(%arg0: i32, %arg1: i32, %arg2: memref<1x4x16x4x4xf32, #tpu.memory_space<vmem>>, %arg3: memref<1x4x4x4xf32, #tpu.memory_space<vmem>>, %arg4: memref<94xf32, #tpu.memory_space<smem>>, %arg5: memref<1x4x8x4x4xf32, #tpu.memory_space<vmem>>, %arg6: memref<1x4x4x4xf32, #tpu.memory_space<vmem>>, %arg7: memref<1x4x4x4xf32, #tpu.memory_space<vmem>>, %arg8: memref<1x4x16x4x4xf32, #tpu.memory_space<vmem>>, %arg9: memref<1x3x4x4xf32, #tpu.memory_space<vmem>>, %arg10: memref<8x4x4xf32, #tpu.memory_space<vmem>>) attributes {dimension_semantics = [#tpu.dimension_semantics<parallel>, #tpu.dimension_semantics<arbitrary>], iteration_bounds = array<i64: 2, 2>, scalar_prefetch = 0 : i64, scratch_operands = 1 : i64, tpu.core_type = #tpu.core_type<tc>, window_params = [{transform_indices = @transform_0, window_bounds = array<i64: 1, 4, 16, 4, 4>}, {transform_indices = @transform_1, window_bounds = array<i64: 1, 4, 4, 4>}, {transform_indices = @transform_2, window_bounds = array<i64: 94>}, {transform_indices = @transform_3, window_bounds = array<i64: 1, 4, 8, 4, 4>}, {transform_indices = @transform_4, window_bounds = array<i64: 1, 4, 4, 4>}, {transform_indices = @transform_5, window_bounds = array<i64: 1, 4, 4, 4>}, {transform_indices = @transform_6, window_bounds = array<i64: 1, 4, 16, 4, 4>}, {transform_indices = @transform_7, window_bounds = array<i64: 1, 3, 4, 4>}]} {
    %c0_i32 = arith.constant 0 : i32
    %0 = arith.cmpi eq, %arg1, %c0_i32 : i32
    %1 = arith.extui %0 : i1 to i32
    %c0_i32_0 = arith.constant 0 : i32
    %2 = arith.cmpi ne, %1, %c0_i32_0 : i32
    scf.if %2 {
      %cst_391 = arith.constant 0.000000e+00 : f32
      %787 = vector.broadcast %cst_391 : f32 to vector<8x4x4xf32>
      %c0_392 = arith.constant 0 : index
      %c0_393 = arith.constant 0 : index
      %c0_394 = arith.constant 0 : index
      %788 = vector.load %arg10[%c0_392, %c0_393, %c0_394] : memref<8x4x4xf32, #tpu.memory_space<vmem>>, vector<8x4x4xf32>
      tpu.vector_store %arg10[%c0_392, %c0_393, %c0_394], %787 {strides = array<i32>} : memref<8x4x4xf32, #tpu.memory_space<vmem>>, vector<8x4x4xf32>,
    } else {
    }
    %c0 = arith.constant 0 : index
    %c0_1 = arith.constant 0 : index
    %c0_2 = arith.constant 0 : index
    %c0_3 = arith.constant 0 : index
    %c0_4 = arith.constant 0 : index
    %3 = vector.load %arg2[%c0, %c0_1, %c0_2, %c0_3, %c0_4] : memref<1x4x16x4x4xf32, #tpu.memory_space<vmem>>, vector<1x4x1x4x4xf32>
    %4 = vector.shape_cast %3 : vector<1x4x1x4x4xf32> to vector<4x4x4xf32>
    %c0_5 = arith.constant 0 : index
    %5 = memref.load %arg4[%c0_5] : memref<94xf32, #tpu.memory_space<smem>>
    %6 = vector.broadcast %5 : f32 to vector<4x4x4xf32>
    %7 = arith.mulf %4, %6 : vector<4x4x4xf32>
    %c16 = arith.constant 16 : index
    %8 = memref.load %arg4[%c16] : memref<94xf32, #tpu.memory_space<smem>>
    %9 = vector.broadcast %8 : f32 to vector<4x4x4xf32>
    %10 = arith.mulf %4, %9 : vector<4x4x4xf32>
    %c0_6 = arith.constant 0 : index
    %c0_7 = arith.constant 0 : index
    %c1 = arith.constant 1 : index
    %c0_8 = arith.constant 0 : index
    %c0_9 = arith.constant 0 : index
    %11 = vector.load %arg2[%c0_6, %c0_7, %c1, %c0_8, %c0_9] : memref<1x4x16x4x4xf32, #tpu.memory_space<vmem>>, vector<1x4x1x4x4xf32>
    %12 = vector.shape_cast %11 : vector<1x4x1x4x4xf32> to vector<4x4x4xf32>
    %c1_10 = arith.constant 1 : index
    %13 = memref.load %arg4[%c1_10] : memref<94xf32, #tpu.memory_space<smem>>
    %14 = vector.broadcast %13 : f32 to vector<4x4x4xf32>
    %15 = arith.mulf %12, %14 : vector<4x4x4xf32>
    %16 = arith.addf %7, %15 : vector<4x4x4xf32>
    %c17 = arith.constant 17 : index
    %17 = memref.load %arg4[%c17] : memref<94xf32, #tpu.memory_space<smem>>
    %18 = vector.broadcast %17 : f32 to vector<4x4x4xf32>
    %19 = arith.mulf %12, %18 : vector<4x4x4xf32>
    %20 = arith.addf %10, %19 : vector<4x4x4xf32>
    %c0_11 = arith.constant 0 : index
    %c0_12 = arith.constant 0 : index
    %c2 = arith.constant 2 : index
    %c0_13 = arith.constant 0 : index
    %c0_14 = arith.constant 0 : index
    %21 = vector.load %arg2[%c0_11, %c0_12, %c2, %c0_13, %c0_14] : memref<1x4x16x4x4xf32, #tpu.memory_space<vmem>>, vector<1x4x1x4x4xf32>
    %22 = vector.shape_cast %21 : vector<1x4x1x4x4xf32> to vector<4x4x4xf32>
    %c2_15 = arith.constant 2 : index
    %23 = memref.load %arg4[%c2_15] : memref<94xf32, #tpu.memory_space<smem>>
    %24 = vector.broadcast %23 : f32 to vector<4x4x4xf32>
    %25 = arith.mulf %22, %24 : vector<4x4x4xf32>
    %26 = arith.addf %16, %25 : vector<4x4x4xf32>
    %c18 = arith.constant 18 : index
    %27 = memref.load %arg4[%c18] : memref<94xf32, #tpu.memory_space<smem>>
    %28 = vector.broadcast %27 : f32 to vector<4x4x4xf32>
    %29 = arith.mulf %22, %28 : vector<4x4x4xf32>
    %30 = arith.addf %20, %29 : vector<4x4x4xf32>
    %c0_16 = arith.constant 0 : index
    %c0_17 = arith.constant 0 : index
    %c3 = arith.constant 3 : index
    %c0_18 = arith.constant 0 : index
    %c0_19 = arith.constant 0 : index
    %31 = vector.load %arg2[%c0_16, %c0_17, %c3, %c0_18, %c0_19] : memref<1x4x16x4x4xf32, #tpu.memory_space<vmem>>, vector<1x4x1x4x4xf32>
    %32 = vector.shape_cast %31 : vector<1x4x1x4x4xf32> to vector<4x4x4xf32>
    %c3_20 = arith.constant 3 : index
    %33 = memref.load %arg4[%c3_20] : memref<94xf32, #tpu.memory_space<smem>>
    %34 = vector.broadcast %33 : f32 to vector<4x4x4xf32>
    %35 = arith.mulf %32, %34 : vector<4x4x4xf32>
    %36 = arith.addf %26, %35 : vector<4x4x4xf32>
    %c19 = arith.constant 19 : index
    %37 = memref.load %arg4[%c19] : memref<94xf32, #tpu.memory_space<smem>>
    %38 = vector.broadcast %37 : f32 to vector<4x4x4xf32>
    %39 = arith.mulf %32, %38 : vector<4x4x4xf32>
    %40 = arith.addf %30, %39 : vector<4x4x4xf32>
    %c0_21 = arith.constant 0 : index
    %c0_22 = arith.constant 0 : index
    %c4 = arith.constant 4 : index
    %c0_23 = arith.constant 0 : index
    %c0_24 = arith.constant 0 : index
    %41 = vector.load %arg2[%c0_21, %c0_22, %c4, %c0_23, %c0_24] : memref<1x4x16x4x4xf32, #tpu.memory_space<vmem>>, vector<1x4x1x4x4xf32>
    %42 = vector.shape_cast %41 : vector<1x4x1x4x4xf32> to vector<4x4x4xf32>
    %c4_25 = arith.constant 4 : index
    %43 = memref.load %arg4[%c4_25] : memref<94xf32, #tpu.memory_space<smem>>
    %44 = vector.broadcast %43 : f32 to vector<4x4x4xf32>
    %45 = arith.mulf %42, %44 : vector<4x4x4xf32>
    %46 = arith.addf %36, %45 : vector<4x4x4xf32>
    %c20 = arith.constant 20 : index
    %47 = memref.load %arg4[%c20] : memref<94xf32, #tpu.memory_space<smem>>
    %48 = vector.broadcast %47 : f32 to vector<4x4x4xf32>
    %49 = arith.mulf %42, %48 : vector<4x4x4xf32>
    %50 = arith.addf %40, %49 : vector<4x4x4xf32>
    %c0_26 = arith.constant 0 : index
    %c0_27 = arith.constant 0 : index
    %c5 = arith.constant 5 : index
    %c0_28 = arith.constant 0 : index
    %c0_29 = arith.constant 0 : index
    %51 = vector.load %arg2[%c0_26, %c0_27, %c5, %c0_28, %c0_29] : memref<1x4x16x4x4xf32, #tpu.memory_space<vmem>>, vector<1x4x1x4x4xf32>
    %52 = vector.shape_cast %51 : vector<1x4x1x4x4xf32> to vector<4x4x4xf32>
    %c5_30 = arith.constant 5 : index
    %53 = memref.load %arg4[%c5_30] : memref<94xf32, #tpu.memory_space<smem>>
    %54 = vector.broadcast %53 : f32 to vector<4x4x4xf32>
    %55 = arith.mulf %52, %54 : vector<4x4x4xf32>
    %56 = arith.addf %46, %55 : vector<4x4x4xf32>
    %c21 = arith.constant 21 : index
    %57 = memref.load %arg4[%c21] : memref<94xf32, #tpu.memory_space<smem>>
    %58 = vector.broadcast %57 : f32 to vector<4x4x4xf32>
    %59 = arith.mulf %52, %58 : vector<4x4x4xf32>
    %60 = arith.addf %50, %59 : vector<4x4x4xf32>
    %c0_31 = arith.constant 0 : index
    %c0_32 = arith.constant 0 : index
    %c6 = arith.constant 6 : index
    %c0_33 = arith.constant 0 : index
    %c0_34 = arith.constant 0 : index
    %61 = vector.load %arg2[%c0_31, %c0_32, %c6, %c0_33, %c0_34] : memref<1x4x16x4x4xf32, #tpu.memory_space<vmem>>, vector<1x4x1x4x4xf32>
    %62 = vector.shape_cast %61 : vector<1x4x1x4x4xf32> to vector<4x4x4xf32>
    %c6_35 = arith.constant 6 : index
    %63 = memref.load %arg4[%c6_35] : memref<94xf32, #tpu.memory_space<smem>>
    %64 = vector.broadcast %63 : f32 to vector<4x4x4xf32>
    %65 = arith.mulf %62, %64 : vector<4x4x4xf32>
    %66 = arith.addf %56, %65 : vector<4x4x4xf32>
    %c22 = arith.constant 22 : index
    %67 = memref.load %arg4[%c22] : memref<94xf32, #tpu.memory_space<smem>>
    %68 = vector.broadcast %67 : f32 to vector<4x4x4xf32>
    %69 = arith.mulf %62, %68 : vector<4x4x4xf32>
    %70 = arith.addf %60, %69 : vector<4x4x4xf32>
    %c0_36 = arith.constant 0 : index
    %c0_37 = arith.constant 0 : index
    %c7 = arith.constant 7 : index
    %c0_38 = arith.constant 0 : index
    %c0_39 = arith.constant 0 : index
    %71 = vector.load %arg2[%c0_36, %c0_37, %c7, %c0_38, %c0_39] : memref<1x4x16x4x4xf32, #tpu.memory_space<vmem>>, vector<1x4x1x4x4xf32>
    %72 = vector.shape_cast %71 : vector<1x4x1x4x4xf32> to vector<4x4x4xf32>
    %c7_40 = arith.constant 7 : index
    %73 = memref.load %arg4[%c7_40] : memref<94xf32, #tpu.memory_space<smem>>
    %74 = vector.broadcast %73 : f32 to vector<4x4x4xf32>
    %75 = arith.mulf %72, %74 : vector<4x4x4xf32>
    %76 = arith.addf %66, %75 : vector<4x4x4xf32>
    %c23 = arith.constant 23 : index
    %77 = memref.load %arg4[%c23] : memref<94xf32, #tpu.memory_space<smem>>
    %78 = vector.broadcast %77 : f32 to vector<4x4x4xf32>
    %79 = arith.mulf %72, %78 : vector<4x4x4xf32>
    %80 = arith.addf %70, %79 : vector<4x4x4xf32>
    %c0_41 = arith.constant 0 : index
    %c0_42 = arith.constant 0 : index
    %c8 = arith.constant 8 : index
    %c0_43 = arith.constant 0 : index
    %c0_44 = arith.constant 0 : index
    %81 = vector.load %arg2[%c0_41, %c0_42, %c8, %c0_43, %c0_44] : memref<1x4x16x4x4xf32, #tpu.memory_space<vmem>>, vector<1x4x1x4x4xf32>
    %82 = vector.shape_cast %81 : vector<1x4x1x4x4xf32> to vector<4x4x4xf32>
    %c8_45 = arith.constant 8 : index
    %83 = memref.load %arg4[%c8_45] : memref<94xf32, #tpu.memory_space<smem>>
    %84 = vector.broadcast %83 : f32 to vector<4x4x4xf32>
    %85 = arith.mulf %82, %84 : vector<4x4x4xf32>
    %86 = arith.addf %76, %85 : vector<4x4x4xf32>
    %c24 = arith.constant 24 : index
    %87 = memref.load %arg4[%c24] : memref<94xf32, #tpu.memory_space<smem>>
    %88 = vector.broadcast %87 : f32 to vector<4x4x4xf32>
    %89 = arith.mulf %82, %88 : vector<4x4x4xf32>
    %90 = arith.addf %80, %89 : vector<4x4x4xf32>
    %c0_46 = arith.constant 0 : index
    %c0_47 = arith.constant 0 : index
    %c9 = arith.constant 9 : index
    %c0_48 = arith.constant 0 : index
    %c0_49 = arith.constant 0 : index
    %91 = vector.load %arg2[%c0_46, %c0_47, %c9, %c0_48, %c0_49] : memref<1x4x16x4x4xf32, #tpu.memory_space<vmem>>, vector<1x4x1x4x4xf32>
    %92 = vector.shape_cast %91 : vector<1x4x1x4x4xf32> to vector<4x4x4xf32>
    %c9_50 = arith.constant 9 : index
    %93 = memref.load %arg4[%c9_50] : memref<94xf32, #tpu.memory_space<smem>>
    %94 = vector.broadcast %93 : f32 to vector<4x4x4xf32>
    %95 = arith.mulf %92, %94 : vector<4x4x4xf32>
    %96 = arith.addf %86, %95 : vector<4x4x4xf32>
    %c25 = arith.constant 25 : index
    %97 = memref.load %arg4[%c25] : memref<94xf32, #tpu.memory_space<smem>>
    %98 = vector.broadcast %97 : f32 to vector<4x4x4xf32>
    %99 = arith.mulf %92, %98 : vector<4x4x4xf32>
    %100 = arith.addf %90, %99 : vector<4x4x4xf32>
    %c0_51 = arith.constant 0 : index
    %c0_52 = arith.constant 0 : index
    %c10 = arith.constant 10 : index
    %c0_53 = arith.constant 0 : index
    %c0_54 = arith.constant 0 : index
    %101 = vector.load %arg2[%c0_51, %c0_52, %c10, %c0_53, %c0_54] : memref<1x4x16x4x4xf32, #tpu.memory_space<vmem>>, vector<1x4x1x4x4xf32>
    %102 = vector.shape_cast %101 : vector<1x4x1x4x4xf32> to vector<4x4x4xf32>
    %c10_55 = arith.constant 10 : index
    %103 = memref.load %arg4[%c10_55] : memref<94xf32, #tpu.memory_space<smem>>
    %104 = vector.broadcast %103 : f32 to vector<4x4x4xf32>
    %105 = arith.mulf %102, %104 : vector<4x4x4xf32>
    %106 = arith.addf %96, %105 : vector<4x4x4xf32>
    %c26 = arith.constant 26 : index
    %107 = memref.load %arg4[%c26] : memref<94xf32, #tpu.memory_space<smem>>
    %108 = vector.broadcast %107 : f32 to vector<4x4x4xf32>
    %109 = arith.mulf %102, %108 : vector<4x4x4xf32>
    %110 = arith.addf %100, %109 : vector<4x4x4xf32>
    %c0_56 = arith.constant 0 : index
    %c0_57 = arith.constant 0 : index
    %c11 = arith.constant 11 : index
    %c0_58 = arith.constant 0 : index
    %c0_59 = arith.constant 0 : index
    %111 = vector.load %arg2[%c0_56, %c0_57, %c11, %c0_58, %c0_59] : memref<1x4x16x4x4xf32, #tpu.memory_space<vmem>>, vector<1x4x1x4x4xf32>
    %112 = vector.shape_cast %111 : vector<1x4x1x4x4xf32> to vector<4x4x4xf32>
    %c11_60 = arith.constant 11 : index
    %113 = memref.load %arg4[%c11_60] : memref<94xf32, #tpu.memory_space<smem>>
    %114 = vector.broadcast %113 : f32 to vector<4x4x4xf32>
    %115 = arith.mulf %112, %114 : vector<4x4x4xf32>
    %116 = arith.addf %106, %115 : vector<4x4x4xf32>
    %c27 = arith.constant 27 : index
    %117 = memref.load %arg4[%c27] : memref<94xf32, #tpu.memory_space<smem>>
    %118 = vector.broadcast %117 : f32 to vector<4x4x4xf32>
    %119 = arith.mulf %112, %118 : vector<4x4x4xf32>
    %120 = arith.addf %110, %119 : vector<4x4x4xf32>
    %c0_61 = arith.constant 0 : index
    %c0_62 = arith.constant 0 : index
    %c12 = arith.constant 12 : index
    %c0_63 = arith.constant 0 : index
    %c0_64 = arith.constant 0 : index
    %121 = vector.load %arg2[%c0_61, %c0_62, %c12, %c0_63, %c0_64] : memref<1x4x16x4x4xf32, #tpu.memory_space<vmem>>, vector<1x4x1x4x4xf32>
    %122 = vector.shape_cast %121 : vector<1x4x1x4x4xf32> to vector<4x4x4xf32>
    %c12_65 = arith.constant 12 : index
    %123 = memref.load %arg4[%c12_65] : memref<94xf32, #tpu.memory_space<smem>>
    %124 = vector.broadcast %123 : f32 to vector<4x4x4xf32>
    %125 = arith.mulf %122, %124 : vector<4x4x4xf32>
    %126 = arith.addf %116, %125 : vector<4x4x4xf32>
    %c28 = arith.constant 28 : index
    %127 = memref.load %arg4[%c28] : memref<94xf32, #tpu.memory_space<smem>>
    %128 = vector.broadcast %127 : f32 to vector<4x4x4xf32>
    %129 = arith.mulf %122, %128 : vector<4x4x4xf32>
    %130 = arith.addf %120, %129 : vector<4x4x4xf32>
    %c0_66 = arith.constant 0 : index
    %c0_67 = arith.constant 0 : index
    %c13 = arith.constant 13 : index
    %c0_68 = arith.constant 0 : index
    %c0_69 = arith.constant 0 : index
    %131 = vector.load %arg2[%c0_66, %c0_67, %c13, %c0_68, %c0_69] : memref<1x4x16x4x4xf32, #tpu.memory_space<vmem>>, vector<1x4x1x4x4xf32>
    %132 = vector.shape_cast %131 : vector<1x4x1x4x4xf32> to vector<4x4x4xf32>
    %c13_70 = arith.constant 13 : index
    %133 = memref.load %arg4[%c13_70] : memref<94xf32, #tpu.memory_space<smem>>
    %134 = vector.broadcast %133 : f32 to vector<4x4x4xf32>
    %135 = arith.mulf %132, %134 : vector<4x4x4xf32>
    %136 = arith.addf %126, %135 : vector<4x4x4xf32>
    %c29 = arith.constant 29 : index
    %137 = memref.load %arg4[%c29] : memref<94xf32, #tpu.memory_space<smem>>
    %138 = vector.broadcast %137 : f32 to vector<4x4x4xf32>
    %139 = arith.mulf %132, %138 : vector<4x4x4xf32>
    %140 = arith.addf %130, %139 : vector<4x4x4xf32>
    %c0_71 = arith.constant 0 : index
    %c0_72 = arith.constant 0 : index
    %c14 = arith.constant 14 : index
    %c0_73 = arith.constant 0 : index
    %c0_74 = arith.constant 0 : index
    %141 = vector.load %arg2[%c0_71, %c0_72, %c14, %c0_73, %c0_74] : memref<1x4x16x4x4xf32, #tpu.memory_space<vmem>>, vector<1x4x1x4x4xf32>
    %142 = vector.shape_cast %141 : vector<1x4x1x4x4xf32> to vector<4x4x4xf32>
    %c14_75 = arith.constant 14 : index
    %143 = memref.load %arg4[%c14_75] : memref<94xf32, #tpu.memory_space<smem>>
    %144 = vector.broadcast %143 : f32 to vector<4x4x4xf32>
    %145 = arith.mulf %142, %144 : vector<4x4x4xf32>
    %146 = arith.addf %136, %145 : vector<4x4x4xf32>
    %c30 = arith.constant 30 : index
    %147 = memref.load %arg4[%c30] : memref<94xf32, #tpu.memory_space<smem>>
    %148 = vector.broadcast %147 : f32 to vector<4x4x4xf32>
    %149 = arith.mulf %142, %148 : vector<4x4x4xf32>
    %150 = arith.addf %140, %149 : vector<4x4x4xf32>
    %c0_76 = arith.constant 0 : index
    %c0_77 = arith.constant 0 : index
    %c15 = arith.constant 15 : index
    %c0_78 = arith.constant 0 : index
    %c0_79 = arith.constant 0 : index
    %151 = vector.load %arg2[%c0_76, %c0_77, %c15, %c0_78, %c0_79] : memref<1x4x16x4x4xf32, #tpu.memory_space<vmem>>, vector<1x4x1x4x4xf32>
    %152 = vector.shape_cast %151 : vector<1x4x1x4x4xf32> to vector<4x4x4xf32>
    %c15_80 = arith.constant 15 : index
    %153 = memref.load %arg4[%c15_80] : memref<94xf32, #tpu.memory_space<smem>>
    %154 = vector.broadcast %153 : f32 to vector<4x4x4xf32>
    %155 = arith.mulf %152, %154 : vector<4x4x4xf32>
    %156 = arith.addf %146, %155 : vector<4x4x4xf32>
    %c31 = arith.constant 31 : index
    %157 = memref.load %arg4[%c31] : memref<94xf32, #tpu.memory_space<smem>>
    %158 = vector.broadcast %157 : f32 to vector<4x4x4xf32>
    %159 = arith.mulf %152, %158 : vector<4x4x4xf32>
    %160 = arith.addf %150, %159 : vector<4x4x4xf32>
    %c88 = arith.constant 88 : index
    %161 = memref.load %arg4[%c88] : memref<94xf32, #tpu.memory_space<smem>>
    %162 = vector.broadcast %161 : f32 to vector<4x4x4xf32>
    %163 = arith.addf %156, %162 : vector<4x4x4xf32>
    %c89 = arith.constant 89 : index
    %164 = memref.load %arg4[%c89] : memref<94xf32, #tpu.memory_space<smem>>
    %165 = vector.broadcast %164 : f32 to vector<4x4x4xf32>
    %166 = arith.addf %160, %165 : vector<4x4x4xf32>
    %c0_81 = arith.constant 0 : index
    %c0_82 = arith.constant 0 : index
    %c0_83 = arith.constant 0 : index
    %c0_84 = arith.constant 0 : index
    %167 = vector.load %arg6[%c0_81, %c0_82, %c0_83, %c0_84] : memref<1x4x4x4xf32, #tpu.memory_space<vmem>>, vector<1x4x4x4xf32>
    %168 = vector.shape_cast %167 : vector<1x4x4x4xf32> to vector<4x4x4xf32>
    %169 = vector.shape_cast %163 : vector<4x4x4xf32> to vector<1x4x4x4xf32>
    tpu.vector_store %arg6[%c0_81, %c0_82, %c0_83, %c0_84], %169 {strides = array<i32>} : memref<1x4x4x4xf32, #tpu.memory_space<vmem>>, vector<1x4x4x4xf32>,
    %c0_85 = arith.constant 0 : index
    %c0_86 = arith.constant 0 : index
    %c0_87 = arith.constant 0 : index
    %c0_88 = arith.constant 0 : index
    %170 = vector.load %arg7[%c0_85, %c0_86, %c0_87, %c0_88] : memref<1x4x4x4xf32, #tpu.memory_space<vmem>>, vector<1x4x4x4xf32>
    %171 = vector.shape_cast %170 : vector<1x4x4x4xf32> to vector<4x4x4xf32>
    %172 = vector.shape_cast %166 : vector<4x4x4xf32> to vector<1x4x4x4xf32>
    tpu.vector_store %arg7[%c0_85, %c0_86, %c0_87, %c0_88], %172 {strides = array<i32>} : memref<1x4x4x4xf32, #tpu.memory_space<vmem>>, vector<1x4x4x4xf32>,
    %cst = arith.constant 5.000000e-01 : f32
    %173 = vector.broadcast %cst : f32 to vector<4x4x4xf32>
    %174 = arith.mulf %173, %166 : vector<4x4x4xf32>
    %175 = math.exp %174 : vector<4x4x4xf32>
    %c0_89 = arith.constant 0 : index
    %c0_90 = arith.constant 0 : index
    %c0_91 = arith.constant 0 : index
    %c0_92 = arith.constant 0 : index
    %176 = vector.load %arg3[%c0_89, %c0_90, %c0_91, %c0_92] : memref<1x4x4x4xf32, #tpu.memory_space<vmem>>, vector<1x4x4x4xf32>
    %177 = vector.shape_cast %176 : vector<1x4x4x4xf32> to vector<4x4x4xf32>
    %178 = arith.mulf %177, %175 : vector<4x4x4xf32>
    %179 = arith.addf %163, %178 : vector<4x4x4xf32>
    %c91 = arith.constant 91 : index
    %180 = memref.load %arg4[%c91] : memref<94xf32, #tpu.memory_space<smem>>
    %c92 = arith.constant 92 : index
    %181 = memref.load %arg4[%c92] : memref<94xf32, #tpu.memory_space<smem>>
    %c93 = arith.constant 93 : index
    %182 = memref.load %arg4[%c93] : memref<94xf32, #tpu.memory_space<smem>>
    %cst_93 = arith.constant 0.000000e+00 : f32
    %183 = vector.broadcast %cst_93 : f32 to vector<4x4x4xf32>
    %cst_94 = arith.constant 0.000000e+00 : f32
    %184 = vector.broadcast %cst_94 : f32 to vector<4x4xf32>
    %cst_95 = arith.constant 0.000000e+00 : f32
    %185 = vector.broadcast %cst_95 : f32 to vector<4x4xf32>
    %c64 = arith.constant 64 : index
    %186 = memref.load %arg4[%c64] : memref<94xf32, #tpu.memory_space<smem>>
    %187 = arith.mulf %186, %180 : f32
    %c72 = arith.constant 72 : index
    %188 = memref.load %arg4[%c72] : memref<94xf32, #tpu.memory_space<smem>>
    %189 = arith.mulf %188, %180 : f32
    %190 = arith.addf %189, %181 : f32
    %191 = vector.broadcast %187 : f32 to vector<4x4x4xf32>
    %192 = arith.mulf %179, %191 : vector<4x4x4xf32>
    %193 = vector.broadcast %190 : f32 to vector<4x4x4xf32>
    %194 = arith.addf %192, %193 : vector<4x4x4xf32>
    %195 = math.tanh %194 : vector<4x4x4xf32>
    %c0_96 = arith.constant 0 : index
    %c0_97 = arith.constant 0 : index
    %c0_98 = arith.constant 0 : index
    %c0_99 = arith.constant 0 : index
    %c0_100 = arith.constant 0 : index
    %196 = vector.load %arg5[%c0_96, %c0_97, %c0_98, %c0_99, %c0_100] : memref<1x4x8x4x4xf32, #tpu.memory_space<vmem>>, vector<1x4x1x4x4xf32>
    %197 = vector.shape_cast %196 : vector<1x4x1x4x4xf32> to vector<4x4x4xf32>
    %198 = vector.shape_cast %195 : vector<4x4x4xf32> to vector<1x4x1x4x4xf32>
    tpu.vector_store %arg5[%c0_96, %c0_97, %c0_98, %c0_99, %c0_100], %198 {strides = array<i32>} : memref<1x4x8x4x4xf32, #tpu.memory_space<vmem>>, vector<1x4x1x4x4xf32>,
    %cst_101 = arith.constant -3.80020118 : f32
    %cst_102 = arith.constant 3.80020118 : f32
    %199 = vector.broadcast %cst_101 : f32 to vector<4x4x4xf32>
    %200 = arith.maximumf %199, %194 : vector<4x4x4xf32>
    %201 = vector.broadcast %cst_102 : f32 to vector<4x4x4xf32>
    %202 = arith.minimumf %201, %200 : vector<4x4x4xf32>
    %203 = vector.broadcast %181 : f32 to vector<4x4x4xf32>
    %204 = arith.subf %202, %203 : vector<4x4x4xf32>
    %205 = vector.broadcast %182 : f32 to vector<4x4x4xf32>
    %206 = arith.mulf %204, %205 : vector<4x4x4xf32>
    %c80 = arith.constant 80 : index
    %207 = memref.load %arg4[%c80] : memref<94xf32, #tpu.memory_space<smem>>
    %208 = vector.broadcast %207 : f32 to vector<4x4x4xf32>
    %209 = arith.mulf %206, %208 : vector<4x4x4xf32>
    %210 = arith.addf %183, %209 : vector<4x4x4xf32>
    %211 = vector.extract_strided_slice %195 {offsets = [1, 0, 0], sizes = [3, 4, 4], strides = [1, 1, 1]} : vector<4x4x4xf32> to vector<3x4x4xf32>
    %212 = vector.extract_strided_slice %195 {offsets = [0, 0, 0], sizes = [3, 4, 4], strides = [1, 1, 1]} : vector<4x4x4xf32> to vector<3x4x4xf32>
    %213 = arith.subf %211, %212 : vector<3x4x4xf32>
    %214 = arith.mulf %213, %213 : vector<3x4x4xf32>
    %cst_103 = arith.constant dense<0.000000e+00> : vector<4x4xf32>
    %215 = vector.multi_reduction <add>, %214, %cst_103 [0] : vector<3x4x4xf32> to vector<4x4xf32>
    %216 = arith.addf %184, %215 : vector<4x4xf32>
    %217 = vector.extract_strided_slice %195 {offsets = [0, 0, 0], sizes = [1, 4, 4], strides = [1, 1, 1]} : vector<4x4x4xf32> to vector<1x4x4xf32>
    %218 = vector.shape_cast %217 : vector<1x4x4xf32> to vector<4x4xf32>
    %c0_104 = arith.constant 0 : index
    %c0_105 = arith.constant 0 : index
    %c0_106 = arith.constant 0 : index
    %219 = vector.load %arg10[%c0_104, %c0_105, %c0_106] : memref<8x4x4xf32, #tpu.memory_space<vmem>>, vector<1x4x4xf32>
    %220 = vector.shape_cast %219 : vector<1x4x4xf32> to vector<4x4xf32>
    %221 = arith.subf %218, %220 : vector<4x4xf32>
    %222 = arith.mulf %221, %221 : vector<4x4xf32>
    %223 = arith.addf %185, %222 : vector<4x4xf32>
    %224 = vector.extract_strided_slice %195 {offsets = [3, 0, 0], sizes = [1, 4, 4], strides = [1, 1, 1]} : vector<4x4x4xf32> to vector<1x4x4xf32>
    %225 = vector.shape_cast %224 : vector<1x4x4xf32> to vector<4x4xf32>
    %c0_107 = arith.constant 0 : index
    %c0_108 = arith.constant 0 : index
    %c0_109 = arith.constant 0 : index
    %226 = vector.load %arg10[%c0_107, %c0_108, %c0_109] : memref<8x4x4xf32, #tpu.memory_space<vmem>>, vector<1x4x4xf32>
    %227 = vector.shape_cast %226 : vector<1x4x4xf32> to vector<4x4xf32>
    %228 = vector.shape_cast %225 : vector<4x4xf32> to vector<1x4x4xf32>
    tpu.vector_store %arg10[%c0_107, %c0_108, %c0_109], %228 {strides = array<i32>} : memref<8x4x4xf32, #tpu.memory_space<vmem>>, vector<1x4x4xf32>,
    %c65 = arith.constant 65 : index
    %229 = memref.load %arg4[%c65] : memref<94xf32, #tpu.memory_space<smem>>
    %230 = arith.mulf %229, %180 : f32
    %c73 = arith.constant 73 : index
    %231 = memref.load %arg4[%c73] : memref<94xf32, #tpu.memory_space<smem>>
    %232 = arith.mulf %231, %180 : f32
    %233 = arith.addf %232, %181 : f32
    %234 = vector.broadcast %230 : f32 to vector<4x4x4xf32>
    %235 = arith.mulf %179, %234 : vector<4x4x4xf32>
    %236 = vector.broadcast %233 : f32 to vector<4x4x4xf32>
    %237 = arith.addf %235, %236 : vector<4x4x4xf32>
    %238 = math.tanh %237 : vector<4x4x4xf32>
    %c0_110 = arith.constant 0 : index
    %c0_111 = arith.constant 0 : index
    %c1_112 = arith.constant 1 : index
    %c0_113 = arith.constant 0 : index
    %c0_114 = arith.constant 0 : index
    %239 = vector.load %arg5[%c0_110, %c0_111, %c1_112, %c0_113, %c0_114] : memref<1x4x8x4x4xf32, #tpu.memory_space<vmem>>, vector<1x4x1x4x4xf32>
    %240 = vector.shape_cast %239 : vector<1x4x1x4x4xf32> to vector<4x4x4xf32>
    %241 = vector.shape_cast %238 : vector<4x4x4xf32> to vector<1x4x1x4x4xf32>
    tpu.vector_store %arg5[%c0_110, %c0_111, %c1_112, %c0_113, %c0_114], %241 {strides = array<i32>} : memref<1x4x8x4x4xf32, #tpu.memory_space<vmem>>, vector<1x4x1x4x4xf32>,
    %cst_115 = arith.constant -3.80020118 : f32
    %cst_116 = arith.constant 3.80020118 : f32
    %242 = vector.broadcast %cst_115 : f32 to vector<4x4x4xf32>
    %243 = arith.maximumf %242, %237 : vector<4x4x4xf32>
    %244 = vector.broadcast %cst_116 : f32 to vector<4x4x4xf32>
    %245 = arith.minimumf %244, %243 : vector<4x4x4xf32>
    %246 = vector.broadcast %181 : f32 to vector<4x4x4xf32>
    %247 = arith.subf %245, %246 : vector<4x4x4xf32>
    %248 = vector.broadcast %182 : f32 to vector<4x4x4xf32>
    %249 = arith.mulf %247, %248 : vector<4x4x4xf32>
    %c81 = arith.constant 81 : index
    %250 = memref.load %arg4[%c81] : memref<94xf32, #tpu.memory_space<smem>>
    %251 = vector.broadcast %250 : f32 to vector<4x4x4xf32>
    %252 = arith.mulf %249, %251 : vector<4x4x4xf32>
    %253 = arith.addf %210, %252 : vector<4x4x4xf32>
    %254 = vector.extract_strided_slice %238 {offsets = [1, 0, 0], sizes = [3, 4, 4], strides = [1, 1, 1]} : vector<4x4x4xf32> to vector<3x4x4xf32>
    %255 = vector.extract_strided_slice %238 {offsets = [0, 0, 0], sizes = [3, 4, 4], strides = [1, 1, 1]} : vector<4x4x4xf32> to vector<3x4x4xf32>
    %256 = arith.subf %254, %255 : vector<3x4x4xf32>
    %257 = arith.mulf %256, %256 : vector<3x4x4xf32>
    %cst_117 = arith.constant dense<0.000000e+00> : vector<4x4xf32>
    %258 = vector.multi_reduction <add>, %257, %cst_117 [0] : vector<3x4x4xf32> to vector<4x4xf32>
    %259 = arith.addf %216, %258 : vector<4x4xf32>
    %260 = vector.extract_strided_slice %238 {offsets = [0, 0, 0], sizes = [1, 4, 4], strides = [1, 1, 1]} : vector<4x4x4xf32> to vector<1x4x4xf32>
    %261 = vector.shape_cast %260 : vector<1x4x4xf32> to vector<4x4xf32>
    %c1_118 = arith.constant 1 : index
    %c0_119 = arith.constant 0 : index
    %c0_120 = arith.constant 0 : index
    %262 = vector.load %arg10[%c1_118, %c0_119, %c0_120] : memref<8x4x4xf32, #tpu.memory_space<vmem>>, vector<1x4x4xf32>
    %263 = vector.shape_cast %262 : vector<1x4x4xf32> to vector<4x4xf32>
    %264 = arith.subf %261, %263 : vector<4x4xf32>
    %265 = arith.mulf %264, %264 : vector<4x4xf32>
    %266 = arith.addf %223, %265 : vector<4x4xf32>
    %267 = vector.extract_strided_slice %238 {offsets = [3, 0, 0], sizes = [1, 4, 4], strides = [1, 1, 1]} : vector<4x4x4xf32> to vector<1x4x4xf32>
    %268 = vector.shape_cast %267 : vector<1x4x4xf32> to vector<4x4xf32>
    %c1_121 = arith.constant 1 : index
    %c0_122 = arith.constant 0 : index
    %c0_123 = arith.constant 0 : index
    %269 = vector.load %arg10[%c1_121, %c0_122, %c0_123] : memref<8x4x4xf32, #tpu.memory_space<vmem>>, vector<1x4x4xf32>
    %270 = vector.shape_cast %269 : vector<1x4x4xf32> to vector<4x4xf32>
    %271 = vector.shape_cast %268 : vector<4x4xf32> to vector<1x4x4xf32>
    tpu.vector_store %arg10[%c1_121, %c0_122, %c0_123], %271 {strides = array<i32>} : memref<8x4x4xf32, #tpu.memory_space<vmem>>, vector<1x4x4xf32>,
    %c66 = arith.constant 66 : index
    %272 = memref.load %arg4[%c66] : memref<94xf32, #tpu.memory_space<smem>>
    %273 = arith.mulf %272, %180 : f32
    %c74 = arith.constant 74 : index
    %274 = memref.load %arg4[%c74] : memref<94xf32, #tpu.memory_space<smem>>
    %275 = arith.mulf %274, %180 : f32
    %276 = arith.addf %275, %181 : f32
    %277 = vector.broadcast %273 : f32 to vector<4x4x4xf32>
    %278 = arith.mulf %179, %277 : vector<4x4x4xf32>
    %279 = vector.broadcast %276 : f32 to vector<4x4x4xf32>
    %280 = arith.addf %278, %279 : vector<4x4x4xf32>
    %281 = math.tanh %280 : vector<4x4x4xf32>
    %c0_124 = arith.constant 0 : index
    %c0_125 = arith.constant 0 : index
    %c2_126 = arith.constant 2 : index
    %c0_127 = arith.constant 0 : index
    %c0_128 = arith.constant 0 : index
    %282 = vector.load %arg5[%c0_124, %c0_125, %c2_126, %c0_127, %c0_128] : memref<1x4x8x4x4xf32, #tpu.memory_space<vmem>>, vector<1x4x1x4x4xf32>
    %283 = vector.shape_cast %282 : vector<1x4x1x4x4xf32> to vector<4x4x4xf32>
    %284 = vector.shape_cast %281 : vector<4x4x4xf32> to vector<1x4x1x4x4xf32>
    tpu.vector_store %arg5[%c0_124, %c0_125, %c2_126, %c0_127, %c0_128], %284 {strides = array<i32>} : memref<1x4x8x4x4xf32, #tpu.memory_space<vmem>>, vector<1x4x1x4x4xf32>,
    %cst_129 = arith.constant -3.80020118 : f32
    %cst_130 = arith.constant 3.80020118 : f32
    %285 = vector.broadcast %cst_129 : f32 to vector<4x4x4xf32>
    %286 = arith.maximumf %285, %280 : vector<4x4x4xf32>
    %287 = vector.broadcast %cst_130 : f32 to vector<4x4x4xf32>
    %288 = arith.minimumf %287, %286 : vector<4x4x4xf32>
    %289 = vector.broadcast %181 : f32 to vector<4x4x4xf32>
    %290 = arith.subf %288, %289 : vector<4x4x4xf32>
    %291 = vector.broadcast %182 : f32 to vector<4x4x4xf32>
    %292 = arith.mulf %290, %291 : vector<4x4x4xf32>
    %c82 = arith.constant 82 : index
    %293 = memref.load %arg4[%c82] : memref<94xf32, #tpu.memory_space<smem>>
    %294 = vector.broadcast %293 : f32 to vector<4x4x4xf32>
    %295 = arith.mulf %292, %294 : vector<4x4x4xf32>
    %296 = arith.addf %253, %295 : vector<4x4x4xf32>
    %297 = vector.extract_strided_slice %281 {offsets = [1, 0, 0], sizes = [3, 4, 4], strides = [1, 1, 1]} : vector<4x4x4xf32> to vector<3x4x4xf32>
    %298 = vector.extract_strided_slice %281 {offsets = [0, 0, 0], sizes = [3, 4, 4], strides = [1, 1, 1]} : vector<4x4x4xf32> to vector<3x4x4xf32>
    %299 = arith.subf %297, %298 : vector<3x4x4xf32>
    %300 = arith.mulf %299, %299 : vector<3x4x4xf32>
    %cst_131 = arith.constant dense<0.000000e+00> : vector<4x4xf32>
    %301 = vector.multi_reduction <add>, %300, %cst_131 [0] : vector<3x4x4xf32> to vector<4x4xf32>
    %302 = arith.addf %259, %301 : vector<4x4xf32>
    %303 = vector.extract_strided_slice %281 {offsets = [0, 0, 0], sizes = [1, 4, 4], strides = [1, 1, 1]} : vector<4x4x4xf32> to vector<1x4x4xf32>
    %304 = vector.shape_cast %303 : vector<1x4x4xf32> to vector<4x4xf32>
    %c2_132 = arith.constant 2 : index
    %c0_133 = arith.constant 0 : index
    %c0_134 = arith.constant 0 : index
    %305 = vector.load %arg10[%c2_132, %c0_133, %c0_134] : memref<8x4x4xf32, #tpu.memory_space<vmem>>, vector<1x4x4xf32>
    %306 = vector.shape_cast %305 : vector<1x4x4xf32> to vector<4x4xf32>
    %307 = arith.subf %304, %306 : vector<4x4xf32>
    %308 = arith.mulf %307, %307 : vector<4x4xf32>
    %309 = arith.addf %266, %308 : vector<4x4xf32>
    %310 = vector.extract_strided_slice %281 {offsets = [3, 0, 0], sizes = [1, 4, 4], strides = [1, 1, 1]} : vector<4x4x4xf32> to vector<1x4x4xf32>
    %311 = vector.shape_cast %310 : vector<1x4x4xf32> to vector<4x4xf32>
    %c2_135 = arith.constant 2 : index
    %c0_136 = arith.constant 0 : index
    %c0_137 = arith.constant 0 : index
    %312 = vector.load %arg10[%c2_135, %c0_136, %c0_137] : memref<8x4x4xf32, #tpu.memory_space<vmem>>, vector<1x4x4xf32>
    %313 = vector.shape_cast %312 : vector<1x4x4xf32> to vector<4x4xf32>
    %314 = vector.shape_cast %311 : vector<4x4xf32> to vector<1x4x4xf32>
    tpu.vector_store %arg10[%c2_135, %c0_136, %c0_137], %314 {strides = array<i32>} : memref<8x4x4xf32, #tpu.memory_space<vmem>>, vector<1x4x4xf32>,
    %c67 = arith.constant 67 : index
    %315 = memref.load %arg4[%c67] : memref<94xf32, #tpu.memory_space<smem>>
    %316 = arith.mulf %315, %180 : f32
    %c75 = arith.constant 75 : index
    %317 = memref.load %arg4[%c75] : memref<94xf32, #tpu.memory_space<smem>>
    %318 = arith.mulf %317, %180 : f32
    %319 = arith.addf %318, %181 : f32
    %320 = vector.broadcast %316 : f32 to vector<4x4x4xf32>
    %321 = arith.mulf %179, %320 : vector<4x4x4xf32>
    %322 = vector.broadcast %319 : f32 to vector<4x4x4xf32>
    %323 = arith.addf %321, %322 : vector<4x4x4xf32>
    %324 = math.tanh %323 : vector<4x4x4xf32>
    %c0_138 = arith.constant 0 : index
    %c0_139 = arith.constant 0 : index
    %c3_140 = arith.constant 3 : index
    %c0_141 = arith.constant 0 : index
    %c0_142 = arith.constant 0 : index
    %325 = vector.load %arg5[%c0_138, %c0_139, %c3_140, %c0_141, %c0_142] : memref<1x4x8x4x4xf32, #tpu.memory_space<vmem>>, vector<1x4x1x4x4xf32>
    %326 = vector.shape_cast %325 : vector<1x4x1x4x4xf32> to vector<4x4x4xf32>
    %327 = vector.shape_cast %324 : vector<4x4x4xf32> to vector<1x4x1x4x4xf32>
    tpu.vector_store %arg5[%c0_138, %c0_139, %c3_140, %c0_141, %c0_142], %327 {strides = array<i32>} : memref<1x4x8x4x4xf32, #tpu.memory_space<vmem>>, vector<1x4x1x4x4xf32>,
    %cst_143 = arith.constant -3.80020118 : f32
    %cst_144 = arith.constant 3.80020118 : f32
    %328 = vector.broadcast %cst_143 : f32 to vector<4x4x4xf32>
    %329 = arith.maximumf %328, %323 : vector<4x4x4xf32>
    %330 = vector.broadcast %cst_144 : f32 to vector<4x4x4xf32>
    %331 = arith.minimumf %330, %329 : vector<4x4x4xf32>
    %332 = vector.broadcast %181 : f32 to vector<4x4x4xf32>
    %333 = arith.subf %331, %332 : vector<4x4x4xf32>
    %334 = vector.broadcast %182 : f32 to vector<4x4x4xf32>
    %335 = arith.mulf %333, %334 : vector<4x4x4xf32>
    %c83 = arith.constant 83 : index
    %336 = memref.load %arg4[%c83] : memref<94xf32, #tpu.memory_space<smem>>
    %337 = vector.broadcast %336 : f32 to vector<4x4x4xf32>
    %338 = arith.mulf %335, %337 : vector<4x4x4xf32>
    %339 = arith.addf %296, %338 : vector<4x4x4xf32>
    %340 = vector.extract_strided_slice %324 {offsets = [1, 0, 0], sizes = [3, 4, 4], strides = [1, 1, 1]} : vector<4x4x4xf32> to vector<3x4x4xf32>
    %341 = vector.extract_strided_slice %324 {offsets = [0, 0, 0], sizes = [3, 4, 4], strides = [1, 1, 1]} : vector<4x4x4xf32> to vector<3x4x4xf32>
    %342 = arith.subf %340, %341 : vector<3x4x4xf32>
    %343 = arith.mulf %342, %342 : vector<3x4x4xf32>
    %cst_145 = arith.constant dense<0.000000e+00> : vector<4x4xf32>
    %344 = vector.multi_reduction <add>, %343, %cst_145 [0] : vector<3x4x4xf32> to vector<4x4xf32>
    %345 = arith.addf %302, %344 : vector<4x4xf32>
    %346 = vector.extract_strided_slice %324 {offsets = [0, 0, 0], sizes = [1, 4, 4], strides = [1, 1, 1]} : vector<4x4x4xf32> to vector<1x4x4xf32>
    %347 = vector.shape_cast %346 : vector<1x4x4xf32> to vector<4x4xf32>
    %c3_146 = arith.constant 3 : index
    %c0_147 = arith.constant 0 : index
    %c0_148 = arith.constant 0 : index
    %348 = vector.load %arg10[%c3_146, %c0_147, %c0_148] : memref<8x4x4xf32, #tpu.memory_space<vmem>>, vector<1x4x4xf32>
    %349 = vector.shape_cast %348 : vector<1x4x4xf32> to vector<4x4xf32>
    %350 = arith.subf %347, %349 : vector<4x4xf32>
    %351 = arith.mulf %350, %350 : vector<4x4xf32>
    %352 = arith.addf %309, %351 : vector<4x4xf32>
    %353 = vector.extract_strided_slice %324 {offsets = [3, 0, 0], sizes = [1, 4, 4], strides = [1, 1, 1]} : vector<4x4x4xf32> to vector<1x4x4xf32>
    %354 = vector.shape_cast %353 : vector<1x4x4xf32> to vector<4x4xf32>
    %c3_149 = arith.constant 3 : index
    %c0_150 = arith.constant 0 : index
    %c0_151 = arith.constant 0 : index
    %355 = vector.load %arg10[%c3_149, %c0_150, %c0_151] : memref<8x4x4xf32, #tpu.memory_space<vmem>>, vector<1x4x4xf32>
    %356 = vector.shape_cast %355 : vector<1x4x4xf32> to vector<4x4xf32>
    %357 = vector.shape_cast %354 : vector<4x4xf32> to vector<1x4x4xf32>
    tpu.vector_store %arg10[%c3_149, %c0_150, %c0_151], %357 {strides = array<i32>} : memref<8x4x4xf32, #tpu.memory_space<vmem>>, vector<1x4x4xf32>,
    %c68 = arith.constant 68 : index
    %358 = memref.load %arg4[%c68] : memref<94xf32, #tpu.memory_space<smem>>
    %359 = arith.mulf %358, %180 : f32
    %c76 = arith.constant 76 : index
    %360 = memref.load %arg4[%c76] : memref<94xf32, #tpu.memory_space<smem>>
    %361 = arith.mulf %360, %180 : f32
    %362 = arith.addf %361, %181 : f32
    %363 = vector.broadcast %359 : f32 to vector<4x4x4xf32>
    %364 = arith.mulf %179, %363 : vector<4x4x4xf32>
    %365 = vector.broadcast %362 : f32 to vector<4x4x4xf32>
    %366 = arith.addf %364, %365 : vector<4x4x4xf32>
    %367 = math.tanh %366 : vector<4x4x4xf32>
    %c0_152 = arith.constant 0 : index
    %c0_153 = arith.constant 0 : index
    %c4_154 = arith.constant 4 : index
    %c0_155 = arith.constant 0 : index
    %c0_156 = arith.constant 0 : index
    %368 = vector.load %arg5[%c0_152, %c0_153, %c4_154, %c0_155, %c0_156] : memref<1x4x8x4x4xf32, #tpu.memory_space<vmem>>, vector<1x4x1x4x4xf32>
    %369 = vector.shape_cast %368 : vector<1x4x1x4x4xf32> to vector<4x4x4xf32>
    %370 = vector.shape_cast %367 : vector<4x4x4xf32> to vector<1x4x1x4x4xf32>
    tpu.vector_store %arg5[%c0_152, %c0_153, %c4_154, %c0_155, %c0_156], %370 {strides = array<i32>} : memref<1x4x8x4x4xf32, #tpu.memory_space<vmem>>, vector<1x4x1x4x4xf32>,
    %cst_157 = arith.constant -3.80020118 : f32
    %cst_158 = arith.constant 3.80020118 : f32
    %371 = vector.broadcast %cst_157 : f32 to vector<4x4x4xf32>
    %372 = arith.maximumf %371, %366 : vector<4x4x4xf32>
    %373 = vector.broadcast %cst_158 : f32 to vector<4x4x4xf32>
    %374 = arith.minimumf %373, %372 : vector<4x4x4xf32>
    %375 = vector.broadcast %181 : f32 to vector<4x4x4xf32>
    %376 = arith.subf %374, %375 : vector<4x4x4xf32>
    %377 = vector.broadcast %182 : f32 to vector<4x4x4xf32>
    %378 = arith.mulf %376, %377 : vector<4x4x4xf32>
    %c84 = arith.constant 84 : index
    %379 = memref.load %arg4[%c84] : memref<94xf32, #tpu.memory_space<smem>>
    %380 = vector.broadcast %379 : f32 to vector<4x4x4xf32>
    %381 = arith.mulf %378, %380 : vector<4x4x4xf32>
    %382 = arith.addf %339, %381 : vector<4x4x4xf32>
    %383 = vector.extract_strided_slice %367 {offsets = [1, 0, 0], sizes = [3, 4, 4], strides = [1, 1, 1]} : vector<4x4x4xf32> to vector<3x4x4xf32>
    %384 = vector.extract_strided_slice %367 {offsets = [0, 0, 0], sizes = [3, 4, 4], strides = [1, 1, 1]} : vector<4x4x4xf32> to vector<3x4x4xf32>
    %385 = arith.subf %383, %384 : vector<3x4x4xf32>
    %386 = arith.mulf %385, %385 : vector<3x4x4xf32>
    %cst_159 = arith.constant dense<0.000000e+00> : vector<4x4xf32>
    %387 = vector.multi_reduction <add>, %386, %cst_159 [0] : vector<3x4x4xf32> to vector<4x4xf32>
    %388 = arith.addf %345, %387 : vector<4x4xf32>
    %389 = vector.extract_strided_slice %367 {offsets = [0, 0, 0], sizes = [1, 4, 4], strides = [1, 1, 1]} : vector<4x4x4xf32> to vector<1x4x4xf32>
    %390 = vector.shape_cast %389 : vector<1x4x4xf32> to vector<4x4xf32>
    %c4_160 = arith.constant 4 : index
    %c0_161 = arith.constant 0 : index
    %c0_162 = arith.constant 0 : index
    %391 = vector.load %arg10[%c4_160, %c0_161, %c0_162] : memref<8x4x4xf32, #tpu.memory_space<vmem>>, vector<1x4x4xf32>
    %392 = vector.shape_cast %391 : vector<1x4x4xf32> to vector<4x4xf32>
    %393 = arith.subf %390, %392 : vector<4x4xf32>
    %394 = arith.mulf %393, %393 : vector<4x4xf32>
    %395 = arith.addf %352, %394 : vector<4x4xf32>
    %396 = vector.extract_strided_slice %367 {offsets = [3, 0, 0], sizes = [1, 4, 4], strides = [1, 1, 1]} : vector<4x4x4xf32> to vector<1x4x4xf32>
    %397 = vector.shape_cast %396 : vector<1x4x4xf32> to vector<4x4xf32>
    %c4_163 = arith.constant 4 : index
    %c0_164 = arith.constant 0 : index
    %c0_165 = arith.constant 0 : index
    %398 = vector.load %arg10[%c4_163, %c0_164, %c0_165] : memref<8x4x4xf32, #tpu.memory_space<vmem>>, vector<1x4x4xf32>
    %399 = vector.shape_cast %398 : vector<1x4x4xf32> to vector<4x4xf32>
    %400 = vector.shape_cast %397 : vector<4x4xf32> to vector<1x4x4xf32>
    tpu.vector_store %arg10[%c4_163, %c0_164, %c0_165], %400 {strides = array<i32>} : memref<8x4x4xf32, #tpu.memory_space<vmem>>, vector<1x4x4xf32>,
    %c69 = arith.constant 69 : index
    %401 = memref.load %arg4[%c69] : memref<94xf32, #tpu.memory_space<smem>>
    %402 = arith.mulf %401, %180 : f32
    %c77 = arith.constant 77 : index
    %403 = memref.load %arg4[%c77] : memref<94xf32, #tpu.memory_space<smem>>
    %404 = arith.mulf %403, %180 : f32
    %405 = arith.addf %404, %181 : f32
    %406 = vector.broadcast %402 : f32 to vector<4x4x4xf32>
    %407 = arith.mulf %179, %406 : vector<4x4x4xf32>
    %408 = vector.broadcast %405 : f32 to vector<4x4x4xf32>
    %409 = arith.addf %407, %408 : vector<4x4x4xf32>
    %410 = math.tanh %409 : vector<4x4x4xf32>
    %c0_166 = arith.constant 0 : index
    %c0_167 = arith.constant 0 : index
    %c5_168 = arith.constant 5 : index
    %c0_169 = arith.constant 0 : index
    %c0_170 = arith.constant 0 : index
    %411 = vector.load %arg5[%c0_166, %c0_167, %c5_168, %c0_169, %c0_170] : memref<1x4x8x4x4xf32, #tpu.memory_space<vmem>>, vector<1x4x1x4x4xf32>
    %412 = vector.shape_cast %411 : vector<1x4x1x4x4xf32> to vector<4x4x4xf32>
    %413 = vector.shape_cast %410 : vector<4x4x4xf32> to vector<1x4x1x4x4xf32>
    tpu.vector_store %arg5[%c0_166, %c0_167, %c5_168, %c0_169, %c0_170], %413 {strides = array<i32>} : memref<1x4x8x4x4xf32, #tpu.memory_space<vmem>>, vector<1x4x1x4x4xf32>,
    %cst_171 = arith.constant -3.80020118 : f32
    %cst_172 = arith.constant 3.80020118 : f32
    %414 = vector.broadcast %cst_171 : f32 to vector<4x4x4xf32>
    %415 = arith.maximumf %414, %409 : vector<4x4x4xf32>
    %416 = vector.broadcast %cst_172 : f32 to vector<4x4x4xf32>
    %417 = arith.minimumf %416, %415 : vector<4x4x4xf32>
    %418 = vector.broadcast %181 : f32 to vector<4x4x4xf32>
    %419 = arith.subf %417, %418 : vector<4x4x4xf32>
    %420 = vector.broadcast %182 : f32 to vector<4x4x4xf32>
    %421 = arith.mulf %419, %420 : vector<4x4x4xf32>
    %c85 = arith.constant 85 : index
    %422 = memref.load %arg4[%c85] : memref<94xf32, #tpu.memory_space<smem>>
    %423 = vector.broadcast %422 : f32 to vector<4x4x4xf32>
    %424 = arith.mulf %421, %423 : vector<4x4x4xf32>
    %425 = arith.addf %382, %424 : vector<4x4x4xf32>
    %426 = vector.extract_strided_slice %410 {offsets = [1, 0, 0], sizes = [3, 4, 4], strides = [1, 1, 1]} : vector<4x4x4xf32> to vector<3x4x4xf32>
    %427 = vector.extract_strided_slice %410 {offsets = [0, 0, 0], sizes = [3, 4, 4], strides = [1, 1, 1]} : vector<4x4x4xf32> to vector<3x4x4xf32>
    %428 = arith.subf %426, %427 : vector<3x4x4xf32>
    %429 = arith.mulf %428, %428 : vector<3x4x4xf32>
    %cst_173 = arith.constant dense<0.000000e+00> : vector<4x4xf32>
    %430 = vector.multi_reduction <add>, %429, %cst_173 [0] : vector<3x4x4xf32> to vector<4x4xf32>
    %431 = arith.addf %388, %430 : vector<4x4xf32>
    %432 = vector.extract_strided_slice %410 {offsets = [0, 0, 0], sizes = [1, 4, 4], strides = [1, 1, 1]} : vector<4x4x4xf32> to vector<1x4x4xf32>
    %433 = vector.shape_cast %432 : vector<1x4x4xf32> to vector<4x4xf32>
    %c5_174 = arith.constant 5 : index
    %c0_175 = arith.constant 0 : index
    %c0_176 = arith.constant 0 : index
    %434 = vector.load %arg10[%c5_174, %c0_175, %c0_176] : memref<8x4x4xf32, #tpu.memory_space<vmem>>, vector<1x4x4xf32>
    %435 = vector.shape_cast %434 : vector<1x4x4xf32> to vector<4x4xf32>
    %436 = arith.subf %433, %435 : vector<4x4xf32>
    %437 = arith.mulf %436, %436 : vector<4x4xf32>
    %438 = arith.addf %395, %437 : vector<4x4xf32>
    %439 = vector.extract_strided_slice %410 {offsets = [3, 0, 0], sizes = [1, 4, 4], strides = [1, 1, 1]} : vector<4x4x4xf32> to vector<1x4x4xf32>
    %440 = vector.shape_cast %439 : vector<1x4x4xf32> to vector<4x4xf32>
    %c5_177 = arith.constant 5 : index
    %c0_178 = arith.constant 0 : index
    %c0_179 = arith.constant 0 : index
    %441 = vector.load %arg10[%c5_177, %c0_178, %c0_179] : memref<8x4x4xf32, #tpu.memory_space<vmem>>, vector<1x4x4xf32>
    %442 = vector.shape_cast %441 : vector<1x4x4xf32> to vector<4x4xf32>
    %443 = vector.shape_cast %440 : vector<4x4xf32> to vector<1x4x4xf32>
    tpu.vector_store %arg10[%c5_177, %c0_178, %c0_179], %443 {strides = array<i32>} : memref<8x4x4xf32, #tpu.memory_space<vmem>>, vector<1x4x4xf32>,
    %c70 = arith.constant 70 : index
    %444 = memref.load %arg4[%c70] : memref<94xf32, #tpu.memory_space<smem>>
    %445 = arith.mulf %444, %180 : f32
    %c78 = arith.constant 78 : index
    %446 = memref.load %arg4[%c78] : memref<94xf32, #tpu.memory_space<smem>>
    %447 = arith.mulf %446, %180 : f32
    %448 = arith.addf %447, %181 : f32
    %449 = vector.broadcast %445 : f32 to vector<4x4x4xf32>
    %450 = arith.mulf %179, %449 : vector<4x4x4xf32>
    %451 = vector.broadcast %448 : f32 to vector<4x4x4xf32>
    %452 = arith.addf %450, %451 : vector<4x4x4xf32>
    %453 = math.tanh %452 : vector<4x4x4xf32>
    %c0_180 = arith.constant 0 : index
    %c0_181 = arith.constant 0 : index
    %c6_182 = arith.constant 6 : index
    %c0_183 = arith.constant 0 : index
    %c0_184 = arith.constant 0 : index
    %454 = vector.load %arg5[%c0_180, %c0_181, %c6_182, %c0_183, %c0_184] : memref<1x4x8x4x4xf32, #tpu.memory_space<vmem>>, vector<1x4x1x4x4xf32>
    %455 = vector.shape_cast %454 : vector<1x4x1x4x4xf32> to vector<4x4x4xf32>
    %456 = vector.shape_cast %453 : vector<4x4x4xf32> to vector<1x4x1x4x4xf32>
    tpu.vector_store %arg5[%c0_180, %c0_181, %c6_182, %c0_183, %c0_184], %456 {strides = array<i32>} : memref<1x4x8x4x4xf32, #tpu.memory_space<vmem>>, vector<1x4x1x4x4xf32>,
    %cst_185 = arith.constant -3.80020118 : f32
    %cst_186 = arith.constant 3.80020118 : f32
    %457 = vector.broadcast %cst_185 : f32 to vector<4x4x4xf32>
    %458 = arith.maximumf %457, %452 : vector<4x4x4xf32>
    %459 = vector.broadcast %cst_186 : f32 to vector<4x4x4xf32>
    %460 = arith.minimumf %459, %458 : vector<4x4x4xf32>
    %461 = vector.broadcast %181 : f32 to vector<4x4x4xf32>
    %462 = arith.subf %460, %461 : vector<4x4x4xf32>
    %463 = vector.broadcast %182 : f32 to vector<4x4x4xf32>
    %464 = arith.mulf %462, %463 : vector<4x4x4xf32>
    %c86 = arith.constant 86 : index
    %465 = memref.load %arg4[%c86] : memref<94xf32, #tpu.memory_space<smem>>
    %466 = vector.broadcast %465 : f32 to vector<4x4x4xf32>
    %467 = arith.mulf %464, %466 : vector<4x4x4xf32>
    %468 = arith.addf %425, %467 : vector<4x4x4xf32>
    %469 = vector.extract_strided_slice %453 {offsets = [1, 0, 0], sizes = [3, 4, 4], strides = [1, 1, 1]} : vector<4x4x4xf32> to vector<3x4x4xf32>
    %470 = vector.extract_strided_slice %453 {offsets = [0, 0, 0], sizes = [3, 4, 4], strides = [1, 1, 1]} : vector<4x4x4xf32> to vector<3x4x4xf32>
    %471 = arith.subf %469, %470 : vector<3x4x4xf32>
    %472 = arith.mulf %471, %471 : vector<3x4x4xf32>
    %cst_187 = arith.constant dense<0.000000e+00> : vector<4x4xf32>
    %473 = vector.multi_reduction <add>, %472, %cst_187 [0] : vector<3x4x4xf32> to vector<4x4xf32>
    %474 = arith.addf %431, %473 : vector<4x4xf32>
    %475 = vector.extract_strided_slice %453 {offsets = [0, 0, 0], sizes = [1, 4, 4], strides = [1, 1, 1]} : vector<4x4x4xf32> to vector<1x4x4xf32>
    %476 = vector.shape_cast %475 : vector<1x4x4xf32> to vector<4x4xf32>
    %c6_188 = arith.constant 6 : index
    %c0_189 = arith.constant 0 : index
    %c0_190 = arith.constant 0 : index
    %477 = vector.load %arg10[%c6_188, %c0_189, %c0_190] : memref<8x4x4xf32, #tpu.memory_space<vmem>>, vector<1x4x4xf32>
    %478 = vector.shape_cast %477 : vector<1x4x4xf32> to vector<4x4xf32>
    %479 = arith.subf %476, %478 : vector<4x4xf32>
    %480 = arith.mulf %479, %479 : vector<4x4xf32>
    %481 = arith.addf %438, %480 : vector<4x4xf32>
    %482 = vector.extract_strided_slice %453 {offsets = [3, 0, 0], sizes = [1, 4, 4], strides = [1, 1, 1]} : vector<4x4x4xf32> to vector<1x4x4xf32>
    %483 = vector.shape_cast %482 : vector<1x4x4xf32> to vector<4x4xf32>
    %c6_191 = arith.constant 6 : index
    %c0_192 = arith.constant 0 : index
    %c0_193 = arith.constant 0 : index
    %484 = vector.load %arg10[%c6_191, %c0_192, %c0_193] : memref<8x4x4xf32, #tpu.memory_space<vmem>>, vector<1x4x4xf32>
    %485 = vector.shape_cast %484 : vector<1x4x4xf32> to vector<4x4xf32>
    %486 = vector.shape_cast %483 : vector<4x4xf32> to vector<1x4x4xf32>
    tpu.vector_store %arg10[%c6_191, %c0_192, %c0_193], %486 {strides = array<i32>} : memref<8x4x4xf32, #tpu.memory_space<vmem>>, vector<1x4x4xf32>,
    %c71 = arith.constant 71 : index
    %487 = memref.load %arg4[%c71] : memref<94xf32, #tpu.memory_space<smem>>
    %488 = arith.mulf %487, %180 : f32
    %c79 = arith.constant 79 : index
    %489 = memref.load %arg4[%c79] : memref<94xf32, #tpu.memory_space<smem>>
    %490 = arith.mulf %489, %180 : f32
    %491 = arith.addf %490, %181 : f32
    %492 = vector.broadcast %488 : f32 to vector<4x4x4xf32>
    %493 = arith.mulf %179, %492 : vector<4x4x4xf32>
    %494 = vector.broadcast %491 : f32 to vector<4x4x4xf32>
    %495 = arith.addf %493, %494 : vector<4x4x4xf32>
    %496 = math.tanh %495 : vector<4x4x4xf32>
    %c0_194 = arith.constant 0 : index
    %c0_195 = arith.constant 0 : index
    %c7_196 = arith.constant 7 : index
    %c0_197 = arith.constant 0 : index
    %c0_198 = arith.constant 0 : index
    %497 = vector.load %arg5[%c0_194, %c0_195, %c7_196, %c0_197, %c0_198] : memref<1x4x8x4x4xf32, #tpu.memory_space<vmem>>, vector<1x4x1x4x4xf32>
    %498 = vector.shape_cast %497 : vector<1x4x1x4x4xf32> to vector<4x4x4xf32>
    %499 = vector.shape_cast %496 : vector<4x4x4xf32> to vector<1x4x1x4x4xf32>
    tpu.vector_store %arg5[%c0_194, %c0_195, %c7_196, %c0_197, %c0_198], %499 {strides = array<i32>} : memref<1x4x8x4x4xf32, #tpu.memory_space<vmem>>, vector<1x4x1x4x4xf32>,
    %cst_199 = arith.constant -3.80020118 : f32
    %cst_200 = arith.constant 3.80020118 : f32
    %500 = vector.broadcast %cst_199 : f32 to vector<4x4x4xf32>
    %501 = arith.maximumf %500, %495 : vector<4x4x4xf32>
    %502 = vector.broadcast %cst_200 : f32 to vector<4x4x4xf32>
    %503 = arith.minimumf %502, %501 : vector<4x4x4xf32>
    %504 = vector.broadcast %181 : f32 to vector<4x4x4xf32>
    %505 = arith.subf %503, %504 : vector<4x4x4xf32>
    %506 = vector.broadcast %182 : f32 to vector<4x4x4xf32>
    %507 = arith.mulf %505, %506 : vector<4x4x4xf32>
    %c87 = arith.constant 87 : index
    %508 = memref.load %arg4[%c87] : memref<94xf32, #tpu.memory_space<smem>>
    %509 = vector.broadcast %508 : f32 to vector<4x4x4xf32>
    %510 = arith.mulf %507, %509 : vector<4x4x4xf32>
    %511 = arith.addf %468, %510 : vector<4x4x4xf32>
    %512 = vector.extract_strided_slice %496 {offsets = [1, 0, 0], sizes = [3, 4, 4], strides = [1, 1, 1]} : vector<4x4x4xf32> to vector<3x4x4xf32>
    %513 = vector.extract_strided_slice %496 {offsets = [0, 0, 0], sizes = [3, 4, 4], strides = [1, 1, 1]} : vector<4x4x4xf32> to vector<3x4x4xf32>
    %514 = arith.subf %512, %513 : vector<3x4x4xf32>
    %515 = arith.mulf %514, %514 : vector<3x4x4xf32>
    %cst_201 = arith.constant dense<0.000000e+00> : vector<4x4xf32>
    %516 = vector.multi_reduction <add>, %515, %cst_201 [0] : vector<3x4x4xf32> to vector<4x4xf32>
    %517 = arith.addf %474, %516 : vector<4x4xf32>
    %518 = vector.extract_strided_slice %496 {offsets = [0, 0, 0], sizes = [1, 4, 4], strides = [1, 1, 1]} : vector<4x4x4xf32> to vector<1x4x4xf32>
    %519 = vector.shape_cast %518 : vector<1x4x4xf32> to vector<4x4xf32>
    %c7_202 = arith.constant 7 : index
    %c0_203 = arith.constant 0 : index
    %c0_204 = arith.constant 0 : index
    %520 = vector.load %arg10[%c7_202, %c0_203, %c0_204] : memref<8x4x4xf32, #tpu.memory_space<vmem>>, vector<1x4x4xf32>
    %521 = vector.shape_cast %520 : vector<1x4x4xf32> to vector<4x4xf32>
    %522 = arith.subf %519, %521 : vector<4x4xf32>
    %523 = arith.mulf %522, %522 : vector<4x4xf32>
    %524 = arith.addf %481, %523 : vector<4x4xf32>
    %525 = vector.extract_strided_slice %496 {offsets = [3, 0, 0], sizes = [1, 4, 4], strides = [1, 1, 1]} : vector<4x4x4xf32> to vector<1x4x4xf32>
    %526 = vector.shape_cast %525 : vector<1x4x4xf32> to vector<4x4xf32>
    %c7_205 = arith.constant 7 : index
    %c0_206 = arith.constant 0 : index
    %c0_207 = arith.constant 0 : index
    %527 = vector.load %arg10[%c7_205, %c0_206, %c0_207] : memref<8x4x4xf32, #tpu.memory_space<vmem>>, vector<1x4x4xf32>
    %528 = vector.shape_cast %527 : vector<1x4x4xf32> to vector<4x4xf32>
    %529 = vector.shape_cast %526 : vector<4x4xf32> to vector<1x4x4xf32>
    tpu.vector_store %arg10[%c7_205, %c0_206, %c0_207], %529 {strides = array<i32>} : memref<8x4x4xf32, #tpu.memory_space<vmem>>, vector<1x4x4xf32>,
    %c90 = arith.constant 90 : index
    %530 = memref.load %arg4[%c90] : memref<94xf32, #tpu.memory_space<smem>>
    %531 = vector.broadcast %530 : f32 to vector<4x4x4xf32>
    %532 = arith.addf %511, %531 : vector<4x4x4xf32>
    %cst_208 = arith.constant 0.000000e+00 : f32
    %533 = vector.broadcast %cst_208 : f32 to vector<4x4xf32>
    %c32 = arith.constant 32 : index
    %534 = memref.load %arg4[%c32] : memref<94xf32, #tpu.memory_space<smem>>
    %535 = vector.broadcast %534 : f32 to vector<4x4x4xf32>
    %536 = arith.mulf %532, %535 : vector<4x4x4xf32>
    %c48 = arith.constant 48 : index
    %537 = memref.load %arg4[%c48] : memref<94xf32, #tpu.memory_space<smem>>
    %538 = vector.broadcast %537 : f32 to vector<4x4x4xf32>
    %539 = arith.addf %536, %538 : vector<4x4x4xf32>
    %c0_209 = arith.constant 0 : index
    %c0_210 = arith.constant 0 : index
    %c0_211 = arith.constant 0 : index
    %c0_212 = arith.constant 0 : index
    %c0_213 = arith.constant 0 : index
    %540 = vector.load %arg8[%c0_209, %c0_210, %c0_211, %c0_212, %c0_213] : memref<1x4x16x4x4xf32, #tpu.memory_space<vmem>>, vector<1x4x1x4x4xf32>
    %541 = vector.shape_cast %540 : vector<1x4x1x4x4xf32> to vector<4x4x4xf32>
    %542 = vector.shape_cast %539 : vector<4x4x4xf32> to vector<1x4x1x4x4xf32>
    tpu.vector_store %arg8[%c0_209, %c0_210, %c0_211, %c0_212, %c0_213], %542 {strides = array<i32>} : memref<1x4x16x4x4xf32, #tpu.memory_space<vmem>>, vector<1x4x1x4x4xf32>,
    %c0_214 = arith.constant 0 : index
    %c0_215 = arith.constant 0 : index
    %c0_216 = arith.constant 0 : index
    %c0_217 = arith.constant 0 : index
    %c0_218 = arith.constant 0 : index
    %543 = vector.load %arg2[%c0_214, %c0_215, %c0_216, %c0_217, %c0_218] : memref<1x4x16x4x4xf32, #tpu.memory_space<vmem>>, vector<1x4x1x4x4xf32>
    %544 = vector.shape_cast %543 : vector<1x4x1x4x4xf32> to vector<4x4x4xf32>
    %545 = arith.subf %539, %544 : vector<4x4x4xf32>
    %546 = arith.mulf %545, %545 : vector<4x4x4xf32>
    %cst_219 = arith.constant dense<0.000000e+00> : vector<4x4xf32>
    %547 = vector.multi_reduction <add>, %546, %cst_219 [0] : vector<4x4x4xf32> to vector<4x4xf32>
    %548 = arith.addf %533, %547 : vector<4x4xf32>
    %c33 = arith.constant 33 : index
    %549 = memref.load %arg4[%c33] : memref<94xf32, #tpu.memory_space<smem>>
    %550 = vector.broadcast %549 : f32 to vector<4x4x4xf32>
    %551 = arith.mulf %532, %550 : vector<4x4x4xf32>
    %c49 = arith.constant 49 : index
    %552 = memref.load %arg4[%c49] : memref<94xf32, #tpu.memory_space<smem>>
    %553 = vector.broadcast %552 : f32 to vector<4x4x4xf32>
    %554 = arith.addf %551, %553 : vector<4x4x4xf32>
    %c0_220 = arith.constant 0 : index
    %c0_221 = arith.constant 0 : index
    %c1_222 = arith.constant 1 : index
    %c0_223 = arith.constant 0 : index
    %c0_224 = arith.constant 0 : index
    %555 = vector.load %arg8[%c0_220, %c0_221, %c1_222, %c0_223, %c0_224] : memref<1x4x16x4x4xf32, #tpu.memory_space<vmem>>, vector<1x4x1x4x4xf32>
    %556 = vector.shape_cast %555 : vector<1x4x1x4x4xf32> to vector<4x4x4xf32>
    %557 = vector.shape_cast %554 : vector<4x4x4xf32> to vector<1x4x1x4x4xf32>
    tpu.vector_store %arg8[%c0_220, %c0_221, %c1_222, %c0_223, %c0_224], %557 {strides = array<i32>} : memref<1x4x16x4x4xf32, #tpu.memory_space<vmem>>, vector<1x4x1x4x4xf32>,
    %c0_225 = arith.constant 0 : index
    %c0_226 = arith.constant 0 : index
    %c1_227 = arith.constant 1 : index
    %c0_228 = arith.constant 0 : index
    %c0_229 = arith.constant 0 : index
    %558 = vector.load %arg2[%c0_225, %c0_226, %c1_227, %c0_228, %c0_229] : memref<1x4x16x4x4xf32, #tpu.memory_space<vmem>>, vector<1x4x1x4x4xf32>
    %559 = vector.shape_cast %558 : vector<1x4x1x4x4xf32> to vector<4x4x4xf32>
    %560 = arith.subf %554, %559 : vector<4x4x4xf32>
    %561 = arith.mulf %560, %560 : vector<4x4x4xf32>
    %cst_230 = arith.constant dense<0.000000e+00> : vector<4x4xf32>
    %562 = vector.multi_reduction <add>, %561, %cst_230 [0] : vector<4x4x4xf32> to vector<4x4xf32>
    %563 = arith.addf %548, %562 : vector<4x4xf32>
    %c34 = arith.constant 34 : index
    %564 = memref.load %arg4[%c34] : memref<94xf32, #tpu.memory_space<smem>>
    %565 = vector.broadcast %564 : f32 to vector<4x4x4xf32>
    %566 = arith.mulf %532, %565 : vector<4x4x4xf32>
    %c50 = arith.constant 50 : index
    %567 = memref.load %arg4[%c50] : memref<94xf32, #tpu.memory_space<smem>>
    %568 = vector.broadcast %567 : f32 to vector<4x4x4xf32>
    %569 = arith.addf %566, %568 : vector<4x4x4xf32>
    %c0_231 = arith.constant 0 : index
    %c0_232 = arith.constant 0 : index
    %c2_233 = arith.constant 2 : index
    %c0_234 = arith.constant 0 : index
    %c0_235 = arith.constant 0 : index
    %570 = vector.load %arg8[%c0_231, %c0_232, %c2_233, %c0_234, %c0_235] : memref<1x4x16x4x4xf32, #tpu.memory_space<vmem>>, vector<1x4x1x4x4xf32>
    %571 = vector.shape_cast %570 : vector<1x4x1x4x4xf32> to vector<4x4x4xf32>
    %572 = vector.shape_cast %569 : vector<4x4x4xf32> to vector<1x4x1x4x4xf32>
    tpu.vector_store %arg8[%c0_231, %c0_232, %c2_233, %c0_234, %c0_235], %572 {strides = array<i32>} : memref<1x4x16x4x4xf32, #tpu.memory_space<vmem>>, vector<1x4x1x4x4xf32>,
    %c0_236 = arith.constant 0 : index
    %c0_237 = arith.constant 0 : index
    %c2_238 = arith.constant 2 : index
    %c0_239 = arith.constant 0 : index
    %c0_240 = arith.constant 0 : index
    %573 = vector.load %arg2[%c0_236, %c0_237, %c2_238, %c0_239, %c0_240] : memref<1x4x16x4x4xf32, #tpu.memory_space<vmem>>, vector<1x4x1x4x4xf32>
    %574 = vector.shape_cast %573 : vector<1x4x1x4x4xf32> to vector<4x4x4xf32>
    %575 = arith.subf %569, %574 : vector<4x4x4xf32>
    %576 = arith.mulf %575, %575 : vector<4x4x4xf32>
    %cst_241 = arith.constant dense<0.000000e+00> : vector<4x4xf32>
    %577 = vector.multi_reduction <add>, %576, %cst_241 [0] : vector<4x4x4xf32> to vector<4x4xf32>
    %578 = arith.addf %563, %577 : vector<4x4xf32>
    %c35 = arith.constant 35 : index
    %579 = memref.load %arg4[%c35] : memref<94xf32, #tpu.memory_space<smem>>
    %580 = vector.broadcast %579 : f32 to vector<4x4x4xf32>
    %581 = arith.mulf %532, %580 : vector<4x4x4xf32>
    %c51 = arith.constant 51 : index
    %582 = memref.load %arg4[%c51] : memref<94xf32, #tpu.memory_space<smem>>
    %583 = vector.broadcast %582 : f32 to vector<4x4x4xf32>
    %584 = arith.addf %581, %583 : vector<4x4x4xf32>
    %c0_242 = arith.constant 0 : index
    %c0_243 = arith.constant 0 : index
    %c3_244 = arith.constant 3 : index
    %c0_245 = arith.constant 0 : index
    %c0_246 = arith.constant 0 : index
    %585 = vector.load %arg8[%c0_242, %c0_243, %c3_244, %c0_245, %c0_246] : memref<1x4x16x4x4xf32, #tpu.memory_space<vmem>>, vector<1x4x1x4x4xf32>
    %586 = vector.shape_cast %585 : vector<1x4x1x4x4xf32> to vector<4x4x4xf32>
    %587 = vector.shape_cast %584 : vector<4x4x4xf32> to vector<1x4x1x4x4xf32>
    tpu.vector_store %arg8[%c0_242, %c0_243, %c3_244, %c0_245, %c0_246], %587 {strides = array<i32>} : memref<1x4x16x4x4xf32, #tpu.memory_space<vmem>>, vector<1x4x1x4x4xf32>,
    %c0_247 = arith.constant 0 : index
    %c0_248 = arith.constant 0 : index
    %c3_249 = arith.constant 3 : index
    %c0_250 = arith.constant 0 : index
    %c0_251 = arith.constant 0 : index
    %588 = vector.load %arg2[%c0_247, %c0_248, %c3_249, %c0_250, %c0_251] : memref<1x4x16x4x4xf32, #tpu.memory_space<vmem>>, vector<1x4x1x4x4xf32>
    %589 = vector.shape_cast %588 : vector<1x4x1x4x4xf32> to vector<4x4x4xf32>
    %590 = arith.subf %584, %589 : vector<4x4x4xf32>
    %591 = arith.mulf %590, %590 : vector<4x4x4xf32>
    %cst_252 = arith.constant dense<0.000000e+00> : vector<4x4xf32>
    %592 = vector.multi_reduction <add>, %591, %cst_252 [0] : vector<4x4x4xf32> to vector<4x4xf32>
    %593 = arith.addf %578, %592 : vector<4x4xf32>
    %c36 = arith.constant 36 : index
    %594 = memref.load %arg4[%c36] : memref<94xf32, #tpu.memory_space<smem>>
    %595 = vector.broadcast %594 : f32 to vector<4x4x4xf32>
    %596 = arith.mulf %532, %595 : vector<4x4x4xf32>
    %c52 = arith.constant 52 : index
    %597 = memref.load %arg4[%c52] : memref<94xf32, #tpu.memory_space<smem>>
    %598 = vector.broadcast %597 : f32 to vector<4x4x4xf32>
    %599 = arith.addf %596, %598 : vector<4x4x4xf32>
    %c0_253 = arith.constant 0 : index
    %c0_254 = arith.constant 0 : index
    %c4_255 = arith.constant 4 : index
    %c0_256 = arith.constant 0 : index
    %c0_257 = arith.constant 0 : index
    %600 = vector.load %arg8[%c0_253, %c0_254, %c4_255, %c0_256, %c0_257] : memref<1x4x16x4x4xf32, #tpu.memory_space<vmem>>, vector<1x4x1x4x4xf32>
    %601 = vector.shape_cast %600 : vector<1x4x1x4x4xf32> to vector<4x4x4xf32>
    %602 = vector.shape_cast %599 : vector<4x4x4xf32> to vector<1x4x1x4x4xf32>
    tpu.vector_store %arg8[%c0_253, %c0_254, %c4_255, %c0_256, %c0_257], %602 {strides = array<i32>} : memref<1x4x16x4x4xf32, #tpu.memory_space<vmem>>, vector<1x4x1x4x4xf32>,
    %c0_258 = arith.constant 0 : index
    %c0_259 = arith.constant 0 : index
    %c4_260 = arith.constant 4 : index
    %c0_261 = arith.constant 0 : index
    %c0_262 = arith.constant 0 : index
    %603 = vector.load %arg2[%c0_258, %c0_259, %c4_260, %c0_261, %c0_262] : memref<1x4x16x4x4xf32, #tpu.memory_space<vmem>>, vector<1x4x1x4x4xf32>
    %604 = vector.shape_cast %603 : vector<1x4x1x4x4xf32> to vector<4x4x4xf32>
    %605 = arith.subf %599, %604 : vector<4x4x4xf32>
    %606 = arith.mulf %605, %605 : vector<4x4x4xf32>
    %cst_263 = arith.constant dense<0.000000e+00> : vector<4x4xf32>
    %607 = vector.multi_reduction <add>, %606, %cst_263 [0] : vector<4x4x4xf32> to vector<4x4xf32>
    %608 = arith.addf %593, %607 : vector<4x4xf32>
    %c37 = arith.constant 37 : index
    %609 = memref.load %arg4[%c37] : memref<94xf32, #tpu.memory_space<smem>>
    %610 = vector.broadcast %609 : f32 to vector<4x4x4xf32>
    %611 = arith.mulf %532, %610 : vector<4x4x4xf32>
    %c53 = arith.constant 53 : index
    %612 = memref.load %arg4[%c53] : memref<94xf32, #tpu.memory_space<smem>>
    %613 = vector.broadcast %612 : f32 to vector<4x4x4xf32>
    %614 = arith.addf %611, %613 : vector<4x4x4xf32>
    %c0_264 = arith.constant 0 : index
    %c0_265 = arith.constant 0 : index
    %c5_266 = arith.constant 5 : index
    %c0_267 = arith.constant 0 : index
    %c0_268 = arith.constant 0 : index
    %615 = vector.load %arg8[%c0_264, %c0_265, %c5_266, %c0_267, %c0_268] : memref<1x4x16x4x4xf32, #tpu.memory_space<vmem>>, vector<1x4x1x4x4xf32>
    %616 = vector.shape_cast %615 : vector<1x4x1x4x4xf32> to vector<4x4x4xf32>
    %617 = vector.shape_cast %614 : vector<4x4x4xf32> to vector<1x4x1x4x4xf32>
    tpu.vector_store %arg8[%c0_264, %c0_265, %c5_266, %c0_267, %c0_268], %617 {strides = array<i32>} : memref<1x4x16x4x4xf32, #tpu.memory_space<vmem>>, vector<1x4x1x4x4xf32>,
    %c0_269 = arith.constant 0 : index
    %c0_270 = arith.constant 0 : index
    %c5_271 = arith.constant 5 : index
    %c0_272 = arith.constant 0 : index
    %c0_273 = arith.constant 0 : index
    %618 = vector.load %arg2[%c0_269, %c0_270, %c5_271, %c0_272, %c0_273] : memref<1x4x16x4x4xf32, #tpu.memory_space<vmem>>, vector<1x4x1x4x4xf32>
    %619 = vector.shape_cast %618 : vector<1x4x1x4x4xf32> to vector<4x4x4xf32>
    %620 = arith.subf %614, %619 : vector<4x4x4xf32>
    %621 = arith.mulf %620, %620 : vector<4x4x4xf32>
    %cst_274 = arith.constant dense<0.000000e+00> : vector<4x4xf32>
    %622 = vector.multi_reduction <add>, %621, %cst_274 [0] : vector<4x4x4xf32> to vector<4x4xf32>
    %623 = arith.addf %608, %622 : vector<4x4xf32>
    %c38 = arith.constant 38 : index
    %624 = memref.load %arg4[%c38] : memref<94xf32, #tpu.memory_space<smem>>
    %625 = vector.broadcast %624 : f32 to vector<4x4x4xf32>
    %626 = arith.mulf %532, %625 : vector<4x4x4xf32>
    %c54 = arith.constant 54 : index
    %627 = memref.load %arg4[%c54] : memref<94xf32, #tpu.memory_space<smem>>
    %628 = vector.broadcast %627 : f32 to vector<4x4x4xf32>
    %629 = arith.addf %626, %628 : vector<4x4x4xf32>
    %c0_275 = arith.constant 0 : index
    %c0_276 = arith.constant 0 : index
    %c6_277 = arith.constant 6 : index
    %c0_278 = arith.constant 0 : index
    %c0_279 = arith.constant 0 : index
    %630 = vector.load %arg8[%c0_275, %c0_276, %c6_277, %c0_278, %c0_279] : memref<1x4x16x4x4xf32, #tpu.memory_space<vmem>>, vector<1x4x1x4x4xf32>
    %631 = vector.shape_cast %630 : vector<1x4x1x4x4xf32> to vector<4x4x4xf32>
    %632 = vector.shape_cast %629 : vector<4x4x4xf32> to vector<1x4x1x4x4xf32>
    tpu.vector_store %arg8[%c0_275, %c0_276, %c6_277, %c0_278, %c0_279], %632 {strides = array<i32>} : memref<1x4x16x4x4xf32, #tpu.memory_space<vmem>>, vector<1x4x1x4x4xf32>,
    %c0_280 = arith.constant 0 : index
    %c0_281 = arith.constant 0 : index
    %c6_282 = arith.constant 6 : index
    %c0_283 = arith.constant 0 : index
    %c0_284 = arith.constant 0 : index
    %633 = vector.load %arg2[%c0_280, %c0_281, %c6_282, %c0_283, %c0_284] : memref<1x4x16x4x4xf32, #tpu.memory_space<vmem>>, vector<1x4x1x4x4xf32>
    %634 = vector.shape_cast %633 : vector<1x4x1x4x4xf32> to vector<4x4x4xf32>
    %635 = arith.subf %629, %634 : vector<4x4x4xf32>
    %636 = arith.mulf %635, %635 : vector<4x4x4xf32>
    %cst_285 = arith.constant dense<0.000000e+00> : vector<4x4xf32>
    %637 = vector.multi_reduction <add>, %636, %cst_285 [0] : vector<4x4x4xf32> to vector<4x4xf32>
    %638 = arith.addf %623, %637 : vector<4x4xf32>
    %c39 = arith.constant 39 : index
    %639 = memref.load %arg4[%c39] : memref<94xf32, #tpu.memory_space<smem>>
    %640 = vector.broadcast %639 : f32 to vector<4x4x4xf32>
    %641 = arith.mulf %532, %640 : vector<4x4x4xf32>
    %c55 = arith.constant 55 : index
    %642 = memref.load %arg4[%c55] : memref<94xf32, #tpu.memory_space<smem>>
    %643 = vector.broadcast %642 : f32 to vector<4x4x4xf32>
    %644 = arith.addf %641, %643 : vector<4x4x4xf32>
    %c0_286 = arith.constant 0 : index
    %c0_287 = arith.constant 0 : index
    %c7_288 = arith.constant 7 : index
    %c0_289 = arith.constant 0 : index
    %c0_290 = arith.constant 0 : index
    %645 = vector.load %arg8[%c0_286, %c0_287, %c7_288, %c0_289, %c0_290] : memref<1x4x16x4x4xf32, #tpu.memory_space<vmem>>, vector<1x4x1x4x4xf32>
    %646 = vector.shape_cast %645 : vector<1x4x1x4x4xf32> to vector<4x4x4xf32>
    %647 = vector.shape_cast %644 : vector<4x4x4xf32> to vector<1x4x1x4x4xf32>
    tpu.vector_store %arg8[%c0_286, %c0_287, %c7_288, %c0_289, %c0_290], %647 {strides = array<i32>} : memref<1x4x16x4x4xf32, #tpu.memory_space<vmem>>, vector<1x4x1x4x4xf32>,
    %c0_291 = arith.constant 0 : index
    %c0_292 = arith.constant 0 : index
    %c7_293 = arith.constant 7 : index
    %c0_294 = arith.constant 0 : index
    %c0_295 = arith.constant 0 : index
    %648 = vector.load %arg2[%c0_291, %c0_292, %c7_293, %c0_294, %c0_295] : memref<1x4x16x4x4xf32, #tpu.memory_space<vmem>>, vector<1x4x1x4x4xf32>
    %649 = vector.shape_cast %648 : vector<1x4x1x4x4xf32> to vector<4x4x4xf32>
    %650 = arith.subf %644, %649 : vector<4x4x4xf32>
    %651 = arith.mulf %650, %650 : vector<4x4x4xf32>
    %cst_296 = arith.constant dense<0.000000e+00> : vector<4x4xf32>
    %652 = vector.multi_reduction <add>, %651, %cst_296 [0] : vector<4x4x4xf32> to vector<4x4xf32>
    %653 = arith.addf %638, %652 : vector<4x4xf32>
    %c40 = arith.constant 40 : index
    %654 = memref.load %arg4[%c40] : memref<94xf32, #tpu.memory_space<smem>>
    %655 = vector.broadcast %654 : f32 to vector<4x4x4xf32>
    %656 = arith.mulf %532, %655 : vector<4x4x4xf32>
    %c56 = arith.constant 56 : index
    %657 = memref.load %arg4[%c56] : memref<94xf32, #tpu.memory_space<smem>>
    %658 = vector.broadcast %657 : f32 to vector<4x4x4xf32>
    %659 = arith.addf %656, %658 : vector<4x4x4xf32>
    %c0_297 = arith.constant 0 : index
    %c0_298 = arith.constant 0 : index
    %c8_299 = arith.constant 8 : index
    %c0_300 = arith.constant 0 : index
    %c0_301 = arith.constant 0 : index
    %660 = vector.load %arg8[%c0_297, %c0_298, %c8_299, %c0_300, %c0_301] : memref<1x4x16x4x4xf32, #tpu.memory_space<vmem>>, vector<1x4x1x4x4xf32>
    %661 = vector.shape_cast %660 : vector<1x4x1x4x4xf32> to vector<4x4x4xf32>
    %662 = vector.shape_cast %659 : vector<4x4x4xf32> to vector<1x4x1x4x4xf32>
    tpu.vector_store %arg8[%c0_297, %c0_298, %c8_299, %c0_300, %c0_301], %662 {strides = array<i32>} : memref<1x4x16x4x4xf32, #tpu.memory_space<vmem>>, vector<1x4x1x4x4xf32>,
    %c0_302 = arith.constant 0 : index
    %c0_303 = arith.constant 0 : index
    %c8_304 = arith.constant 8 : index
    %c0_305 = arith.constant 0 : index
    %c0_306 = arith.constant 0 : index
    %663 = vector.load %arg2[%c0_302, %c0_303, %c8_304, %c0_305, %c0_306] : memref<1x4x16x4x4xf32, #tpu.memory_space<vmem>>, vector<1x4x1x4x4xf32>
    %664 = vector.shape_cast %663 : vector<1x4x1x4x4xf32> to vector<4x4x4xf32>
    %665 = arith.subf %659, %664 : vector<4x4x4xf32>
    %666 = arith.mulf %665, %665 : vector<4x4x4xf32>
    %cst_307 = arith.constant dense<0.000000e+00> : vector<4x4xf32>
    %667 = vector.multi_reduction <add>, %666, %cst_307 [0] : vector<4x4x4xf32> to vector<4x4xf32>
    %668 = arith.addf %653, %667 : vector<4x4xf32>
    %c41 = arith.constant 41 : index
    %669 = memref.load %arg4[%c41] : memref<94xf32, #tpu.memory_space<smem>>
    %670 = vector.broadcast %669 : f32 to vector<4x4x4xf32>
    %671 = arith.mulf %532, %670 : vector<4x4x4xf32>
    %c57 = arith.constant 57 : index
    %672 = memref.load %arg4[%c57] : memref<94xf32, #tpu.memory_space<smem>>
    %673 = vector.broadcast %672 : f32 to vector<4x4x4xf32>
    %674 = arith.addf %671, %673 : vector<4x4x4xf32>
    %c0_308 = arith.constant 0 : index
    %c0_309 = arith.constant 0 : index
    %c9_310 = arith.constant 9 : index
    %c0_311 = arith.constant 0 : index
    %c0_312 = arith.constant 0 : index
    %675 = vector.load %arg8[%c0_308, %c0_309, %c9_310, %c0_311, %c0_312] : memref<1x4x16x4x4xf32, #tpu.memory_space<vmem>>, vector<1x4x1x4x4xf32>
    %676 = vector.shape_cast %675 : vector<1x4x1x4x4xf32> to vector<4x4x4xf32>
    %677 = vector.shape_cast %674 : vector<4x4x4xf32> to vector<1x4x1x4x4xf32>
    tpu.vector_store %arg8[%c0_308, %c0_309, %c9_310, %c0_311, %c0_312], %677 {strides = array<i32>} : memref<1x4x16x4x4xf32, #tpu.memory_space<vmem>>, vector<1x4x1x4x4xf32>,
    %c0_313 = arith.constant 0 : index
    %c0_314 = arith.constant 0 : index
    %c9_315 = arith.constant 9 : index
    %c0_316 = arith.constant 0 : index
    %c0_317 = arith.constant 0 : index
    %678 = vector.load %arg2[%c0_313, %c0_314, %c9_315, %c0_316, %c0_317] : memref<1x4x16x4x4xf32, #tpu.memory_space<vmem>>, vector<1x4x1x4x4xf32>
    %679 = vector.shape_cast %678 : vector<1x4x1x4x4xf32> to vector<4x4x4xf32>
    %680 = arith.subf %674, %679 : vector<4x4x4xf32>
    %681 = arith.mulf %680, %680 : vector<4x4x4xf32>
    %cst_318 = arith.constant dense<0.000000e+00> : vector<4x4xf32>
    %682 = vector.multi_reduction <add>, %681, %cst_318 [0] : vector<4x4x4xf32> to vector<4x4xf32>
    %683 = arith.addf %668, %682 : vector<4x4xf32>
    %c42 = arith.constant 42 : index
    %684 = memref.load %arg4[%c42] : memref<94xf32, #tpu.memory_space<smem>>
    %685 = vector.broadcast %684 : f32 to vector<4x4x4xf32>
    %686 = arith.mulf %532, %685 : vector<4x4x4xf32>
    %c58 = arith.constant 58 : index
    %687 = memref.load %arg4[%c58] : memref<94xf32, #tpu.memory_space<smem>>
    %688 = vector.broadcast %687 : f32 to vector<4x4x4xf32>
    %689 = arith.addf %686, %688 : vector<4x4x4xf32>
    %c0_319 = arith.constant 0 : index
    %c0_320 = arith.constant 0 : index
    %c10_321 = arith.constant 10 : index
    %c0_322 = arith.constant 0 : index
    %c0_323 = arith.constant 0 : index
    %690 = vector.load %arg8[%c0_319, %c0_320, %c10_321, %c0_322, %c0_323] : memref<1x4x16x4x4xf32, #tpu.memory_space<vmem>>, vector<1x4x1x4x4xf32>
    %691 = vector.shape_cast %690 : vector<1x4x1x4x4xf32> to vector<4x4x4xf32>
    %692 = vector.shape_cast %689 : vector<4x4x4xf32> to vector<1x4x1x4x4xf32>
    tpu.vector_store %arg8[%c0_319, %c0_320, %c10_321, %c0_322, %c0_323], %692 {strides = array<i32>} : memref<1x4x16x4x4xf32, #tpu.memory_space<vmem>>, vector<1x4x1x4x4xf32>,
    %c0_324 = arith.constant 0 : index
    %c0_325 = arith.constant 0 : index
    %c10_326 = arith.constant 10 : index
    %c0_327 = arith.constant 0 : index
    %c0_328 = arith.constant 0 : index
    %693 = vector.load %arg2[%c0_324, %c0_325, %c10_326, %c0_327, %c0_328] : memref<1x4x16x4x4xf32, #tpu.memory_space<vmem>>, vector<1x4x1x4x4xf32>
    %694 = vector.shape_cast %693 : vector<1x4x1x4x4xf32> to vector<4x4x4xf32>
    %695 = arith.subf %689, %694 : vector<4x4x4xf32>
    %696 = arith.mulf %695, %695 : vector<4x4x4xf32>
    %cst_329 = arith.constant dense<0.000000e+00> : vector<4x4xf32>
    %697 = vector.multi_reduction <add>, %696, %cst_329 [0] : vector<4x4x4xf32> to vector<4x4xf32>
    %698 = arith.addf %683, %697 : vector<4x4xf32>
    %c43 = arith.constant 43 : index
    %699 = memref.load %arg4[%c43] : memref<94xf32, #tpu.memory_space<smem>>
    %700 = vector.broadcast %699 : f32 to vector<4x4x4xf32>
    %701 = arith.mulf %532, %700 : vector<4x4x4xf32>
    %c59 = arith.constant 59 : index
    %702 = memref.load %arg4[%c59] : memref<94xf32, #tpu.memory_space<smem>>
    %703 = vector.broadcast %702 : f32 to vector<4x4x4xf32>
    %704 = arith.addf %701, %703 : vector<4x4x4xf32>
    %c0_330 = arith.constant 0 : index
    %c0_331 = arith.constant 0 : index
    %c11_332 = arith.constant 11 : index
    %c0_333 = arith.constant 0 : index
    %c0_334 = arith.constant 0 : index
    %705 = vector.load %arg8[%c0_330, %c0_331, %c11_332, %c0_333, %c0_334] : memref<1x4x16x4x4xf32, #tpu.memory_space<vmem>>, vector<1x4x1x4x4xf32>
    %706 = vector.shape_cast %705 : vector<1x4x1x4x4xf32> to vector<4x4x4xf32>
    %707 = vector.shape_cast %704 : vector<4x4x4xf32> to vector<1x4x1x4x4xf32>
    tpu.vector_store %arg8[%c0_330, %c0_331, %c11_332, %c0_333, %c0_334], %707 {strides = array<i32>} : memref<1x4x16x4x4xf32, #tpu.memory_space<vmem>>, vector<1x4x1x4x4xf32>,
    %c0_335 = arith.constant 0 : index
    %c0_336 = arith.constant 0 : index
    %c11_337 = arith.constant 11 : index
    %c0_338 = arith.constant 0 : index
    %c0_339 = arith.constant 0 : index
    %708 = vector.load %arg2[%c0_335, %c0_336, %c11_337, %c0_338, %c0_339] : memref<1x4x16x4x4xf32, #tpu.memory_space<vmem>>, vector<1x4x1x4x4xf32>
    %709 = vector.shape_cast %708 : vector<1x4x1x4x4xf32> to vector<4x4x4xf32>
    %710 = arith.subf %704, %709 : vector<4x4x4xf32>
    %711 = arith.mulf %710, %710 : vector<4x4x4xf32>
    %cst_340 = arith.constant dense<0.000000e+00> : vector<4x4xf32>
    %712 = vector.multi_reduction <add>, %711, %cst_340 [0] : vector<4x4x4xf32> to vector<4x4xf32>
    %713 = arith.addf %698, %712 : vector<4x4xf32>
    %c44 = arith.constant 44 : index
    %714 = memref.load %arg4[%c44] : memref<94xf32, #tpu.memory_space<smem>>
    %715 = vector.broadcast %714 : f32 to vector<4x4x4xf32>
    %716 = arith.mulf %532, %715 : vector<4x4x4xf32>
    %c60 = arith.constant 60 : index
    %717 = memref.load %arg4[%c60] : memref<94xf32, #tpu.memory_space<smem>>
    %718 = vector.broadcast %717 : f32 to vector<4x4x4xf32>
    %719 = arith.addf %716, %718 : vector<4x4x4xf32>
    %c0_341 = arith.constant 0 : index
    %c0_342 = arith.constant 0 : index
    %c12_343 = arith.constant 12 : index
    %c0_344 = arith.constant 0 : index
    %c0_345 = arith.constant 0 : index
    %720 = vector.load %arg8[%c0_341, %c0_342, %c12_343, %c0_344, %c0_345] : memref<1x4x16x4x4xf32, #tpu.memory_space<vmem>>, vector<1x4x1x4x4xf32>
    %721 = vector.shape_cast %720 : vector<1x4x1x4x4xf32> to vector<4x4x4xf32>
    %722 = vector.shape_cast %719 : vector<4x4x4xf32> to vector<1x4x1x4x4xf32>
    tpu.vector_store %arg8[%c0_341, %c0_342, %c12_343, %c0_344, %c0_345], %722 {strides = array<i32>} : memref<1x4x16x4x4xf32, #tpu.memory_space<vmem>>, vector<1x4x1x4x4xf32>,
    %c0_346 = arith.constant 0 : index
    %c0_347 = arith.constant 0 : index
    %c12_348 = arith.constant 12 : index
    %c0_349 = arith.constant 0 : index
    %c0_350 = arith.constant 0 : index
    %723 = vector.load %arg2[%c0_346, %c0_347, %c12_348, %c0_349, %c0_350] : memref<1x4x16x4x4xf32, #tpu.memory_space<vmem>>, vector<1x4x1x4x4xf32>
    %724 = vector.shape_cast %723 : vector<1x4x1x4x4xf32> to vector<4x4x4xf32>
    %725 = arith.subf %719, %724 : vector<4x4x4xf32>
    %726 = arith.mulf %725, %725 : vector<4x4x4xf32>
    %cst_351 = arith.constant dense<0.000000e+00> : vector<4x4xf32>
    %727 = vector.multi_reduction <add>, %726, %cst_351 [0] : vector<4x4x4xf32> to vector<4x4xf32>
    %728 = arith.addf %713, %727 : vector<4x4xf32>
    %c45 = arith.constant 45 : index
    %729 = memref.load %arg4[%c45] : memref<94xf32, #tpu.memory_space<smem>>
    %730 = vector.broadcast %729 : f32 to vector<4x4x4xf32>
    %731 = arith.mulf %532, %730 : vector<4x4x4xf32>
    %c61 = arith.constant 61 : index
    %732 = memref.load %arg4[%c61] : memref<94xf32, #tpu.memory_space<smem>>
    %733 = vector.broadcast %732 : f32 to vector<4x4x4xf32>
    %734 = arith.addf %731, %733 : vector<4x4x4xf32>
    %c0_352 = arith.constant 0 : index
    %c0_353 = arith.constant 0 : index
    %c13_354 = arith.constant 13 : index
    %c0_355 = arith.constant 0 : index
    %c0_356 = arith.constant 0 : index
    %735 = vector.load %arg8[%c0_352, %c0_353, %c13_354, %c0_355, %c0_356] : memref<1x4x16x4x4xf32, #tpu.memory_space<vmem>>, vector<1x4x1x4x4xf32>
    %736 = vector.shape_cast %735 : vector<1x4x1x4x4xf32> to vector<4x4x4xf32>
    %737 = vector.shape_cast %734 : vector<4x4x4xf32> to vector<1x4x1x4x4xf32>
    tpu.vector_store %arg8[%c0_352, %c0_353, %c13_354, %c0_355, %c0_356], %737 {strides = array<i32>} : memref<1x4x16x4x4xf32, #tpu.memory_space<vmem>>, vector<1x4x1x4x4xf32>,
    %c0_357 = arith.constant 0 : index
    %c0_358 = arith.constant 0 : index
    %c13_359 = arith.constant 13 : index
    %c0_360 = arith.constant 0 : index
    %c0_361 = arith.constant 0 : index
    %738 = vector.load %arg2[%c0_357, %c0_358, %c13_359, %c0_360, %c0_361] : memref<1x4x16x4x4xf32, #tpu.memory_space<vmem>>, vector<1x4x1x4x4xf32>
    %739 = vector.shape_cast %738 : vector<1x4x1x4x4xf32> to vector<4x4x4xf32>
    %740 = arith.subf %734, %739 : vector<4x4x4xf32>
    %741 = arith.mulf %740, %740 : vector<4x4x4xf32>
    %cst_362 = arith.constant dense<0.000000e+00> : vector<4x4xf32>
    %742 = vector.multi_reduction <add>, %741, %cst_362 [0] : vector<4x4x4xf32> to vector<4x4xf32>
    %743 = arith.addf %728, %742 : vector<4x4xf32>
    %c46 = arith.constant 46 : index
    %744 = memref.load %arg4[%c46] : memref<94xf32, #tpu.memory_space<smem>>
    %745 = vector.broadcast %744 : f32 to vector<4x4x4xf32>
    %746 = arith.mulf %532, %745 : vector<4x4x4xf32>
    %c62 = arith.constant 62 : index
    %747 = memref.load %arg4[%c62] : memref<94xf32, #tpu.memory_space<smem>>
    %748 = vector.broadcast %747 : f32 to vector<4x4x4xf32>
    %749 = arith.addf %746, %748 : vector<4x4x4xf32>
    %c0_363 = arith.constant 0 : index
    %c0_364 = arith.constant 0 : index
    %c14_365 = arith.constant 14 : index
    %c0_366 = arith.constant 0 : index
    %c0_367 = arith.constant 0 : index
    %750 = vector.load %arg8[%c0_363, %c0_364, %c14_365, %c0_366, %c0_367] : memref<1x4x16x4x4xf32, #tpu.memory_space<vmem>>, vector<1x4x1x4x4xf32>
    %751 = vector.shape_cast %750 : vector<1x4x1x4x4xf32> to vector<4x4x4xf32>
    %752 = vector.shape_cast %749 : vector<4x4x4xf32> to vector<1x4x1x4x4xf32>
    tpu.vector_store %arg8[%c0_363, %c0_364, %c14_365, %c0_366, %c0_367], %752 {strides = array<i32>} : memref<1x4x16x4x4xf32, #tpu.memory_space<vmem>>, vector<1x4x1x4x4xf32>,
    %c0_368 = arith.constant 0 : index
    %c0_369 = arith.constant 0 : index
    %c14_370 = arith.constant 14 : index
    %c0_371 = arith.constant 0 : index
    %c0_372 = arith.constant 0 : index
    %753 = vector.load %arg2[%c0_368, %c0_369, %c14_370, %c0_371, %c0_372] : memref<1x4x16x4x4xf32, #tpu.memory_space<vmem>>, vector<1x4x1x4x4xf32>
    %754 = vector.shape_cast %753 : vector<1x4x1x4x4xf32> to vector<4x4x4xf32>
    %755 = arith.subf %749, %754 : vector<4x4x4xf32>
    %756 = arith.mulf %755, %755 : vector<4x4x4xf32>
    %cst_373 = arith.constant dense<0.000000e+00> : vector<4x4xf32>
    %757 = vector.multi_reduction <add>, %756, %cst_373 [0] : vector<4x4x4xf32> to vector<4x4xf32>
    %758 = arith.addf %743, %757 : vector<4x4xf32>
    %c47 = arith.constant 47 : index
    %759 = memref.load %arg4[%c47] : memref<94xf32, #tpu.memory_space<smem>>
    %760 = vector.broadcast %759 : f32 to vector<4x4x4xf32>
    %761 = arith.mulf %532, %760 : vector<4x4x4xf32>
    %c63 = arith.constant 63 : index
    %762 = memref.load %arg4[%c63] : memref<94xf32, #tpu.memory_space<smem>>
    %763 = vector.broadcast %762 : f32 to vector<4x4x4xf32>
    %764 = arith.addf %761, %763 : vector<4x4x4xf32>
    %c0_374 = arith.constant 0 : index
    %c0_375 = arith.constant 0 : index
    %c15_376 = arith.constant 15 : index
    %c0_377 = arith.constant 0 : index
    %c0_378 = arith.constant 0 : index
    %765 = vector.load %arg8[%c0_374, %c0_375, %c15_376, %c0_377, %c0_378] : memref<1x4x16x4x4xf32, #tpu.memory_space<vmem>>, vector<1x4x1x4x4xf32>
    %766 = vector.shape_cast %765 : vector<1x4x1x4x4xf32> to vector<4x4x4xf32>
    %767 = vector.shape_cast %764 : vector<4x4x4xf32> to vector<1x4x1x4x4xf32>
    tpu.vector_store %arg8[%c0_374, %c0_375, %c15_376, %c0_377, %c0_378], %767 {strides = array<i32>} : memref<1x4x16x4x4xf32, #tpu.memory_space<vmem>>, vector<1x4x1x4x4xf32>,
    %c0_379 = arith.constant 0 : index
    %c0_380 = arith.constant 0 : index
    %c15_381 = arith.constant 15 : index
    %c0_382 = arith.constant 0 : index
    %c0_383 = arith.constant 0 : index
    %768 = vector.load %arg2[%c0_379, %c0_380, %c15_381, %c0_382, %c0_383] : memref<1x4x16x4x4xf32, #tpu.memory_space<vmem>>, vector<1x4x1x4x4xf32>
    %769 = vector.shape_cast %768 : vector<1x4x1x4x4xf32> to vector<4x4x4xf32>
    %770 = arith.subf %764, %769 : vector<4x4x4xf32>
    %771 = arith.mulf %770, %770 : vector<4x4x4xf32>
    %cst_384 = arith.constant dense<0.000000e+00> : vector<4x4xf32>
    %772 = vector.multi_reduction <add>, %771, %cst_384 [0] : vector<4x4x4xf32> to vector<4x4xf32>
    %773 = arith.addf %758, %772 : vector<4x4xf32>
    %cst_385 = arith.constant 1.000000e+00 : f32
    %774 = vector.broadcast %cst_385 : f32 to vector<4x4x4xf32>
    %775 = arith.addf %774, %166 : vector<4x4x4xf32>
    %776 = arith.mulf %163, %163 : vector<4x4x4xf32>
    %777 = arith.subf %775, %776 : vector<4x4x4xf32>
    %778 = arith.mulf %175, %175 : vector<4x4x4xf32>
    %779 = arith.subf %777, %778 : vector<4x4x4xf32>
    %cst_386 = arith.constant dense<0.000000e+00> : vector<4x4xf32>
    %780 = vector.multi_reduction <add>, %779, %cst_386 [0] : vector<4x4x4xf32> to vector<4x4xf32>
    %c0_i32_387 = arith.constant 0 : i32
    %781 = arith.cmpi eq, %arg1, %c0_i32_387 : i32
    %782 = arith.extui %781 : i1 to i32
    %c0_i32_388 = arith.constant 0 : i32
    %783 = arith.cmpi ne, %782, %c0_i32_388 : i32
    scf.if %783 {
      %c0_391 = arith.constant 0 : index
      %c0_392 = arith.constant 0 : index
      %c0_393 = arith.constant 0 : index
      %c0_394 = arith.constant 0 : index
      %787 = vector.load %arg9[%c0_391, %c0_392, %c0_393, %c0_394] : memref<1x3x4x4xf32, #tpu.memory_space<vmem>>, vector<1x1x4x4xf32>
      %788 = vector.shape_cast %787 : vector<1x1x4x4xf32> to vector<4x4xf32>
      %789 = vector.shape_cast %773 : vector<4x4xf32> to vector<1x1x4x4xf32>
      tpu.vector_store %arg9[%c0_391, %c0_392, %c0_393, %c0_394], %789 {strides = array<i32>} : memref<1x3x4x4xf32, #tpu.memory_space<vmem>>, vector<1x1x4x4xf32>,
      %c0_395 = arith.constant 0 : index
      %c1_396 = arith.constant 1 : index
      %c0_397 = arith.constant 0 : index
      %c0_398 = arith.constant 0 : index
      %790 = vector.load %arg9[%c0_395, %c1_396, %c0_397, %c0_398] : memref<1x3x4x4xf32, #tpu.memory_space<vmem>>, vector<1x1x4x4xf32>
      %791 = vector.shape_cast %790 : vector<1x1x4x4xf32> to vector<4x4xf32>
      %792 = vector.shape_cast %780 : vector<4x4xf32> to vector<1x1x4x4xf32>
      tpu.vector_store %arg9[%c0_395, %c1_396, %c0_397, %c0_398], %792 {strides = array<i32>} : memref<1x3x4x4xf32, #tpu.memory_space<vmem>>, vector<1x1x4x4xf32>,
      %c0_399 = arith.constant 0 : index
      %c2_400 = arith.constant 2 : index
      %c0_401 = arith.constant 0 : index
      %c0_402 = arith.constant 0 : index
      %793 = vector.load %arg9[%c0_399, %c2_400, %c0_401, %c0_402] : memref<1x3x4x4xf32, #tpu.memory_space<vmem>>, vector<1x1x4x4xf32>
      %794 = vector.shape_cast %793 : vector<1x1x4x4xf32> to vector<4x4xf32>
      %795 = vector.shape_cast %517 : vector<4x4xf32> to vector<1x1x4x4xf32>
      tpu.vector_store %arg9[%c0_399, %c2_400, %c0_401, %c0_402], %795 {strides = array<i32>} : memref<1x3x4x4xf32, #tpu.memory_space<vmem>>, vector<1x1x4x4xf32>,
    } else {
    }
    %c0_i32_389 = arith.constant 0 : i32
    %784 = arith.cmpi sgt, %arg1, %c0_i32_389 : i32
    %785 = arith.extui %784 : i1 to i32
    %c0_i32_390 = arith.constant 0 : i32
    %786 = arith.cmpi ne, %785, %c0_i32_390 : i32
    scf.if %786 {
      %c0_391 = arith.constant 0 : index
      %c0_392 = arith.constant 0 : index
      %c0_393 = arith.constant 0 : index
      %c0_394 = arith.constant 0 : index
      %787 = vector.load %arg9[%c0_391, %c0_392, %c0_393, %c0_394] : memref<1x3x4x4xf32, #tpu.memory_space<vmem>>, vector<1x1x4x4xf32>
      %788 = vector.shape_cast %787 : vector<1x1x4x4xf32> to vector<4x4xf32>
      %789 = arith.addf %788, %773 : vector<4x4xf32>
      %c0_395 = arith.constant 0 : index
      %c0_396 = arith.constant 0 : index
      %c0_397 = arith.constant 0 : index
      %c0_398 = arith.constant 0 : index
      %790 = vector.load %arg9[%c0_395, %c0_396, %c0_397, %c0_398] : memref<1x3x4x4xf32, #tpu.memory_space<vmem>>, vector<1x1x4x4xf32>
      %791 = vector.shape_cast %790 : vector<1x1x4x4xf32> to vector<4x4xf32>
      %792 = vector.shape_cast %789 : vector<4x4xf32> to vector<1x1x4x4xf32>
      tpu.vector_store %arg9[%c0_395, %c0_396, %c0_397, %c0_398], %792 {strides = array<i32>} : memref<1x3x4x4xf32, #tpu.memory_space<vmem>>, vector<1x1x4x4xf32>,
      %c0_399 = arith.constant 0 : index
      %c1_400 = arith.constant 1 : index
      %c0_401 = arith.constant 0 : index
      %c0_402 = arith.constant 0 : index
      %793 = vector.load %arg9[%c0_399, %c1_400, %c0_401, %c0_402] : memref<1x3x4x4xf32, #tpu.memory_space<vmem>>, vector<1x1x4x4xf32>
      %794 = vector.shape_cast %793 : vector<1x1x4x4xf32> to vector<4x4xf32>
      %795 = arith.addf %794, %780 : vector<4x4xf32>
      %c0_403 = arith.constant 0 : index
      %c1_404 = arith.constant 1 : index
      %c0_405 = arith.constant 0 : index
      %c0_406 = arith.constant 0 : index
      %796 = vector.load %arg9[%c0_403, %c1_404, %c0_405, %c0_406] : memref<1x3x4x4xf32, #tpu.memory_space<vmem>>, vector<1x1x4x4xf32>
      %797 = vector.shape_cast %796 : vector<1x1x4x4xf32> to vector<4x4xf32>
      %798 = vector.shape_cast %795 : vector<4x4xf32> to vector<1x1x4x4xf32>
      tpu.vector_store %arg9[%c0_403, %c1_404, %c0_405, %c0_406], %798 {strides = array<i32>} : memref<1x3x4x4xf32, #tpu.memory_space<vmem>>, vector<1x1x4x4xf32>,
      %c0_407 = arith.constant 0 : index
      %c2_408 = arith.constant 2 : index
      %c0_409 = arith.constant 0 : index
      %c0_410 = arith.constant 0 : index
      %799 = vector.load %arg9[%c0_407, %c2_408, %c0_409, %c0_410] : memref<1x3x4x4xf32, #tpu.memory_space<vmem>>, vector<1x1x4x4xf32>
      %800 = vector.shape_cast %799 : vector<1x1x4x4xf32> to vector<4x4xf32>
      %801 = arith.addf %517, %524 : vector<4x4xf32>
      %802 = arith.addf %800, %801 : vector<4x4xf32>
      %c0_411 = arith.constant 0 : index
      %c2_412 = arith.constant 2 : index
      %c0_413 = arith.constant 0 : index
      %c0_414 = arith.constant 0 : index
      %803 = vector.load %arg9[%c0_411, %c2_412, %c0_413, %c0_414] : memref<1x3x4x4xf32, #tpu.memory_space<vmem>>, vector<1x1x4x4xf32>
      %804 = vector.shape_cast %803 : vector<1x1x4x4xf32> to vector<4x4xf32>
      %805 = vector.shape_cast %802 : vector<4x4xf32> to vector<1x1x4x4xf32>
      tpu.vector_store %arg9[%c0_411, %c2_412, %c0_413, %c0_414], %805 {strides = array<i32>} : memref<1x3x4x4xf32, #tpu.memory_space<vmem>>, vector<1x1x4x4xf32>,
    } else {
    }
    return
  }
  func.func @transform_0(%arg0: i32, %arg1: i32) -> (i32, i32, i32, i32, i32) {
    %c0_i32 = arith.constant 0 : i32
    %c0_i32_0 = arith.constant 0 : i32
    %c0_i32_1 = arith.constant 0 : i32
    %c0_i32_2 = arith.constant 0 : i32
    return %arg0, %arg1, %c0_i32, %c0_i32_0, %c0_i32_1 : i32, i32, i32, i32, i32
  }
  func.func @transform_1(%arg0: i32, %arg1: i32) -> (i32, i32, i32, i32) {
    %c0_i32 = arith.constant 0 : i32
    %c0_i32_0 = arith.constant 0 : i32
    %c0_i32_1 = arith.constant 0 : i32
    return %arg0, %arg1, %c0_i32, %c0_i32_0 : i32, i32, i32, i32
  }
  func.func @transform_2(%arg0: i32, %arg1: i32) -> i32 {
    %c0_i32 = arith.constant 0 : i32
    %c0_i32_0 = arith.constant 0 : i32
    return %c0_i32 : i32
  }
  func.func @transform_3(%arg0: i32, %arg1: i32) -> (i32, i32, i32, i32, i32) {
    %c0_i32 = arith.constant 0 : i32
    %c0_i32_0 = arith.constant 0 : i32
    %c0_i32_1 = arith.constant 0 : i32
    %c0_i32_2 = arith.constant 0 : i32
    return %arg0, %arg1, %c0_i32, %c0_i32_0, %c0_i32_1 : i32, i32, i32, i32, i32
  }
  func.func @transform_4(%arg0: i32, %arg1: i32) -> (i32, i32, i32, i32) {
    %c0_i32 = arith.constant 0 : i32
    %c0_i32_0 = arith.constant 0 : i32
    %c0_i32_1 = arith.constant 0 : i32
    return %arg0, %arg1, %c0_i32, %c0_i32_0 : i32, i32, i32, i32
  }
  func.func @transform_5(%arg0: i32, %arg1: i32) -> (i32, i32, i32, i32) {
    %c0_i32 = arith.constant 0 : i32
    %c0_i32_0 = arith.constant 0 : i32
    %c0_i32_1 = arith.constant 0 : i32
    return %arg0, %arg1, %c0_i32, %c0_i32_0 : i32, i32, i32, i32
  }
  func.func @transform_6(%arg0: i32, %arg1: i32) -> (i32, i32, i32, i32, i32) {
    %c0_i32 = arith.constant 0 : i32
    %c0_i32_0 = arith.constant 0 : i32
    %c0_i32_1 = arith.constant 0 : i32
    %c0_i32_2 = arith.constant 0 : i32
    return %arg0, %arg1, %c0_i32, %c0_i32_0, %c0_i32_1 : i32, i32, i32, i32, i32
  }
  func.func @transform_7(%arg0: i32, %arg1: i32) -> (i32, i32, i32, i32) {
    %c0_i32 = arith.constant 0 : i32
    %c0_i32_0 = arith.constant 0 : i32
    %c0_i32_1 = arith.constant 0 : i32
    %c0_i32_2 = arith.constant 0 : i32
    return %arg0, %c0_i32, %c0_i32_0, %c0_i32_1 : i32, i32, i32, i32
  }
}

</mosaic_0001>

<bundles_post_ra>
// kernel: lungct_vae_forward.1
= control target key start
LH: loop header
LB: loop body
LE: loop exit
PB: predicated region body
PF: predicated region fallthrough
CT: control target
= control target key end

     0   :  { %s4793_s0 = inlined_call_operand.vmem [shape: f32[2,8,16,4,4], index: 0, kind: input, shape index: {}]   ;;  %s4794_s1 = inlined_call_operand.vmem [shape: f32[2,8,4,4], index: 1, kind: input, shape index: {}]   ;;  %s4795_s2 = inlined_call_operand.vmem [shape: f32[94], index: 2, kind: input, shape index: {}]   ;;  %s4796_s3 = inlined_call_operand.vmem [shape: f32[2,8,8,4,4], index: 3, kind: output, shape index: {0}]   ;;  %s4797_s4 = inlined_call_operand.vmem [shape: f32[2,8,4,4], index: 4, kind: output, shape index: {1}]   ;;  %s4798_s5 = inlined_call_operand.vmem [shape: f32[2,8,4,4], index: 5, kind: output, shape index: {2}]   ;;  %s4799_s6 = inlined_call_operand.vmem [shape: f32[2,8,16,4,4], index: 6, kind: output, shape index: {3}]   ;;  %s4800_s7 = inlined_call_operand.vmem [shape: f32[2,3,4,4], index: 7, kind: output, shape index: {4}]  }
   0x1   :  { %4825 = sst [smem:[#allocation32_spill]] %s4793_s0 }
   0x2   :  { %4826 = sst [smem:[#allocation33_spill]] %s4794_s1 }
   0x3   :  { %4827 = sst [smem:[#allocation34_spill]] %s4795_s2 }
   0x4   :  { %4828 = sst [smem:[#allocation35_spill]] %s4796_s3 }
   0x5   :  { %4829 = sst [smem:[#allocation36_spill]] %s4797_s4 }
   0x6   :  { %4830 = sst [smem:[#allocation37_spill]] %s4798_s5 }
   0x7   :  { %4831 = sst [smem:[#allocation38_spill]] %s4799_s6 }
   0x8   :  { %13 = vsyncpa [#allocation4], 0  ;;  %s3018_s24 = smov 0   ;;  %s3020_s25 = smov 0  }
   0x9   :  { %s3022_s26 = smov 0   ;;  %s3024_s27 = smov 0  }
   0xa   :  { %s3026_s28 = smov 0  }
   0xb LB: > { %s2419_s29 = sadd.s32 4294967295, %s2974_s28   ;;  %s28_s30 = sadd.s32 1, %s2966_s26  ;;  %s2974_s28 = sphi %s3026_s28, %s19_s28   ;;  %s2970_s27 = sphi %s3024_s27, %s4895_s27   ;;  %s2966_s26 = sphi %s3022_s26, %s4894_s26   ;;  %s2962_s25 = sphi %s3020_s25, %s4893_s25   ;;  %s2958_s24 = sphi %s3018_s24, %s4892_s24  }
   0xc   : > { %p29_p0 = scmp.ge.s32.totalorder %s28_s30, 2  ;;  %s31_s8 = sadd.s32 1, %s2970_s27 }
   0xd   : > { %p2421_p1 = scmp.ge.s32.totalorder %s2974_s28, 1  ;;  %p251_p2 = scmp.lt.s32.totalorder %s2974_s28, 5 }
   0xe   : > { %s4897_s30 = smov (%p29_p0, %s28_s30), 0  ;;  %s4899_s8 = smov (!%p29_p0, %s31_s8), %s2970_s27 }
   0xf   : > { %4832 = sst [smem:[#allocation6_spill]] %s4897_s30  ;;  %p252_p3 = pnand %p2421_p1, %p251_p2 }
  0x10   : > { %p33_p4 = scmp.ge.s32.totalorder %s4899_s8, 2  ;;  %p2801_p5 = scmp.eq.s32.totalorder %s2419_s29, 0 }
  0x11   : > { %p2797_p6 = pneg %p252_p3  ;;  %s4833_s2 = sld [smem:[#allocation34_spill]] }
  0x12   : > { %s4901_s8 = smov (%p33_p4, %s4899_s8), 0  ;;  %s2976_s12 = smov [#allocation3]  }
  0x13   : > { %4834 = sst [smem:[#allocation7_spill]] %s4901_s8  ;;  %p2798_p7 = pnand %p2801_p5, %p2797_p6 }
  0x14   : > { %303 = sbr.rel (%p252_p3) target bundleno = 379 (0x17b), region = 32 }
  0x17   : > { %s263_s11 = sshll.u32 %s4833_s2, 4  ;;  %s264_s11 = int_to_ptr.vmem [resolvable:$true] %s263_s11 }
  0x18   : > { %2800 = dma.vmem_to_smem (!%p2798_p7), %s264_s11, 16, %s2976_s12, [#allocation4]  }
  0x19   : > { %2953 = dma.done.wait (%p2801_p5), [#allocation4], 16  }
  0x1a   : > { %2955 = vsyncadd (%p2801_p5), [#allocation4], 4294967280 }
  0x1b   : > { %310 = sfence }
  0x1c   : > { %s2426_s13 = sshll.u32 %s2958_s24, 2  ;;  %p390_p8 = scmp.lt.s32.totalorder %s2962_s25, 1 }
  0x1d   : > { %p392_p9 = scmp.lt.s32.totalorder %s2426_s13, 7  ;;  %s4835_s1 = sld [smem:[#allocation33_spill]] }
  0x1e   : > { %s4903_s25 = smov (!%p390_p8, %s2962_s25), 1  ;;  %s4836_s0 = sld [smem:[#allocation32_spill]] }
  0x1f   : > { %s4905_s13 = smov (!%p392_p9, %s2426_s13), 7  ;;  %s2428_s14 = sshll.u32 %s4903_s25, 7 }
  0x20   : > { %s2431_s15 = sshll.u32 %s4903_s25, 3  ;;  %s2427_s16 = sshll.u32 %s4905_s13, 4 }
  0x21   : > { %s406_s17 = sadd.s32 %s2431_s15, %s4905_s13  ;;  %s396_s18 = sadd.s32 %s2428_s14, %s2427_s16 }
  0x22   : > { %s2432_s19 = sshll.u32 %s406_s17, 2  ;;  %s2429_s20 = sshll.u32 %s396_s18, 2 }
  0x23   : > { %s3058_s23 = scalar_lea.vmem %s4835_s1, %s2432_s19  ;;  %s2434_s11 = sshll.u32 %s4905_s13, 3 }
  0x24   : > { %s3063_s10 = scalar_lea.vmem %s4836_s0, %s2429_s20  ;;  %s2435_s12 = sshll.u32 %s4903_s25, 6 }
  0x25   : > { %s4837_s4 = sld [smem:[#allocation36_spill]]  ;;  %s417_s14 = sadd.s32 %s2435_s12, %s2434_s11 }
  0x26   : > { %s4838_s5 = sld [smem:[#allocation37_spill]]  ;;  %s2436_s18 = sshll.u32 %s417_s14, 2 }
  0x27   : > { %s4839_s6 = sld [smem:[#allocation38_spill]]  ;;  %s2792_s2 = smul.u32 12, %s4903_s25 }
  0x28   : > { %s4840_s3 = sld [smem:[#allocation35_spill]]  ;;  %p2448_p10 = scmp.ne.s32.totalorder %s2958_s24, 0 }
  0x29   : > { %s3088_s11 = scalar_lea.vmem %s4800_s7, %s2792_s2 }
  0x2a   : > { %460 = sbr.rel (%p2448_p10) target bundleno = 56 (0x38), region = 40 }
  0x2b   : > { %s3068_s30 = scalar_lea.vmem %s4837_s4, %s2432_s19 }
  0x2c   : > { %s3073_s17 = scalar_lea.vmem %s4838_s5, %s2432_s19 }
  0x2d   : > { %s3078_s29 = scalar_lea.vmem %s4839_s6, %s2429_s20 }
  0x2e   : > { %s3083_s0 = scalar_lea.vmem %s4840_s3, %s2436_s18 }
  0x2f   : > { %vm461_vm0 = vcmask 27648   ;;  %v2977_v0 = vmov 0.0  }
  0x30   : > { %462 = vst.msk [vmem:[#allocation2] sm:$0xf] %vm461_vm0, %v2977_v0 }
  0x31   : > { %463 = vst.msk [vmem:[#allocation2 + $0x4] sm:$0xf] %vm461_vm0, %v2977_v0 }
  0x32   : > { %464 = vst.msk [vmem:[#allocation2 + $0x8] sm:$0xf] %vm461_vm0, %v2977_v0 }
  0x33   : > { %465 = vst.msk [vmem:[#allocation2 + $0xc] sm:$0xf] %vm461_vm0, %v2977_v0 }
  0x34   : > { %466 = vst.msk [vmem:[#allocation2 + $0x10] sm:$0xf] %vm461_vm0, %v2977_v0 }
  0x35   : > { %467 = vst.msk [vmem:[#allocation2 + $0x14] sm:$0xf] %vm461_vm0, %v2977_v0 }
  0x36   : > { %468 = vst.msk [vmem:[#allocation2 + $0x18] sm:$0xf] %vm461_vm0, %v2977_v0 }
  0x37   : > { %469 = vst.msk [vmem:[#allocation2 + $0x1c] sm:$0xf] %vm461_vm0, %v2977_v0 }
  0x38 PF: > { %s474_s25 = sld [smem:[#allocation3]]  ;;  %v3094_v1 = vld [vmem:[%s3063_s10] sm:$0xf]  ;;  %v3103_v4 = vld [vmem:[%s3063_s10 + $0x4] sm:$0xf]  ;;  %vm873_vm1 = vcmask 27648  }
  0x39   : > { %s2454_s1 = sld [smem:[#allocation3 + $0x1]]  ;;  %v3112_v7 = vld [vmem:[%s3063_s10 + $0x8] sm:$0xf]  ;;  %v3119_v9 = vld [vmem:[%s3063_s10 + $0x40] sm:$0xf] }
  0x3a   : > { %s2460_s19 = sld [smem:[#allocation3 + $0x2]]  ;;  %v3124_v11 = vld [vmem:[%s3063_s10 + $0xc] sm:$0xf]  ;;  %v3133_v14 = vld [vmem:[%s3063_s10 + $0x44] sm:$0xf] }
  0x3b   : > { %s2466_s20 = sld [smem:[#allocation3 + $0x3]]  ;;  %v3138_v17 = vld [vmem:[%s3063_s10 + $0x10] sm:$0xf]  ;;  %v3147_v20 = vld [vmem:[%s3063_s10 + $0x48] sm:$0xf] }
  0x3c   : > { %s2472_s12 = sld [smem:[#allocation3 + $0x4]]  ;;  %v3158_v24 = vld [vmem:[%s3063_s10 + $0x4c] sm:$0xf]  ;;  %v3161_v26 = vld [vmem:[%s3063_s10 + $0x14] sm:$0xf] }
  0x3d   : > { %s2478_s14 = sld [smem:[#allocation3 + $0x5]]  ;;  %v3173_v31 = vld [vmem:[%s3063_s10 + $0x50] sm:$0xf]  ;;  %v3176_v33 = vld [vmem:[%s3063_s10 + $0x18] sm:$0xf] }
  0x3e   : > { %v3096_v2 = vstv %s474_s25  ;;  %s3098_s15 = sld [smem:[#allocation3 + $0x6]]  ;;  %v3188_v38 = vld [vmem:[%s3063_s10 + $0x54] sm:$0xf]  ;;  %v3191_v40 = vld [vmem:[%s3063_s10 + $0x1c] sm:$0xf] }
  0x3f   : > { %v476_v3 = vmul.f32 %v3096_v2, %v3094_v1  ;;  %v3105_v5 = vstv %s2454_s1  ;;  %s3107_s16 = sld [smem:[#allocation3 + $0x7]]  ;;  %v477_v13 = vmul.f32 %v3096_v2, %v3119_v9  ;;  %v3208_v46 = vld [vmem:[%s3063_s10 + $0x58] sm:$0xf]  ;;  %v3211_v48 = vld [vmem:[%s3063_s10 + $0x20] sm:$0xf] }
  0x40   : > { %v493_v6 = vmul.f32 %v3103_v4, %v3105_v5  ;;  %v3114_v8 = vstv %s2460_s19  ;;  %s3116_s18 = sld [smem:[#allocation3 + $0x8]]  ;;  %v494_v19 = vmul.f32 %v3133_v14, %v3105_v5  ;;  %4841 = vst [vmem:[#allocation8_spill] sm:$0xff] %v3208_v46  ;;  %v3224_v54 = vld [vmem:[%s3063_s10 + $0x5c] sm:$0xf]  ;;  %v3227_v56 = vld [vmem:[%s3063_s10 + $0x24] sm:$0xf] }
  0x41   : > { %v518_v10 = vmul.f32 %v3112_v7, %v3114_v8  ;;  %v3126_v12 = vstv %s2466_s20  ;;  %s3128_s21 = sld [smem:[#allocation3 + $0x9]]  ;;  %v519_v23 = vmul.f32 %v3147_v20, %v3114_v8  ;;  %4842 = vst [vmem:[#allocation9_spill] sm:$0xff] %v3224_v54  ;;  %v3230_v57 = vld [vmem:[%s3063_s10 + $0x28] sm:$0xf]  ;;  %v3238_v61 = vld [vmem:[%s3063_s10 + $0x60] sm:$0xf] }
  0x42   : > { %v497_v15 = vadd.f32 %v493_v6, %v476_v3  ;;  %v543_v16 = vmul.f32 %v3124_v11, %v3126_v12  ;;  %v3140_v18 = vstv %s2472_s12  ;;  %s3142_s22 = sld [smem:[#allocation3 + $0xa]]  ;;  %v498_v28 = vadd.f32 %v494_v19, %v477_v13  ;;  %4843 = vst [vmem:[#allocation10_spill] sm:$0xff] %v3238_v61  ;;  %v3245_v0 = vld [vmem:[%s3063_s10 + $0x2c] sm:$0xf]  ;;  %v3252_v6 = vld [vmem:[%s3063_s10 + $0x64] sm:$0xf] }
  0x43   : > { %v568_v21 = vmul.f32 %v3138_v17, %v3140_v18  ;;  %v3151_v22 = vstv %s2478_s14  ;;  %s3153_s9 = sld [smem:[#allocation3 + $0xb]]  ;;  %v544_v29 = vmul.f32 %v3158_v24, %v3126_v12  ;;  %v569_v36 = vmul.f32 %v3173_v31, %v3140_v18  ;;  %4844 = vst [vmem:[#allocation11_spill] sm:$0xff] %v3252_v6 }
  0x44   : > { %v522_v25 = vadd.f32 %v518_v10, %v497_v15  ;;  %v3164_v27 = vstv %s3098_s15  ;;  %s3166_s13 = sld [smem:[#allocation3 + $0xc]]  ;;  %v593_v30 = vmul.f32 %v3161_v26, %v3151_v22  ;;  %v523_v35 = vadd.f32 %v519_v23, %v498_v28  ;;  %v3257_v15 = vld [vmem:[%s3063_s10 + $0x30] sm:$0xf]  ;;  %v3265_v23 = vld [vmem:[%s3063_s10 + $0x84] sm:$0xf] }
  0x45   : > { %v3179_v34 = vstv %s3107_s16  ;;  %v618_v37 = vmul.f32 %v3176_v33, %v3164_v27  ;;  %s3185_s2 = sld [smem:[#allocation3 + $0xd]]  ;;  %v594_v43 = vmul.f32 %v3188_v38, %v3151_v22  ;;  %v619_v51 = vmul.f32 %v3208_v46, %v3164_v27  ;;  %v3338_v46 = vld [vmem:[%s3063_s10 + $0x94] sm:$0xf] }
  0x46   : > { %v547_v32 = vadd.f32 %v543_v16, %v522_v25  ;;  %v3194_v41 = vstv %s3116_s18  ;;  %s3196_s8 = sld [smem:[#allocation3 + $0xe]]  ;;  %v548_v42 = vadd.f32 %v544_v29, %v523_v35  ;;  %v643_v44 = vmul.f32 %v3191_v40, %v3179_v34 }
  0x47   : > { %v3203_v45 = vstv %s3128_s21  ;;  %s3205_s25 = sld [smem:[#allocation3 + $0xf]]  ;;  %v668_v52 = vmul.f32 %v3211_v48, %v3194_v41  ;;  %v644_v60 = vmul.f32 %v3224_v54, %v3179_v34  ;;  %v669_v3 = vmul.f32 %v3238_v61, %v3194_v41  ;;  %v3324_v61 = vld [vmem:[%s3063_s10 + $0x74] sm:$0xf] }
  0x48   : > { %v572_v39 = vadd.f32 %v568_v21, %v547_v32  ;;  %v3214_v49 = vstv %s3142_s22  ;;  %v573_v50 = vadd.f32 %v569_v36, %v548_v42  ;;  %v693_v62 = vmul.f32 %v3227_v56, %v3203_v45  ;;  %s3247_s1 = sld [smem:[#allocation3 + $0x58]]  ;;  %v3262_v21 = vld [vmem:[%s3063_s10 + $0x80] sm:$0xf]  ;;  %v3277_v32 = vld [vmem:[%s3063_s10 + $0x88] sm:$0xf]  ;;  %4853 = vst [vmem:[#allocation20_spill] sm:$0xff] %v3324_v61 }
  0x49   : > { %v3221_v53 = vstv %s3153_s9  ;;  %v718_v63 = vmul.f32 %v3230_v57, %v3214_v49  ;;  %v694_v19 = vmul.f32 %v3252_v6, %v3203_v45  ;;  %v478_v29 = vmul.f32 %v3096_v2, %v3262_v21  ;;  %s3343_s19 = sld [smem:[#allocation3 + $0x10]] }
  0x4a   : > { %v597_v47 = vadd.f32 %v593_v30, %v572_v39  ;;  %v3233_v58 = vstv %s3166_s13  ;;  %v598_v59 = vadd.f32 %v594_v43, %v573_v50  ;;  %v743_v13 = vmul.f32 %v3245_v0, %v3221_v53  ;;  %v3283_v39 = vld [vmem:[%s3063_s10 + $0x68] sm:$0xf]  ;;  %v3288_v43 = vld [vmem:[%s3063_s10 + $0x8c] sm:$0xf]  ;;  %s3358_s20 = sld [smem:[#allocation3 + $0x11]] }
  0x4b   : > { %v768_v25 = vmul.f32 %v3257_v15, %v3233_v58  ;;  %v3270_v28 = vstv %s3185_s2  ;;  %v495_v30 = vmul.f32 %v3265_v23, %v3105_v5  ;;  %4845 = vst [vmem:[#allocation12_spill] sm:$0xff] %v3283_v39  ;;  %v520_v42 = vmul.f32 %v3277_v32, %v3114_v8  ;;  %s3370_s12 = sld [smem:[#allocation3 + $0x12]] }
  0x4c   : > { %v622_v55 = vadd.f32 %v618_v37, %v597_v47  ;;  %v623_v16 = vadd.f32 %v619_v51, %v598_v59  ;;  %v3280_v36 = vstv %s3196_s8  ;;  %4846 = vst [vmem:[#allocation13_spill] sm:$0xff] %v3288_v43  ;;  %v719_v50 = vmul.f32 %v3283_v39, %v3214_v49  ;;  %v3299_v51 = vld [vmem:[%s3063_s10 + $0x6c] sm:$0xf]  ;;  %v3311_v39 = vld [vmem:[%s3063_s10 + $0x70] sm:$0xf]  ;;  %s3381_s14 = sld [smem:[#allocation3 + $0x13]] }
  0x4d   : > { %v3294_v47 = vstv %s3205_s25  ;;  %4848 = vst [vmem:[#allocation15_spill] sm:$0xff] %v3299_v51  ;;  %v744_v6 = vmul.f32 %v3299_v51, %v3221_v53  ;;  %s3403_s15 = sld [smem:[#allocation3 + $0x14]] }
  0x4e   : > { %v647_v10 = vadd.f32 %v643_v44, %v622_v55  ;;  %v648_v37 = vadd.f32 %v644_v60, %v623_v16  ;;  %v3291_v44 = vld [vmem:[%s3063_s10 + $0x34] sm:$0xf]  ;;  %v545_v55 = vmul.f32 %v3288_v43, %v3126_v12  ;;  %4850 = vst [vmem:[#allocation17_spill] sm:$0xff] %v3311_v39  ;;  %v794_v43 = vmul.f32 %v3324_v61, %v3270_v28  ;;  %s3425_s16 = sld [smem:[#allocation3 + $0x15]] }
  0x4f   : > { %4847 = vst [vmem:[#allocation14_spill] sm:$0xff] %v3291_v44  ;;  %v793_v60 = vmul.f32 %v3291_v44, %v3270_v28  ;;  %v3341_v44 = vld [vmem:[%s3063_s10 + $0xc0] sm:$0xf]  ;;  %s3432_s18 = sld [smem:[#allocation3 + $0x16]] }
  0x50   : > { %v672_v35 = vadd.f32 %v668_v52, %v647_v10  ;;  %v499_v52 = vadd.f32 %v495_v30, %v478_v29  ;;  %v3306_v10 = vld [vmem:[%s3063_s10 + $0x38] sm:$0xf]  ;;  %v673_v16 = vadd.f32 %v669_v3, %v648_v37  ;;  %v3314_v29 = vld [vmem:[%s3063_s10 + $0x90] sm:$0xf]  ;;  %v3319_v30 = vld [vmem:[%s3063_s10 + $0x3c] sm:$0xf] }
  0x51   : > { %4849 = vst [vmem:[#allocation16_spill] sm:$0xff] %v3306_v10  ;;  %v570_v37 = vmul.f32 %v3314_v29, %v3140_v18  ;;  %v3330_v54 = vmul.f32 %v3319_v30, %v3294_v47  ;;  %s3445_s21 = sld [smem:[#allocation3 + $0x17]] }
  0x52   : > { %v697_v59 = vadd.f32 %v693_v62, %v672_v35  ;;  %4851 = vst [vmem:[#allocation18_spill] sm:$0xff] %v3314_v29  ;;  %v818_v62 = vmul.f32 %v3306_v10, %v3280_v36  ;;  %v769_v35 = vmul.f32 %v3311_v39, %v3233_v58  ;;  %v524_v3 = vadd.f32 %v520_v42, %v499_v52  ;;  %v3335_v39 = vld [vmem:[%s3063_s10 + $0x78] sm:$0xf]  ;;  %s3460_s22 = sld [smem:[#allocation3 + $0x18]] }
  0x53   : > { %4852 = vst [vmem:[#allocation19_spill] sm:$0xff] %v3319_v30  ;;  %v698_v10 = vadd.f32 %v694_v19, %v673_v16  ;;  %v3346_v42 = vstv %s3247_s1  ;;  %v595_v52 = vmul.f32 %v3338_v46, %v3151_v22  ;;  %v479_v19 = vmul.f32 %v3096_v2, %v3341_v44  ;;  %v3356_v16 = vld [vmem:[%s3063_s10 + $0xc8] sm:$0xf]  ;;  %v3361_v30 = vld [vmem:[%s3063_s10 + $0x7c] sm:$0xf]  ;;  %s3473_s9 = sld [smem:[#allocation3 + $0x19]] }
  0x54   : > { %v722_v51 = vadd.f32 %v718_v63, %v697_v59  ;;  %4854 = vst [vmem:[#allocation21_spill] sm:$0xff] %v3335_v39  ;;  %v549_v63 = vadd.f32 %v545_v55, %v524_v3  ;;  %v3353_v59 = vld [vmem:[%s3063_s10 + $0xc4] sm:$0xf]  ;;  %v3364_v55 = vld [vmem:[%s3063_s10 + $0x98] sm:$0xf]  ;;  %v521_v2 = vmul.f32 %v3356_v16, %v3114_v8  ;;  %s3493_s13 = sld [smem:[#allocation3 + $0x1a]] }
  0x55   : > { %4855 = vst [vmem:[#allocation22_spill] sm:$0xff] %v3341_v44  ;;  %v723_v29 = vadd.f32 %v719_v50, %v698_v10  ;;  %v496_v3 = vmul.f32 %v3353_v59, %v3105_v5  ;;  %v819_v44 = vmul.f32 %v3335_v39, %v3280_v36  ;;  %v3379_v10 = vld [vmem:[%s3063_s10 + $0xcc] sm:$0xf]  ;;  %v3390_v39 = vld [vmem:[%s3063_s10 + $0xa4] sm:$0xf]  ;;  %s3513_s2 = sld [smem:[#allocation3 + $0x1b]] }
  0x56   : > { %4856 = vst [vmem:[#allocation23_spill] sm:$0xff] %v3353_v59  ;;  %v747_v61 = vadd.f32 %v743_v13, %v722_v51  ;;  %v844_v13 = vmul.f32 %v3361_v30, %v3294_v47  ;;  %v574_v50 = vadd.f32 %v570_v37, %v549_v63  ;;  %v620_v51 = vmul.f32 %v3364_v55, %v3164_v27  ;;  %v3387_v59 = vld [vmem:[%s3063_s10 + $0xa0] sm:$0xf]  ;;  %s3523_s8 = sld [smem:[#allocation3 + $0x1c]] }
  0x57   : > { %4857 = vst [vmem:[#allocation24_spill] sm:$0xff] %v3356_v16  ;;  %v748_v8 = vadd.f32 %v744_v6, %v723_v29  ;;  %v3384_v16 = vld [vmem:[%s3063_s10 + $0x9c] sm:$0xf]  ;;  %v500_v37 = vadd.f32 %v496_v3, %v479_v19  ;;  %v546_v63 = vmul.f32 %v3379_v10, %v3126_v12  ;;  %v695_v6 = vmul.f32 %v3390_v39, %v3203_v45  ;;  %v3406_v12 = vld [vmem:[%s3063_s10 + $0xa8] sm:$0xf]  ;;  %s3553_s25 = sld [smem:[#allocation3 + $0x1d]] }
  0x58   : > { %4858 = vst [vmem:[#allocation25_spill] sm:$0xff] %v3361_v30  ;;  %v772_v5 = vadd.f32 %v768_v25, %v747_v61  ;;  %v599_v30 = vadd.f32 %v595_v52, %v574_v50  ;;  %v670_v61 = vmul.f32 %v3387_v59, %v3194_v41  ;;  %v3401_v25 = vld [vmem:[%s3063_s10 + $0xd0] sm:$0xf]  ;;  %v3409_v52 = vld [vmem:[%s3063_s10 + $0xac] sm:$0xf]  ;;  %s3559_s1 = sld [smem:[#allocation3 + $0x1e]] }
  0x59   : > { %4859 = vst [vmem:[#allocation26_spill] sm:$0xff] %v3364_v55  ;;  %v645_v55 = vmul.f32 %v3384_v16, %v3179_v34  ;;  %v773_v19 = vadd.f32 %v769_v35, %v748_v8  ;;  %v525_v3 = vadd.f32 %v521_v2, %v500_v37  ;;  %v571_v50 = vmul.f32 %v3401_v25, %v3140_v18  ;;  %s3778_s4 = sld [smem:[#allocation3 + $0x43]] }
  0x5a   : > { %4860 = vst [vmem:[#allocation27_spill] sm:$0xff] %v3384_v16  ;;  %v797_v29 = vadd.f32 %v793_v60, %v772_v5  ;;  %v720_v16 = vmul.f32 %v3406_v12, %v3214_v49  ;;  %v745_v60 = vmul.f32 %v3409_v52, %v3221_v53  ;;  %v3423_v5 = vld [vmem:[%s3063_s10 + $0xd8] sm:$0xf] }
  0x5b   : > { %4861 = vst [vmem:[#allocation28_spill] sm:$0xff] %v3387_v59  ;;  %v3414_v59 = vld [vmem:[%s3063_s10 + $0xd4] sm:$0xf]  ;;  %v798_v18 = vadd.f32 %v794_v43, %v773_v19  ;;  %v550_v8 = vadd.f32 %v546_v63, %v525_v3  ;;  %v3463_v3 = vld [vmem:[%s3063_s10 + $0xb0] sm:$0xf] }
  0x5c   : > { %4862 = vst [vmem:[#allocation29_spill] sm:$0xff] %v3390_v39  ;;  %v624_v39 = vadd.f32 %v620_v51, %v599_v30  ;;  %v596_v35 = vmul.f32 %v3414_v59, %v3151_v22  ;;  %v822_v2 = vadd.f32 %v818_v62, %v797_v29  ;;  %v621_v30 = vmul.f32 %v3423_v5, %v3164_v27  ;;  %v3430_v51 = vld [vmem:[%s3063_s10 + $0xdc] sm:$0xf] }
  0x5d   : > { %4863 = vst [vmem:[#allocation30_spill] sm:$0xff] %v3406_v12  ;;  %v646_v22 = vmul.f32 %v3430_v51, %v3179_v34  ;;  %v3440_v12 = vstv %s3358_s20  ;;  %v823_v62 = vadd.f32 %v819_v44, %v798_v18  ;;  %v575_v63 = vadd.f32 %v571_v50, %v550_v8  ;;  %v3486_v8 = vld [vmem:[%s3063_s10 + $0xe4] sm:$0xf]  ;;  %s3604_s20 = sld [smem:[#allocation3 + $0x59]] }
  0x5e   : > { %4864 = vst [vmem:[#allocation31_spill] sm:$0xff] %v3409_v52  ;;  %v649_v37 = vadd.f32 %v645_v55, %v624_v39  ;;  %v3437_v52 = vstv %s3343_s19  ;;  %v847_v43 = vadd.f32 %v3330_v54, %v822_v2  ;;  %v503_v34 = vmul.f32 %v3103_v4, %v3440_v12  ;;  %v3466_v4 = vld [vmem:[%s3063_s10 + $0xe0] sm:$0xf]  ;;  %s3569_s19 = sld [smem:[#allocation3 + $0x1f]] }
  0x5f   : > { %v482_v27 = vmul.f32 %v3437_v52, %v3094_v1  ;;  %v3450_v55 = vstv %s3370_s12  ;;  %v3453_v29 = vstv %s3381_s14  ;;  %v848_v44 = vadd.f32 %v844_v13, %v823_v62  ;;  %s3640_s12 = sld [smem:[#allocation3 + $0x5b]] }
  0x60   : > { %v674_v39 = vadd.f32 %v670_v61, %v649_v37  ;;  %v3456_v54 = vadd.f32 %v3346_v42, %v847_v43  ;;  %v600_v19 = vadd.f32 %v596_v35, %v575_v63  ;;  %v528_v1 = vmul.f32 %v3112_v7, %v3450_v55  ;;  %s3646_s14 = sld [smem:[#allocation3 + $0x5c]] }
  0x61   : > { %v507_v50 = vadd.f32 %v503_v34, %v482_v27  ;;  %v553_v2 = vmul.f32 %v3124_v11, %v3453_v29  ;;  %v3471_v13 = vstv %s3403_s15  ;;  %v3479_v7 = vadd.f32 %v3346_v42, %v848_v44  ;;  %s3659_s15 = sld [smem:[#allocation3 + $0x48]] }
  0x62   : > { %v699_v61 = vadd.f32 %v695_v6, %v674_v39  ;;  %874 = vst.msk [vmem:[%s3068_s30] sm:$0xf] %vm873_vm1, %v3456_v54  ;;  %v770_v6 = vmul.f32 %v3463_v3, %v3233_v58  ;;  %v625_v35 = vadd.f32 %v621_v30, %v600_v19  ;;  %v671_v18 = vmul.f32 %v3466_v4, %v3194_v41  ;;  %v3499_v30 = vld [vmem:[%s3063_s10 + $0xb4] sm:$0xf]  ;;  %v3509_v39 = vld [vmem:[%s3063_s10 + $0xe8] sm:$0xf] }
  0x63   : > { %v532_v37 = vadd.f32 %v528_v1, %v507_v50  ;;  %v578_v43 = vmul.f32 %v3138_v17, %v3471_v13  ;;  %v3491_v62 = vstv %s3425_s16  ;;  %875 = vst.msk [vmem:[%s3068_s30 + $0x4] sm:$0xf] %vm873_vm1, %v3479_v7  ;;  %v696_v41 = vmul.f32 %v3486_v8, %v3203_v45  ;;  %v3531_v50 = vld [vmem:[%s3063_s10 + $0xec] sm:$0xf]  ;;  %s3666_s16 = sld [smem:[#allocation3 + $0x5d]] }
  0x64   : > { %v724_v11 = vadd.f32 %v720_v16, %v699_v61  ;;  %v650_v63 = vadd.f32 %v646_v22, %v625_v35  ;;  %v3504_v16 = vstv %s3432_s18  ;;  %v795_v17 = vmul.f32 %v3499_v30, %v3270_v28  ;;  %v3516_v22 = vld [vmem:[%s3063_s10 + $0xb8] sm:$0xf]  ;;  %v3528_v61 = vld [vmem:[%s3063_s10 + $0xbc] sm:$0xf]  ;;  %s3682_s18 = sld [smem:[#allocation3 + $0x4d]] }
  0x65   : > { %v557_v34 = vadd.f32 %v553_v2, %v532_v37  ;;  %v603_v44 = vmul.f32 %v3161_v26, %v3491_v62  ;;  %v3521_v19 = vstv %s3445_s21  ;;  %v820_v26 = vmul.f32 %v3516_v22, %v3280_v36  ;;  %s3690_s21 = sld [smem:[#allocation3 + $0x40]] }
  0x66   : > { %v749_v27 = vadd.f32 %v745_v60, %v724_v11  ;;  %v675_v45 = vadd.f32 %v671_v18, %v650_v63  ;;  %v721_v60 = vmul.f32 %v3509_v39, %v3214_v49  ;;  %v628_v35 = vmul.f32 %v3176_v33, %v3504_v16  ;;  %v3543_v63 = vld [vmem:[%s3063_s10 + $0xf0] sm:$0xf] }
  0x67   : > { %v582_v2 = vadd.f32 %v578_v43, %v557_v34  ;;  %v845_v49 = vmul.f32 %v3528_v61, %v3294_v47  ;;  %v746_v11 = vmul.f32 %v3531_v50, %v3221_v53  ;;  %v653_v33 = vmul.f32 %v3191_v40, %v3521_v19 }
  0x68   : > { %v774_v1 = vadd.f32 %v770_v6, %v749_v27  ;;  %v700_v18 = vadd.f32 %v696_v41, %v675_v45  ;;  %v3540_v6 = vstv %s3460_s22  ;;  %v3546_v27 = vld [vmem:[%s3063_s10 + $0xf4] sm:$0xf]  ;;  %v3551_v34 = vstv %s3473_s9  ;;  %s3694_s22 = sld [smem:[#allocation3 + $0x4a]] }
  0x69   : > { %v607_v43 = vadd.f32 %v603_v44, %v582_v2  ;;  %v771_v53 = vmul.f32 %v3543_v63, %v3233_v58  ;;  %v796_v45 = vmul.f32 %v3546_v27, %v3270_v28  ;;  %v678_v40 = vmul.f32 %v3211_v48, %v3540_v6  ;;  %s3702_s9 = sld [smem:[#allocation3 + $0x4e]] }
  0x6a   : > { %v799_v37 = vadd.f32 %v795_v17, %v774_v1  ;;  %v725_v41 = vadd.f32 %v721_v60, %v700_v18  ;;  %v3562_v1 = vld [vmem:[%s3063_s10 + $0xf8] sm:$0xf]  ;;  %v3567_v2 = vstv %s3493_s13  ;;  %v703_v60 = vmul.f32 %v3227_v56, %v3551_v34  ;;  %v3593_v56 = vld [vmem:[%s3063_s10 + $0xfc] sm:$0xf]  ;;  %s3707_s13 = sld [smem:[#allocation3 + $0x41]] }
  0x6b   : > { %v632_v44 = vadd.f32 %v628_v35, %v607_v43  ;;  %v821_v28 = vmul.f32 %v3562_v1, %v3280_v36  ;;  %v504_v48 = vmul.f32 %v3133_v14, %v3440_v12  ;;  %v3584_v36 = vstv %s3513_s2  ;;  %s912_s2 = smul.f32 %s3659_s15, %s3640_s12 }
  0x6c   : > { %v824_v17 = vadd.f32 %v820_v26, %v799_v37  ;;  %v750_v58 = vadd.f32 %v746_v11, %v725_v41  ;;  %v483_v26 = vmul.f32 %v3437_v52, %v3119_v9  ;;  %v529_v37 = vmul.f32 %v3147_v20, %v3450_v55 }
  0x6d   : > { %v657_v18 = vadd.f32 %v653_v33, %v632_v44  ;;  %v728_v11 = vmul.f32 %v3230_v57, %v3567_v2  ;;  %v3587_v41 = vstv %s3523_s8  ;;  %v554_v20 = vmul.f32 %v3158_v24, %v3453_v29  ;;  %s3717_s8 = sld [smem:[#allocation3 + $0x50]] }
  0x6e   : > { %v849_v35 = vadd.f32 %v845_v49, %v824_v17  ;;  %v775_v43 = vadd.f32 %v771_v53, %v750_v58  ;;  %v508_v14 = vadd.f32 %v504_v48, %v483_v26  ;;  %v846_v57 = vmul.f32 %v3593_v56, %v3294_v47 }
  0x6f   : > { %v682_v49 = vadd.f32 %v678_v40, %v657_v18  ;;  %v753_v17 = vmul.f32 %v3245_v0, %v3584_v36  ;;  %v579_v40 = vmul.f32 %v3173_v31, %v3471_v13  ;;  %v778_v24 = vmul.f32 %v3257_v15, %v3587_v41  ;;  %s1320_s3 = smul.f32 %s3702_s9, %s3640_s12 }
  0x70   : > { %v3590_v9 = vadd.f32 %v3346_v42, %v849_v35  ;;  %v800_v33 = vadd.f32 %v796_v45, %v775_v43  ;;  %v533_v44 = vadd.f32 %v529_v37, %v508_v14  ;;  %v3611_v45 = vstv %s3553_s25  ;;  %v4865_v37 = vld [vmem:[#allocation14_spill] sm:$0xff]  ;;  %s3723_s25 = sld [smem:[#allocation3 + $0x42]]  ;;  %s910_s9 = smul.f32 %s3690_s21, %s3640_s12 }
  0x71   : > { %v707_v53 = vadd.f32 %v703_v60, %v682_v49  ;;  %v3614_v47 = vstv %s3559_s1  ;;  %v3617_v35 = vstv %s3569_s19  ;;  %v604_v0 = vmul.f32 %v3188_v38, %v3491_v62  ;;  %v4866_v49 = vld [vmem:[#allocation8_spill] sm:$0xff]  ;;  %s1252_s1 = smul.f32 %s3682_s18, %s3640_s12  ;;  %s3733_s19 = sld [smem:[#allocation3 + $0x4f]] }
  0x72   : > { %876 = vst.msk [vmem:[%s3068_s30 + $0x8] sm:$0xf] %vm873_vm1, %v3590_v9  ;;  %v825_v58 = vadd.f32 %v821_v28, %v800_v33  ;;  %v558_v60 = vadd.f32 %v554_v20, %v533_v44  ;;  %v484_v48 = vmul.f32 %v3437_v52, %v3262_v21  ;;  %v505_v31 = vmul.f32 %v3265_v23, %v3440_v12  ;;  %v4869_v44 = vld [vmem:[#allocation9_spill] sm:$0xff]  ;;  %s3751_s18 = sadd.f32 %s3646_s14, %s912_s2  ;;  %s978_s2 = smul.f32 %s3707_s13, %s3640_s12 }
  0x73   : > { %v732_v26 = vadd.f32 %v728_v11, %v707_v53  ;;  %v530_v15 = vmul.f32 %v3277_v32, %v3450_v55  ;;  %v803_v43 = vmul.f32 %v4865_v37, %v3611_v45  ;;  %v629_v14 = vmul.f32 %v4866_v49, %v3504_v16  ;;  %v4867_v32 = vld [vmem:[#allocation13_spill] sm:$0xff]  ;;  %s3740_s15 = sadd.f32 %s3646_s14, %s1252_s1  ;;  %s1048_s1 = smul.f32 %s3694_s22, %s3640_s12 }
  0x74   : > { %v850_v18 = vadd.f32 %v846_v57, %v825_v58  ;;  %v583_v11 = vadd.f32 %v579_v40, %v558_v60  ;;  %v3633_v38 = vmul.f32 %v3456_v54, %v3456_v54  ;;  %v509_v23 = vadd.f32 %v505_v31, %v484_v48  ;;  %v4868_v57 = vld [vmem:[#allocation16_spill] sm:$0xff]  ;;  %v4870_v58 = vld [vmem:[#allocation19_spill] sm:$0xff]  ;;  %v4871_v60 = vld [vmem:[#allocation18_spill] sm:$0xff]  ;;  %s3770_s22 = sadd.f32 %s3646_s14, %s1320_s3 }
  0x75   : > { %v757_v28 = vadd.f32 %v753_v17, %v732_v26  ;;  %v555_v20 = vmul.f32 %v4867_v32, %v3453_v29  ;;  %v828_v53 = vmul.f32 %v4868_v57, %v3614_v47  ;;  %v654_v40 = vmul.f32 %v4869_v44, %v3521_v19  ;;  %s1049_s6 = sadd.f32 %s3646_s14, %s1048_s1 }
  0x76   : > { %v3636_v21 = vadd.f32 %v3346_v42, %v850_v18  ;;  %v608_v17 = vadd.f32 %v604_v0, %v583_v11  ;;  %v3650_v42 = vmul.f32 %v3479_v7, %v3479_v7  ;;  %v853_v26 = vmul.f32 %v4870_v58, %v3617_v35  ;;  %v4876_v58 = vld [vmem:[#allocation12_spill] sm:$0xff]  ;;  %s1046_s13 = smul.f32 %s3723_s25, %s3640_s12  ;;  %s3837_s25 = sld [smem:[#allocation3 + $0x51]] }
  0x77   : > { %v782_v33 = vadd.f32 %v778_v24, %v757_v28  ;;  %v534_v24 = vadd.f32 %v530_v15, %v509_v23  ;;  %v580_v18 = vmul.f32 %v4871_v60, %v3471_v13  ;;  %v3662_v48 = vstv %s3604_s20  ;;  %v4872_v28 = vld [vmem:[#allocation10_spill] sm:$0xff]  ;;  %v4873_v15 = vld [vmem:[#allocation11_spill] sm:$0xff]  ;;  %s3759_s20 = sld [smem:[#allocation3 + $0x4b]]  ;;  %s1388_s5 = smul.f32 %s3733_s19, %s3640_s12 }
  0x78   : > { %877 = vst.msk [vmem:[%s3068_s30 + $0xc] sm:$0xf] %vm873_vm1, %v3636_v21  ;;  %v633_v31 = vadd.f32 %v629_v14, %v608_v17  ;;  %v679_v37 = vmul.f32 %v4872_v28, %v3540_v6  ;;  %v3670_v11 = vmul.f32 %v3590_v9, %v3590_v9  ;;  %v704_v49 = vmul.f32 %v4873_v15, %v3551_v34  ;;  %s3676_s30 = sld [smem:[#allocation3 + $0x49]]  ;;  %v4875_v17 = vld [vmem:[#allocation23_spill] sm:$0xff]  ;;  %s1114_s19 = smul.f32 %s3778_s4, %s3640_s12 }
  0x79   : > { %v807_v0 = vadd.f32 %v803_v43, %v782_v33  ;;  %v559_v23 = vadd.f32 %v555_v20, %v534_v24  ;;  %v605_v32 = vmul.f32 %v3338_v46, %v3491_v62  ;;  %v4874_v33 = vld [vmem:[#allocation22_spill] sm:$0xff]  ;;  %v506_v44 = vmul.f32 %v4875_v17, %v3440_v12  ;;  %v4878_v46 = vld [vmem:[#allocation24_spill] sm:$0xff]  ;;  %s3864_s4 = sld [smem:[#allocation3 + $0x53]] }
  0x7a   : > { %v658_v14 = vadd.f32 %v654_v40, %v633_v31  ;;  %v485_v57 = vmul.f32 %v3437_v52, %v4874_v33  ;;  %v729_v60 = vmul.f32 %v4876_v58, %v3567_v2  ;;  %v4877_v20 = vld [vmem:[#allocation26_spill] sm:$0xff]  ;;  %v531_v15 = vmul.f32 %v4878_v46, %v3450_v55  ;;  %v4880_v31 = vld [vmem:[#allocation17_spill] sm:$0xff]  ;;  %v4881_v33 = vld [vmem:[#allocation27_spill] sm:$0xff] }
  0x7b   : > { %v832_v43 = vadd.f32 %v828_v53, %v807_v0  ;;  %v584_v28 = vadd.f32 %v580_v18, %v559_v23  ;;  %v630_v24 = vmul.f32 %v4877_v20, %v3504_v16  ;;  %v556_v12 = vmul.f32 %v3379_v10, %v3453_v29  ;;  %v4879_v18 = vld [vmem:[#allocation15_spill] sm:$0xff]  ;;  %v4883_v17 = vld [vmem:[#allocation28_spill] sm:$0xff]  ;;  %v4884_v20 = vld [vmem:[#allocation21_spill] sm:$0xff] }
  0x7c   : > { %v683_v40 = vadd.f32 %v679_v37, %v658_v14  ;;  %v510_v52 = vadd.f32 %v506_v44, %v485_v57  ;;  %v754_v0 = vmul.f32 %v4879_v18, %v3584_v36  ;;  %v779_v23 = vmul.f32 %v4880_v31, %v3587_v41  ;;  %v4882_v14 = vld [vmem:[#allocation20_spill] sm:$0xff]  ;;  %v4886_v18 = vld [vmem:[#allocation25_spill] sm:$0xff]  ;;  %v4887_v31 = vld [vmem:[#allocation30_spill] sm:$0xff] }
  0x7d   : > { %v857_v53 = vadd.f32 %v853_v26, %v832_v43  ;;  %v609_v55 = vadd.f32 %v605_v32, %v584_v28  ;;  %v655_v26 = vmul.f32 %v4881_v33, %v3521_v19  ;;  %v581_v43 = vmul.f32 %v3401_v25, %v3471_v13 }
  0x7e   : > { %v708_v10 = vadd.f32 %v704_v49, %v683_v40  ;;  %v535_v29 = vadd.f32 %v531_v15, %v510_v52  ;;  %v804_v57 = vmul.f32 %v4882_v14, %v3611_v45  ;;  %v680_v44 = vmul.f32 %v4883_v17, %v3540_v6  ;;  %s4889_s3 = smul.f32 %s3676_s30, %s3640_s12  ;;  %s3809_s30 = sadd.f32 %s3646_s14, %s1388_s5 }
  0x7f   : > { %v869_v37 = vadd.f32 %v3662_v48, %v857_v53  ;;  %v634_v32 = vadd.f32 %v630_v24, %v609_v55  ;;  %v606_v58 = vmul.f32 %v3414_v59, %v3491_v62  ;;  %v829_v59 = vmul.f32 %v4884_v20, %v3614_v47  ;;  %v4885_v24 = vld [vmem:[#allocation29_spill] sm:$0xff]  ;;  %s1116_s5 = smul.f32 %s3759_s20, %s3640_s12 }
  0x80   : > { %v733_v49 = vadd.f32 %v729_v60, %v708_v10  ;;  %v560_v28 = vadd.f32 %v556_v12, %v535_v29  ;;  %v705_v46 = vmul.f32 %v4885_v24, %v3551_v34  ;;  %v631_v15 = vmul.f32 %v3423_v5, %v3504_v16  ;;  %s981_s21 = sadd.f32 %s3646_s14, %s4889_s3 }
  0x81   : > { %878 = vst.msk [vmem:[%s3073_s17] sm:$0xf] %vm873_vm1, %v869_v37  ;;  %v882_v25 = vmul.f32 0.5, %v869_v37  ;;  %v3721_v13 = vadd.f32 1.0, %v869_v37  ;;  %v659_v62 = vadd.f32 %v655_v26, %v634_v32  ;;  %v3744_v12 = vmul.f32 %v3636_v21, %v3636_v21  ;;  %v4888_v37 = vld [vmem:[#allocation31_spill] sm:$0xff]  ;;  %s1117_s20 = sadd.f32 %s3646_s14, %s1116_s5 }
  0x82   : > { %v758_v40 = vadd.f32 %v754_v0, %v733_v49  ;;  %v585_v52 = vadd.f32 %v581_v43, %v560_v28  ;;  %v854_v5 = vmul.f32 %v4886_v18, %v3617_v35  ;;  %v730_v55 = vmul.f32 %v4887_v31, %v3567_v2  ;;  %v894_v32 = vld [vmem:[%s3058_s23] sm:$0xf]  ;;  %s4109_s3 = sld [smem:[#allocation3 + $0x46]] }
  0x83   : > { %v886_v60 = vmul.f32 1.442695, %v882_v25  ;;  %v2058_v53 = vsub.f32 %v3721_v13, %v3633_v38  ;;  %v684_v16 = vadd.f32 %v680_v44, %v659_v62  ;;  %v656_v33 = vmul.f32 %v3430_v51, %v3521_v19  ;;  %s4204_s5 = sld [smem:[#allocation3 + $0x57]] }
  0x84   : > { %v783_v38 = vadd.f32 %v779_v23, %v758_v40  ;;  %v610_v0 = vadd.f32 %v606_v58, %v585_v52  ;;  %v755_v10 = vmul.f32 %v4888_v37, %v3584_v36  ;;  %v780_v29 = vmul.f32 %v3463_v3, %v3587_v41 }
  0x85   : > { %2845 = vpow2.f32 %v886_v60  ;;  %v709_v26 = vadd.f32 %v705_v46, %v684_v16  ;;  %v805_v23 = vmul.f32 %v3499_v30, %v3611_v45  ;;  %v830_v19 = vmul.f32 %v3516_v22, %v3614_v47 }
  0x86   : > { %v808_v51 = vadd.f32 %v804_v57, %v783_v38  ;;  %v635_v43 = vadd.f32 %v631_v15, %v610_v0  ;;  %v681_v14 = vmul.f32 %v3466_v4, %v3540_v6  ;;  %v855_v30 = vmul.f32 %v3528_v61, %v3617_v35 }
  0x87   : > { %v734_v3 = vadd.f32 %v730_v55, %v709_v26  ;;  %v706_v57 = vmul.f32 %v3486_v8, %v3551_v34  ;;  %v731_v22 = vmul.f32 %v3509_v39, %v3567_v2  ;;  %v756_v6 = vmul.f32 %v3531_v50, %v3584_v36 }
  0x88   : > { %v833_v17 = vadd.f32 %v829_v59, %v808_v51  ;;  %v660_v4 = vadd.f32 %v656_v33, %v635_v43  ;;  %v781_v44 = vmul.f32 %v3543_v63, %v3587_v41  ;;  %v806_v8 = vmul.f32 %v3546_v27, %v3611_v45 }
  0x89   : > { %v759_v61 = vadd.f32 %v755_v10, %v734_v3  ;;  %v831_v39 = vmul.f32 %v3562_v1, %v3614_v47  ;;  %v3806_v34 = vmul.f32 %v3593_v56, %v3617_v35  ;;  %v3811_v36 = vstv %s910_s9 }
  0x8a   : > { %v858_v63 = vadd.f32 %v854_v5, %v833_v17  ;;  %v685_v2 = vadd.f32 %v681_v14, %v660_v4  ;;  %v3813_v41 = vstv %s978_s2  ;;  %v3816_v47 = vstv %s3751_s18  ;;  %s4059_s18 = sld [smem:[#allocation3 + $0x54]] }
  0x8b   : > { %v2846_v50 = vpop.eup %2845  ;;  %v784_v1 = vadd.f32 %v780_v29, %v759_v61  ;;  %v3819_v58 = vstv %s981_s21  ;;  %v3821_v25 = vstv %s1046_s13  ;;  %v3828_v20 = vstv %s1049_s6  ;;  %s3848_s6 = sld [smem:[#allocation3 + $0x52]] }
  0x8c   : > { %v898_v27 = vmul.f32 %v2846_v50, %v894_v32  ;;  %v2062_v45 = vmul.f32 %v2846_v50, %v2846_v50  ;;  %v870_v56 = vadd.f32 %v3662_v48, %v858_v63  ;;  %v710_v35 = vadd.f32 %v706_v57, %v685_v2  ;;  %v895_v57 = vld [vmem:[%s3058_s23 + $0x4] sm:$0xf]  ;;  %s4103_s2 = sld [smem:[#allocation3 + $0x55]] }
  0x8d   : > { %v809_v28 = vadd.f32 %v805_v23, %v784_v1  ;;  %v3835_v46 = vstv %s3646_s14  ;;  %v3844_v60 = vstv %s3666_s16  ;;  %v3853_v5 = vstv %s3717_s8  ;;  %s4155_s21 = sld [smem:[#allocation3 + $0x56]] }
  0x8e   : > { %v3826_v13 = vadd.f32 %v898_v27, %v3456_v54  ;;  %v2066_v49 = vsub.f32 %v2058_v53, %v2062_v45  ;;  %879 = vst.msk [vmem:[%s3073_s17 + $0x4] sm:$0xf] %vm873_vm1, %v870_v56  ;;  %v883_v59 = vmul.f32 0.5, %v870_v56  ;;  %v3832_v62 = vadd.f32 1.0, %v870_v56  ;;  %s4164_s13 = sld [smem:[#allocation3 + $0x47]] }
  0x8f   : > { %v735_v24 = vadd.f32 %v731_v22, %v710_v35  ;;  %v834_v15 = vadd.f32 %v830_v19, %v809_v28  ;;  %v3861_v26 = vstv %s1114_s19  ;;  %v3869_v19 = vstv %s1117_s20  ;;  %s4256_s19 = sld [smem:[#allocation3 + $0x21]] }
  0x90   : > { %v915_v54 = vmul.f32 %v3811_v36, %v3826_v13  ;;  %v983_v53 = vmul.f32 %v3813_v41, %v3826_v13  ;;  %v888_v40 = vmul.f32 1.442695, %v883_v59  ;;  %v2059_v52 = vsub.f32 %v3832_v62, %v3650_v42  ;;  %s4274_s20 = sld [smem:[#allocation3 + $0x22]] }
  0x91   : > { %v760_v18 = vadd.f32 %v756_v6, %v735_v24  ;;  %v859_v16 = vadd.f32 %v855_v30, %v834_v15  ;;  %v1051_v38 = vmul.f32 %v3821_v25, %v3826_v13  ;;  %v2070_v0 = vsel %vm873_vm1, %v2066_v49, 0.0  ;;  %v972_v24 = vld [vmem:[#allocation2] sm:$0xf] }
  0x92   : > { %v920_v31 = vadd.f32 %v3816_v47, %v915_v54  ;;  %v988_v55 = vadd.f32 %v3819_v58, %v983_v53  ;;  %2847 = vpow2.f32 %v888_v40  ;;  %v1119_v51 = vmul.f32 %v3861_v26, %v3826_v13 }
  0x93   : > { %v785_v33 = vadd.f32 %v781_v44, %v760_v18  ;;  %v871_v42 = vadd.f32 %v3662_v48, %v859_v16  ;;  %v1056_v23 = vadd.f32 %v3828_v20, %v1051_v38  ;;  %v3879_v32 = vstv %s3837_s25  ;;  %v896_v16 = vld [vmem:[%s3058_s23 + $0x8] sm:$0xf]  ;;  %s4228_s25 = sld [smem:[#allocation3 + $0x20]] }
  0x94   : > { %2849 = vtanh.f32 %v920_v31  ;;  %v2547_v37 = vclamps-f32 %v920_v31, 3.8002012  ;;  %v2558_v10 = vclamps-f32 %v988_v55, 3.8002012  ;;  %v3882_v4 = vadd.f32 %v3869_v19, %v1119_v51  ;;  %v1040_v51 = vld [vmem:[#allocation2 + $0x4] sm:$0xf] }
  0x95   : > { %v810_v29 = vadd.f32 %v806_v8, %v785_v33  ;;  %880 = vst.msk [vmem:[%s3073_s17 + $0x8] sm:$0xf] %vm873_vm1, %v871_v42  ;;  %v884_v43 = vmul.f32 0.5, %v871_v42  ;;  %v3873_v14 = vadd.f32 1.0, %v871_v42  ;;  %v2569_v17 = vclamps-f32 %v1056_v23, 3.8002012 }
  0x96   : > { %v941_v3 = vsub.f32 %v2547_v37, %v3835_v46  ;;  %v1009_v30 = vsub.f32 %v2558_v10, %v3835_v46  ;;  %v3891_v2 = vstv %s3848_s6  ;;  %v2580_v27 = vclamps-f32 %v3882_v4, 3.8002012  ;;  %s4266_s6 = sld [smem:[#allocation3 + $0x31]] }
  0x97   : > { %v835_v22 = vadd.f32 %v831_v39, %v810_v29  ;;  %v890_v6 = vmul.f32 1.442695, %v884_v43  ;;  %v2060_v44 = vsub.f32 %v3873_v14, %v3670_v11  ;;  %v1077_v39 = vsub.f32 %v2569_v17, %v3835_v46 }
  0x98   : > { %v946_v61 = vmul.f32 %v3844_v60, %v941_v3  ;;  %v1013_v8 = vmul.f32 %v1009_v30, %v3844_v60  ;;  %v2848_v50 = vpop.eup %2847  ;;  %v1145_v28 = vsub.f32 %v2580_v27, %v3835_v46  ;;  %v3908_v15 = vstv %s3864_s4  ;;  %v897_v27 = vld [vmem:[%s3058_s23 + $0xc] sm:$0xf]  ;;  %s4001_s23 = sld [smem:[#allocation3 + $0x44]] }
  0x99   : > { %v860_v63 = vadd.f32 %v3806_v34, %v835_v22  ;;  %v899_v1 = vmul.f32 %v2848_v50, %v895_v57  ;;  %v2063_v56 = vmul.f32 %v2848_v50, %v2848_v50  ;;  %2851 = vpow2.f32 %v890_v6  ;;  %s4324_s4 = sld [smem:[#allocation3 + $0x32]] }
  0x9a   : > { %v3894_v45 = vpop.eup %2849  ;;  %v952_v11 = vmul.f32 %v3853_v5, %v946_v61  ;;  %v1019_v34 = vmul.f32 %v3879_v32, %v1013_v8  ;;  %v1081_v49 = vmul.f32 %v1077_v39, %v3844_v60  ;;  %2853 = vtanh.f32 %v988_v55 }
  0x9b   : > { %v872_v35 = vadd.f32 %v3662_v48, %v860_v63  ;;  %928 = vst.msk [vmem:[%s3083_s0] sm:$0xf] %vm873_vm1, %v3894_v45  ;;  %v3905_v59 = vadd.f32 %v899_v1, %v3479_v7  ;;  %v2067_v62 = vsub.f32 %v2059_v52, %v2063_v56  ;;  %v973_v53 = vsub.f32 %v3894_v45, %v972_v24 }
  0x9c   : > { %v1023_v40 = vadd.f32 %v1019_v34, %v952_v11  ;;  %v1087_v31 = vmul.f32 %v3891_v2, %v1081_v49  ;;  %2855 = vtanh.f32 %v1056_v23  ;;  %v1149_v22 = vmul.f32 %v1145_v28, %v3844_v60 }
  0x9d   : > { %881 = vst.msk [vmem:[%s3073_s17 + $0xc] sm:$0xf] %vm873_vm1, %v872_v35  ;;  %v885_v48 = vmul.f32 0.5, %v872_v35  ;;  %v3912_v54 = vadd.f32 1.0, %v872_v35  ;;  %v2071_v18 = vsel %vm873_vm1, %v2067_v62, 0.0  ;;  %v916_v7 = vmul.f32 %v3811_v36, %v3905_v59  ;;  %s4007_s17 = sld [smem:[#allocation3 + $0x4c]] }
  0x9e   : > { %v984_v52 = vmul.f32 %v3813_v41, %v3905_v59  ;;  %v2072_v55 = vadd.f32 %v2071_v18, %v2070_v0  ;;  %v974_v42 = vmul.f32 %v973_v53, %v973_v53  ;;  %v3926_v43 = vadd.f32 %v1087_v31, %v1023_v40  ;;  %s1182_s16 = smul.f32 %s4001_s23, %s3640_s12  ;;  %s4380_s23 = sld [smem:[#allocation3 + $0x33]] }
  0x9f   : > { %v892_v38 = vmul.f32 1.442695, %v885_v48  ;;  %v2061_v33 = vsub.f32 %v3912_v54, %v3744_v12  ;;  %v2852_v37 = vpop.eup %2851  ;;  %v921_v10 = vadd.f32 %v3816_v47, %v916_v7  ;;  %v1052_v0 = vmul.f32 %v3821_v25, %v3905_v59 }
  0xa0   : > { %v989_v29 = vadd.f32 %v3819_v58, %v984_v52  ;;  %v900_v14 = vmul.f32 %v2852_v37, %v896_v16  ;;  %v2064_v3 = vmul.f32 %v2852_v37, %v2852_v37  ;;  %v2854_v30 = vpop.eup %2853  ;;  %v3940_v63 = vmul.f32 %v3908_v15, %v1149_v22 }
  0xa1   : > { %2857 = vpow2.f32 %v892_v38  ;;  %v2548_v12 = vclamps-f32 %v921_v10, 3.8002012  ;;  %2554 = vst.msk [vmem:[%s3083_s0 + $0x4] sm:$0xf] %vm873_vm1, %v2854_v30  ;;  %v1041_v23 = vsub.f32 %v2854_v30, %v1040_v51  ;;  %v1057_v50 = vadd.f32 %v3828_v20, %v1052_v0 }
  0xa2   : > { %2859 = vtanh.f32 %v921_v10  ;;  %v2559_v57 = vclamps-f32 %v989_v29, 3.8002012  ;;  %v3932_v17 = vadd.f32 %v900_v14, %v3590_v9  ;;  %v2068_v6 = vsub.f32 %v2060_v44, %v2064_v3  ;;  %v3948_v56 = vpop.eup %2855 }
  0xa3   : > { %2861 = vtanh.f32 %v989_v29  ;;  %v942_v61 = vsub.f32 %v2548_v12, %v3835_v46  ;;  %v1042_v1 = vmul.f32 %v1041_v23, %v1041_v23  ;;  %2565 = vst.msk [vmem:[%s3083_s0 + $0x8] sm:$0xf] %vm873_vm1, %v3948_v56  ;;  %v2570_v48 = vclamps-f32 %v1057_v50, 3.8002012  ;;  %s1184_s8 = smul.f32 %s4007_s17, %s3640_s12  ;;  %s4398_s17 = sld [smem:[#allocation3 + $0x24]] }
  0xa4   : > { %v1010_v8 = vsub.f32 %v2559_v57, %v3835_v46  ;;  %v2073_v39 = vsel %vm873_vm1, %v2068_v6, 0.0  ;;  %v917_v9 = vmul.f32 %v3811_v36, %v3932_v17  ;;  %v985_v44 = vmul.f32 %v3813_v41, %v3932_v17 }
  0xa5   : > { %v2074_v11 = vadd.f32 %v2073_v39, %v2072_v55  ;;  %v947_v35 = vmul.f32 %v3844_v60, %v942_v61  ;;  %2863 = vtanh.f32 %v1057_v50  ;;  %v3954_v24 = vadd.f32 %v1042_v1, %v974_v42  ;;  %s1185_s1 = sadd.f32 %s3646_s14, %s1184_s8 }
  0xa6   : > { %v1014_v34 = vmul.f32 %v1010_v8, %v3844_v60  ;;  %v922_v28 = vadd.f32 %v3816_v47, %v917_v9  ;;  %v990_v62 = vadd.f32 %v3819_v58, %v985_v44  ;;  %v1078_v61 = vsub.f32 %v2570_v48, %v3835_v46  ;;  %s4074_s14 = sld [smem:[#allocation3 + $0x45]] }
  0xa7   : > { %v2858_v49 = vpop.eup %2857  ;;  %v953_v18 = vmul.f32 %v3853_v5, %v947_v35  ;;  %s4421_s8 = sld [smem:[#allocation3 + $0x25]] }
  0xa8   : > { %v2860_v54 = vpop.eup %2859  ;;  %v901_v53 = vmul.f32 %v2858_v49, %v897_v27  ;;  %v2065_v40 = vmul.f32 %v2858_v49, %v2858_v49  ;;  %v1020_v16 = vmul.f32 %v3879_v32, %v1014_v34  ;;  %2865 = vtanh.f32 %v922_v28 }
  0xa9   : > { %v2862_v7 = vpop.eup %2861  ;;  %929 = vst.msk [vmem:[%s3083_s0 + $0x20] sm:$0xf] %vm873_vm1, %v2860_v54  ;;  %v960_v52 = vsub.f32 %v2860_v54, %v3894_v45  ;;  %v2549_v31 = vclamps-f32 %v922_v28, 3.8002012  ;;  %v2560_v55 = vclamps-f32 %v990_v62, 3.8002012  ;;  %2867 = vtanh.f32 %v990_v62 }
  0xaa   : > { %v3965_v38 = vadd.f32 %v901_v53, %v3636_v21  ;;  %v2069_v42 = vsub.f32 %v2061_v33, %v2065_v40  ;;  %2555 = vst.msk [vmem:[%s3083_s0 + $0x24] sm:$0xf] %vm873_vm1, %v2862_v7  ;;  %v1024_v37 = vadd.f32 %v1020_v16, %v953_v18  ;;  %v1027_v10 = vsub.f32 %v2862_v7, %v2854_v30 }
  0xab   : > { %v963_v29 = vmul.f32 %v960_v52, %v960_v52  ;;  %v943_v51 = vsub.f32 %v2549_v31, %v3835_v46  ;;  %v1011_v14 = vsub.f32 %v2560_v55, %v3835_v46  ;;  %v3971_v3 = vpop.eup %2863  ;;  %v1053_v27 = vmul.f32 %v3821_v25, %v3932_v17  ;;  %v1108_v31 = vld [vmem:[#allocation2 + $0x8] sm:$0xf] }
  0xac   : > { %v2075_v45 = vsel %vm873_vm1, %v2069_v42, 0.0  ;;  %v918_v21 = vmul.f32 %v3811_v36, %v3965_v38  ;;  %v1030_v0 = vmul.f32 %v1027_v10, %v1027_v10  ;;  %v986_v33 = vmul.f32 %v3813_v41, %v3965_v38  ;;  %2566 = vst.msk [vmem:[%s3083_s0 + $0x28] sm:$0xf] %vm873_vm1, %v3971_v3  ;;  %s1250_s9 = smul.f32 %s4074_s14, %s3640_s12  ;;  %s4453_s14 = sld [smem:[#allocation3 + $0x36]] }
  0xad   : > { %v3978_v12 = vadd.f32 %v2075_v45, %v2074_v11  ;;  %v966_v30 = vsel %vm873_vm1, %v963_v29, 0.0  ;;  %v948_v57 = vmul.f32 %v3844_v60, %v943_v51  ;;  %v1015_v22 = vmul.f32 %v1011_v14, %v3844_v60 }
  0xae   : > { %v923_v6 = vadd.f32 %v3816_v47, %v918_v21  ;;  %v1033_v36 = vsel %vm873_vm1, %v1030_v0, 0.0  ;;  %v991_v23 = vadd.f32 %v3819_v58, %v986_v33  ;;  %v2866_v41 = vpop.eup %2865  ;;  %v1095_v39 = vsub.f32 %v3971_v3, %v3948_v56 }
  0xaf   : > { %v954_v8 = vmul.f32 %v3853_v5, %v948_v57  ;;  %v1021_v50 = vmul.f32 %v3879_v32, %v1015_v22  ;;  %930 = vst.msk [vmem:[%s3083_s0 + $0x40] sm:$0xf] %vm873_vm1, %v2866_v41  ;;  %v961_v47 = vsub.f32 %v2866_v41, %v2860_v54  ;;  %v2868_v44 = vpop.eup %2867  ;;  %v1082_v11 = vmul.f32 %v1078_v61, %v3844_v60 }
  0xb0   : > { %2869 = vtanh.f32 %v923_v6  ;;  %v2550_v9 = vclamps-f32 %v923_v6, 3.8002012  ;;  %v2561_v58 = vclamps-f32 %v991_v23, 3.8002012  ;;  %v1098_v35 = vmul.f32 %v1095_v39, %v1095_v39  ;;  %2556 = vst.msk [vmem:[%s3083_s0 + $0x44] sm:$0xf] %vm873_vm1, %v2868_v44 }
  0xb1   : > { %v3998_v1 = vadd.f32 %v1021_v50, %v954_v8  ;;  %2871 = vtanh.f32 %v991_v23  ;;  %v964_v34 = vmul.f32 %v961_v47, %v961_v47  ;;  %v1028_v28 = vsub.f32 %v2868_v44, %v2862_v7 }
  0xb2   : > { %v944_v49 = vsub.f32 %v2550_v9, %v3835_v46  ;;  %v1012_v62 = vsub.f32 %v2561_v58, %v3835_v46  ;;  %v1088_v48 = vmul.f32 %v3891_v2, %v1082_v11  ;;  %v4011_v54 = vsel %vm873_vm1, %v1098_v35, 0.0 }
  0xb3   : > { %v1058_v53 = vadd.f32 %v3828_v20, %v1053_v27  ;;  %v1054_v40 = vmul.f32 %v3821_v25, %v3965_v38  ;;  %v967_v18 = vsel %vm873_vm1, %v964_v34, 0.0  ;;  %v1031_v7 = vmul.f32 %v1028_v28, %v1028_v28 }
  0xb4   : > { %v949_v16 = vmul.f32 %v3844_v60, %v944_v49  ;;  %v1016_v52 = vmul.f32 %v1012_v62, %v3844_v60  ;;  %v968_v55 = vadd.f32 %v967_v18, %v966_v30  ;;  %v4019_v42 = vadd.f32 %v1088_v48, %v1024_v37 }
  0xb5   : > { %2873 = vtanh.f32 %v1058_v53  ;;  %v2571_v10 = vclamps-f32 %v1058_v53, 3.8002012  ;;  %v1034_v25 = vsel %vm873_vm1, %v1031_v7, 0.0  ;;  %v1059_v45 = vadd.f32 %v3828_v20, %v1054_v40  ;;  %v1176_v53 = vld [vmem:[#allocation2 + $0xc] sm:$0xf] }
  0xb6   : > { %v2870_v29 = vpop.eup %2869  ;;  %v955_v51 = vmul.f32 %v3853_v5, %v949_v16  ;;  %v1022_v14 = vmul.f32 %v3879_v32, %v1016_v52  ;;  %v1035_v37 = vadd.f32 %v1034_v25, %v1033_v36  ;;  %v1109_v30 = vsub.f32 %v3948_v56, %v1108_v31 }
  0xb7   : > { %v2872_v21 = vpop.eup %2871  ;;  %931 = vst.msk [vmem:[%s3083_s0 + $0x60] sm:$0xf] %vm873_vm1, %v2870_v29  ;;  %v962_v0 = vsub.f32 %v2870_v29, %v2866_v41  ;;  %v1079_v33 = vsub.f32 %v2571_v10, %v3835_v46  ;;  %2875 = vtanh.f32 %v1059_v45  ;;  %v2572_v32 = vclamps-f32 %v1059_v45, 3.8002012 }
  0xb8   : > { %976 = vst.msk [vmem:[#allocation2] sm:$0xf] %vm873_vm1, %v2870_v29  ;;  %v1026_v5 = vadd.f32 %v1022_v14, %v955_v51  ;;  %v1029_v57 = vsub.f32 %v2872_v21, %v2868_v44  ;;  %v1110_v6 = vmul.f32 %v1109_v30, %v1109_v30  ;;  %2877 = vtanh.f32 %v3882_v4 }
  0xb9   : > { %v965_v20 = vmul.f32 %v962_v0, %v962_v0  ;;  %2557 = vst.msk [vmem:[%s3083_s0 + $0x64] sm:$0xf] %vm873_vm1, %v2872_v21  ;;  %v1083_v22 = vmul.f32 %v1079_v33, %v3844_v60  ;;  %v1080_v56 = vsub.f32 %v2572_v32, %v3835_v46  ;;  %v4040_v23 = vadd.f32 %v3940_v63, %v3926_v43 }
  0xba   : > { %v1032_v36 = vmul.f32 %v1029_v57, %v1029_v57  ;;  %1044 = vst.msk [vmem:[#allocation2 + $0x4] sm:$0xf] %vm873_vm1, %v2872_v21  ;;  %v1120_v61 = vmul.f32 %v3861_v26, %v3905_v59  ;;  %v1111_v4 = vadd.f32 %v1110_v6, %v3954_v24  ;;  %v1121_v39 = vmul.f32 %v3861_v26, %v3932_v17 }
  0xbb   : > { %v2874_v41 = vpop.eup %2873  ;;  %v969_v8 = vsel %vm873_vm1, %v965_v20, 0.0  ;;  %v1089_v50 = vmul.f32 %v3891_v2, %v1083_v22  ;;  %v1084_v63 = vmul.f32 %v1080_v56, %v3844_v60  ;;  %v1122_v49 = vmul.f32 %v3861_v26, %v3965_v38 }
  0xbc   : > { %v970_v27 = vadd.f32 %v969_v8, %v968_v55  ;;  %v1036_v47 = vsel %vm873_vm1, %v1032_v36, 0.0  ;;  %2567 = vst.msk [vmem:[%s3083_s0 + $0x48] sm:$0xf] %vm873_vm1, %v2874_v41  ;;  %v1096_v43 = vsub.f32 %v2874_v41, %v3971_v3  ;;  %v1125_v44 = vadd.f32 %v3869_v19, %v1120_v61 }
  0xbd   : > { %v1037_v9 = vadd.f32 %v1036_v47, %v1035_v37  ;;  %v1093_v58 = vadd.f32 %v1089_v50, %v3998_v1  ;;  %v1126_v24 = vadd.f32 %v3869_v19, %v1121_v39  ;;  %v2876_v11 = vpop.eup %2875  ;;  %v1090_v34 = vmul.f32 %v3891_v2, %v1084_v63 }
  0xbe   : > { %v1099_v35 = vmul.f32 %v1096_v43, %v1096_v43  ;;  %v1186_v3 = vstv %s1182_s16  ;;  %v2878_v28 = vpop.eup %2877  ;;  %2568 = vst.msk [vmem:[%s3083_s0 + $0x68] sm:$0xf] %vm873_vm1, %v2876_v11  ;;  %v1097_v1 = vsub.f32 %v2876_v11, %v2874_v41  ;;  %2879 = vtanh.f32 %v1125_v44  ;;  %s4412_s16 = sld [smem:[#allocation3 + $0x34]] }
  0xbf   : > { %v1038_v62 = vadd.f32 %v1037_v9, %v970_v27  ;;  %v2581_v48 = vclamps-f32 %v1125_v44, 3.8002012  ;;  %v1094_v18 = vadd.f32 %v1090_v34, %v1026_v5  ;;  %1112 = vst.msk [vmem:[#allocation2 + $0x8] sm:$0xf] %vm873_vm1, %v2876_v11  ;;  %2881 = vtanh.f32 %v1126_v24 }
  0xc0   : > { %v1102_v40 = vsel %vm873_vm1, %v1099_v35, 0.0  ;;  %v2582_v2 = vclamps-f32 %v1126_v24, 3.8002012  ;;  %v1100_v16 = vmul.f32 %v1097_v1, %v1097_v1  ;;  %2576 = vst.msk [vmem:[%s3083_s0 + $0xc] sm:$0xf] %vm873_vm1, %v2878_v28  ;;  %v1127_v52 = vadd.f32 %v3869_v19, %v1122_v49 }
  0xc1   : > { %v1103_v26 = vadd.f32 %v1102_v40, %v4011_v54  ;;  %v1146_v7 = vsub.f32 %v2581_v48, %v3835_v46  ;;  %v1177_v55 = vsub.f32 %v2878_v28, %v1176_v53  ;;  %v1187_v10 = vmul.f32 %v1186_v3, %v3826_v13 }
  0xc2   : > { %v1147_v31 = vsub.f32 %v2582_v2, %v3835_v46  ;;  %v1191_v29 = vstv %s1185_s1  ;;  %v1104_v51 = vsel %vm873_vm1, %v1100_v16, 0.0  ;;  %2883 = vtanh.f32 %v1127_v52  ;;  %s4436_s1 = sld [smem:[#allocation3 + $0x26]] }
  0xc3   : > { %v1150_v54 = vmul.f32 %v1146_v7, %v3844_v60  ;;  %v2583_v25 = vclamps-f32 %v1127_v52, 3.8002012  ;;  %v1105_v14 = vadd.f32 %v1104_v51, %v1103_v26  ;;  %v1178_v45 = vmul.f32 %v1177_v55, %v1177_v55 }
  0xc4   : > { %v1151_v19 = vmul.f32 %v1147_v31, %v3844_v60  ;;  %v1192_v21 = vadd.f32 %v1191_v29, %v1187_v10  ;;  %v2880_v0 = vpop.eup %2879  ;;  %v4084_v30 = vstv %s4059_s18  ;;  %v1188_v5 = vmul.f32 %v1186_v3, %v3905_v59  ;;  %s4427_s18 = sld [smem:[#allocation3 + $0x35]] }
  0xc5   : > { %v1156_v37 = vmul.f32 %v3908_v15, %v1150_v54  ;;  %v1148_v33 = vsub.f32 %v2583_v25, %v3835_v46  ;;  %v2882_v57 = vpop.eup %2881  ;;  %v1106_v32 = vadd.f32 %v1105_v14, %v1038_v62  ;;  %2577 = vst.msk [vmem:[%s3083_s0 + $0x2c] sm:$0xf] %vm873_vm1, %v2880_v0  ;;  %v1163_v20 = vsub.f32 %v2880_v0, %v2878_v28  ;;  %v1244_v28 = vld [vmem:[#allocation2 + $0x10] sm:$0xf] }
  0xc6   : > { %v1157_v22 = vmul.f32 %v3908_v15, %v1151_v19  ;;  %v4090_v6 = vadd.f32 %v1178_v45, %v1111_v4  ;;  %2578 = vst.msk [vmem:[%s3083_s0 + $0x4c] sm:$0xf] %vm873_vm1, %v2882_v57  ;;  %v1164_v56 = vsub.f32 %v2882_v57, %v2880_v0  ;;  %2885 = vtanh.f32 %v1192_v21 }
  0xc7   : > { %v1160_v36 = vadd.f32 %v1156_v37, %v4019_v42  ;;  %v1152_v61 = vmul.f32 %v1148_v33, %v3844_v60  ;;  %v1166_v41 = vmul.f32 %v1163_v20, %v1163_v20  ;;  %v2591_v50 = vclamps-f32 %v1192_v21, 3.8002012 }
  0xc8   : > { %v4096_v8 = vadd.f32 %v1157_v22, %v1093_v58  ;;  %v1193_v39 = vadd.f32 %v1191_v29, %v1188_v5  ;;  %v2884_v27 = vpop.eup %2883  ;;  %v1167_v47 = vmul.f32 %v1164_v56, %v1164_v56  ;;  %v1189_v4 = vmul.f32 %v1186_v3, %v3932_v17 }
  0xc9   : > { %v1158_v43 = vmul.f32 %v3908_v15, %v1152_v61  ;;  %v1190_v42 = vmul.f32 %v1186_v3, %v3965_v38  ;;  %v1169_v63 = vsel %vm873_vm1, %v1166_v41, 0.0  ;;  %2579 = vst.msk [vmem:[%s3083_s0 + $0x6c] sm:$0xf] %vm873_vm1, %v2884_v27  ;;  %v1165_v9 = vsub.f32 %v2884_v27, %v2882_v57 }
  0xca   : > { %v1213_v58 = vsub.f32 %v2591_v50, %v3835_v46  ;;  %2887 = vtanh.f32 %v1193_v39  ;;  %v1170_v44 = vsel %vm873_vm1, %v1167_v47, 0.0  ;;  %1180 = vst.msk [vmem:[#allocation2 + $0xc] sm:$0xf] %vm873_vm1, %v2884_v27  ;;  %v2592_v24 = vclamps-f32 %v1193_v39, 3.8002012 }
  0xcb   : > { %v1162_v15 = vadd.f32 %v1158_v43, %v1094_v18  ;;  %v1194_v11 = vadd.f32 %v1191_v29, %v1189_v4  ;;  %v1171_v35 = vadd.f32 %v1170_v44, %v1169_v63  ;;  %v1168_v34 = vmul.f32 %v1165_v9, %v1165_v9 }
  0xcc   : > { %v1217_v49 = vmul.f32 %v1213_v58, %v3844_v60  ;;  %v1195_v3 = vadd.f32 %v1191_v29, %v1190_v42  ;;  %v2886_v62 = vpop.eup %2885  ;;  %v1214_v1 = vsub.f32 %v2592_v24, %v3835_v46  ;;  %v1254_v53 = vstv %s1250_s9  ;;  %s4481_s9 = sld [smem:[#allocation3 + $0x27]] }
  0xcd   : > { %2889 = vtanh.f32 %v1194_v11  ;;  %v2593_v48 = vclamps-f32 %v1194_v11, 3.8002012  ;;  %v1172_v40 = vsel %vm873_vm1, %v1168_v34, 0.0  ;;  %2587 = vst.msk [vmem:[%s3083_s0 + $0x10] sm:$0xf] %vm873_vm1, %v2886_v62  ;;  %v1245_v52 = vsub.f32 %v2886_v62, %v1244_v28 }
  0xce   : > { %v1223_v18 = vmul.f32 %v4084_v30, %v1217_v49  ;;  %2891 = vtanh.f32 %v1195_v3  ;;  %v2594_v2 = vclamps-f32 %v1195_v3, 3.8002012  ;;  %v1173_v26 = vadd.f32 %v1172_v40, %v1171_v35  ;;  %v1312_v35 = vld [vmem:[#allocation2 + $0x14] sm:$0xf] }
  0xcf   : > { %v1218_v16 = vmul.f32 %v1214_v1, %v3844_v60  ;;  %v1215_v7 = vsub.f32 %v2593_v48, %v3835_v46  ;;  %v1255_v29 = vmul.f32 %v1254_v53, %v3826_v13  ;;  %v1259_v51 = vstv %s3740_s15  ;;  %s1318_s15 = smul.f32 %s4109_s3, %s3640_s12  ;;  %s4510_s3 = sld [smem:[#allocation3 + $0x28]] }
  0xd0   : > { %v2888_v31 = vpop.eup %2887  ;;  %v4122_v55 = vadd.f32 %v1223_v18, %v4040_v23  ;;  %v1216_v10 = vsub.f32 %v2594_v2, %v3835_v46  ;;  %v1174_v54 = vadd.f32 %v1173_v26, %v1106_v32  ;;  %v1246_v23 = vmul.f32 %v1245_v52, %v1245_v52 }
  0xd1   : > { %2588 = vst.msk [vmem:[%s3083_s0 + $0x30] sm:$0xf] %vm873_vm1, %v2888_v31  ;;  %v1224_v25 = vmul.f32 %v4084_v30, %v1218_v16  ;;  %v1231_v14 = vsub.f32 %v2888_v31, %v2886_v62  ;;  %v1219_v19 = vmul.f32 %v1215_v7, %v3844_v60  ;;  %v1260_v21 = vadd.f32 %v1259_v51, %v1255_v29 }
  0xd2   : > { %v1220_v45 = vmul.f32 %v1216_v10, %v3844_v60  ;;  %v4133_v0 = vstv %s4103_s2  ;;  %v1256_v32 = vmul.f32 %v1254_v53, %v3905_v59  ;;  %v1247_v61 = vadd.f32 %v1246_v23, %v4090_v6  ;;  %s4488_s2 = sld [smem:[#allocation3 + $0x37]] }
  0xd3   : > { %v2890_v37 = vpop.eup %2889  ;;  %v4135_v33 = vadd.f32 %v1224_v25, %v1160_v36  ;;  %v1234_v5 = vmul.f32 %v1231_v14, %v1231_v14  ;;  %v1225_v57 = vmul.f32 %v4084_v30, %v1219_v19  ;;  %2893 = vtanh.f32 %v1260_v21 }
  0xd4   : > { %v2892_v20 = vpop.eup %2891  ;;  %2589 = vst.msk [vmem:[%s3083_s0 + $0x50] sm:$0xf] %vm873_vm1, %v2890_v37  ;;  %v1232_v22 = vsub.f32 %v2890_v37, %v2888_v31  ;;  %v1226_v56 = vmul.f32 %v4084_v30, %v1220_v45  ;;  %v2602_v39 = vclamps-f32 %v1260_v21, 3.8002012  ;;  %v1261_v43 = vadd.f32 %v1259_v51, %v1256_v32 }
  0xd5   : > { %v1237_v41 = vsel %vm873_vm1, %v1234_v5, 0.0  ;;  %v4147_v36 = vadd.f32 %v1225_v57, %v4096_v8  ;;  %2590 = vst.msk [vmem:[%s3083_s0 + $0x70] sm:$0xf] %vm873_vm1, %v2892_v20  ;;  %v1233_v50 = vsub.f32 %v2892_v20, %v2890_v37  ;;  %v1257_v30 = vmul.f32 %v1254_v53, %v3932_v17 }
  0xd6   : > { %v1235_v27 = vmul.f32 %v1232_v22, %v1232_v22  ;;  %v4151_v47 = vadd.f32 %v1226_v56, %v1162_v15  ;;  %1248 = vst.msk [vmem:[#allocation2 + $0x10] sm:$0xf] %vm873_vm1, %v2892_v20  ;;  %v1281_v4 = vsub.f32 %v2602_v39, %v3835_v46  ;;  %v1258_v8 = vmul.f32 %v1254_v53, %v3965_v38 }
  0xd7   : > { %v1236_v6 = vmul.f32 %v1233_v50, %v1233_v50  ;;  %v4159_v42 = vstv %s1318_s15  ;;  %2895 = vtanh.f32 %v1261_v43  ;;  %v2603_v9 = vclamps-f32 %v1261_v43, 3.8002012  ;;  %s4520_s15 = sld [smem:[#allocation3 + $0x38]] }
  0xd8   : > { %v1238_v63 = vsel %vm873_vm1, %v1235_v27, 0.0  ;;  %v1262_v58 = vadd.f32 %v1259_v51, %v1257_v30  ;;  %v1285_v24 = vmul.f32 %v1281_v4, %v3844_v60  ;;  %v1263_v11 = vadd.f32 %v1259_v51, %v1258_v8 }
  0xd9   : > { %v1239_v44 = vadd.f32 %v1238_v63, %v1237_v41  ;;  %v1240_v15 = vsel %vm873_vm1, %v1236_v6, 0.0  ;;  %v2894_v34 = vpop.eup %2893  ;;  %v1282_v49 = vsub.f32 %v2603_v9, %v3835_v46  ;;  %v1323_v28 = vmul.f32 %v4159_v42, %v3826_v13  ;;  %v1380_v6 = vld [vmem:[#allocation2 + $0x18] sm:$0xf] }
  0xda   : > { %2897 = vtanh.f32 %v1262_v58  ;;  %v2604_v3 = vclamps-f32 %v1262_v58, 3.8002012  ;;  %2598 = vst.msk [vmem:[%s3083_s0 + $0x14] sm:$0xf] %vm873_vm1, %v2894_v34  ;;  %v1291_v1 = vmul.f32 %v4133_v0, %v1285_v24  ;;  %v2605_v48 = vclamps-f32 %v1263_v11, 3.8002012 }
  0xdb   : > { %v1241_v62 = vadd.f32 %v1240_v15, %v1239_v44  ;;  %2899 = vtanh.f32 %v1263_v11  ;;  %v1286_v53 = vmul.f32 %v1282_v49, %v3844_v60  ;;  %v1313_v18 = vsub.f32 %v2894_v34, %v1312_v35 }
  0xdc   : > { %v1283_v40 = vsub.f32 %v2604_v3, %v3835_v46  ;;  %v1327_v2 = vstv %s3770_s22  ;;  %v1295_v16 = vadd.f32 %v1291_v1, %v4122_v55  ;;  %v1284_v7 = vsub.f32 %v2605_v48, %v3835_v46  ;;  %s1386_s22 = smul.f32 %s4164_s13, %s3640_s12  ;;  %s4212_s12 = sld [smem:[#allocation3 + $0x5a]] }
  0xdd   : > { %v4175_v26 = vadd.f32 %v1241_v62, %v1174_v54  ;;  %v1328_v52 = vadd.f32 %v1327_v2, %v1323_v28  ;;  %v2896_v31 = vpop.eup %2895  ;;  %v1292_v10 = vmul.f32 %v4133_v0, %v1286_v53  ;;  %v1314_v51 = vmul.f32 %v1313_v18, %v1313_v18  ;;  %s4543_s13 = sld [smem:[#allocation3 + $0x39]] }
  0xde   : > { %v1287_v29 = vmul.f32 %v1283_v40, %v3844_v60  ;;  %v4182_v25 = vstv %s4155_s21  ;;  %2599 = vst.msk [vmem:[%s3083_s0 + $0x34] sm:$0xf] %vm873_vm1, %v2896_v31  ;;  %v1299_v54 = vsub.f32 %v2896_v31, %v2894_v34  ;;  %v1288_v14 = vmul.f32 %v1284_v7, %v3844_v60  ;;  %s4530_s21 = sld [smem:[#allocation3 + $0x29]] }
  0xdf   : > { %2901 = vtanh.f32 %v1328_v52  ;;  %v2613_v55 = vclamps-f32 %v1328_v52, 3.8002012  ;;  %v1296_v45 = vadd.f32 %v1292_v10, %v4135_v33  ;;  %v1315_v21 = vadd.f32 %v1314_v51, %v1247_v61 }
  0xe0   : > { %v2898_v19 = vpop.eup %2897  ;;  %v1293_v23 = vmul.f32 %v4133_v0, %v1287_v29  ;;  %v1324_v37 = vmul.f32 %v4159_v42, %v3905_v59  ;;  %v1302_v57 = vmul.f32 %v1299_v54, %v1299_v54  ;;  %v1294_v20 = vmul.f32 %v4133_v0, %v1288_v14 }
  0xe1   : > { %v2900_v5 = vpop.eup %2899  ;;  %2600 = vst.msk [vmem:[%s3083_s0 + $0x54] sm:$0xf] %vm873_vm1, %v2898_v19  ;;  %v1300_v32 = vsub.f32 %v2898_v19, %v2896_v31  ;;  %v1349_v22 = vsub.f32 %v2613_v55, %v3835_v46  ;;  %v1325_v41 = vmul.f32 %v4159_v42, %v3932_v17  ;;  %v1390_v9 = vstv %s1386_s22  ;;  %s4558_s22 = sld [smem:[#allocation3 + $0x2a]] }
  0xe2   : > { %v4198_v56 = vadd.f32 %v1293_v23, %v4147_v36  ;;  %2601 = vst.msk [vmem:[%s3083_s0 + $0x74] sm:$0xf] %vm873_vm1, %v2900_v5  ;;  %v1301_v33 = vsub.f32 %v2900_v5, %v2898_v19  ;;  %v1329_v61 = vadd.f32 %v1327_v2, %v1324_v37  ;;  %v1305_v50 = vsel %vm873_vm1, %v1302_v57, 0.0 }
  0xe3   : > { %v1303_v39 = vmul.f32 %v1300_v32, %v1300_v32  ;;  %v4208_v0 = vadd.f32 %v1294_v20, %v4151_v47  ;;  %1316 = vst.msk [vmem:[#allocation2 + $0x14] sm:$0xf] %vm873_vm1, %v2900_v5  ;;  %v1353_v36 = vmul.f32 %v1349_v22, %v3844_v60  ;;  %v1330_v30 = vadd.f32 %v1327_v2, %v1325_v41 }
  0xe4   : > { %v1304_v27 = vmul.f32 %v1301_v33, %v1301_v33  ;;  %2903 = vtanh.f32 %v1329_v61  ;;  %v2614_v43 = vclamps-f32 %v1329_v61, 3.8002012  ;;  %v1326_v47 = vmul.f32 %v4159_v42, %v3965_v38  ;;  %v1448_v61 = vld [vmem:[#allocation2 + $0x1c] sm:$0xf] }
  0xe5   : > { %v2902_v4 = vpop.eup %2901  ;;  %v1306_v8 = vsel %vm873_vm1, %v1303_v39, 0.0  ;;  %v1359_v63 = vmul.f32 %v4182_v25, %v1353_v36  ;;  %2905 = vtanh.f32 %v1330_v30  ;;  %v2615_v11 = vclamps-f32 %v1330_v30, 3.8002012 }
  0xe6   : > { %v1307_v58 = vadd.f32 %v1306_v8, %v1305_v50  ;;  %v1308_v44 = vsel %vm873_vm1, %v1304_v27, 0.0  ;;  %2609 = vst.msk [vmem:[%s3083_s0 + $0x18] sm:$0xf] %vm873_vm1, %v2902_v4  ;;  %v1350_v15 = vsub.f32 %v2614_v43, %v3835_v46  ;;  %v1331_v35 = vadd.f32 %v1327_v2, %v1326_v47 }
  0xe7   : > { %v4222_v24 = vadd.f32 %v1359_v63, %v1295_v16  ;;  %v1381_v34 = vsub.f32 %v2902_v4, %v1380_v6  ;;  %v1391_v42 = vmul.f32 %v1390_v9, %v3826_v13  ;;  %v1395_v28 = vstv %s3809_s30  ;;  %s4250_s30 = sld [smem:[#allocation3 + $0x30]] }
  0xe8   : > { %v1309_v49 = vadd.f32 %v1308_v44, %v1307_v58  ;;  %v1354_v3 = vmul.f32 %v1350_v15, %v3844_v60  ;;  %v1351_v62 = vsub.f32 %v2615_v11, %v3835_v46  ;;  %2907 = vtanh.f32 %v1331_v35 }
  0xe9   : > { %v2616_v1 = vclamps-f32 %v1331_v35, 3.8002012  ;;  %v1382_v48 = vmul.f32 %v1381_v34, %v1381_v34  ;;  %v1396_v2 = vadd.f32 %v1395_v28, %v1391_v42  ;;  %v4235_v16 = vstv %s4204_s5  ;;  %s4570_s5 = sld [smem:[#allocation3 + $0x3a]] }
  0xea   : > { %v2904_v53 = vpop.eup %2903  ;;  %v4231_v40 = vadd.f32 %v1309_v49, %v4175_v26  ;;  %v1360_v18 = vmul.f32 %v4182_v25, %v1354_v3  ;;  %v1355_v7 = vmul.f32 %v1351_v62, %v3844_v60  ;;  %v4244_v26 = vstv %s4212_s12  ;;  %s4590_s12 = sld [smem:[#allocation3 + $0x2b]] }
  0xeb   : > { %2610 = vst.msk [vmem:[%s3083_s0 + $0x38] sm:$0xf] %vm873_vm1, %v2904_v53  ;;  %v1367_v13 = vsub.f32 %v2904_v53, %v2902_v4  ;;  %v1352_v52 = vsub.f32 %v2616_v1, %v3835_v46  ;;  %v1383_v31 = vadd.f32 %v1382_v48, %v1315_v21  ;;  %v2906_v10 = vpop.eup %2905  ;;  %2909 = vtanh.f32 %v1396_v2 }
  0xec   : > { %v4241_v29 = vadd.f32 %v1360_v18, %v1296_v45  ;;  %v2624_v51 = vclamps-f32 %v1396_v2, 3.8002012  ;;  %2611 = vst.msk [vmem:[%s3083_s0 + $0x58] sm:$0xf] %vm873_vm1, %v2906_v10  ;;  %v1361_v14 = vmul.f32 %v4182_v25, %v1355_v7  ;;  %v1368_v55 = vsub.f32 %v2906_v10, %v2904_v53  ;;  %v2638_v7 = vld [vmem:[%s3063_s10 + $0x4] sm:$0xf] }
  0xed   : > { %v1370_v54 = vmul.f32 %v1367_v13, %v1367_v13  ;;  %v1356_v19 = vmul.f32 %v1352_v52, %v3844_v60  ;;  %v1392_v45 = vmul.f32 %v1390_v9, %v3905_v59  ;;  %v1393_v21 = vmul.f32 %v1390_v9, %v3932_v17  ;;  %v1475_v13 = vld [vmem:[%s3063_s10] sm:$0xf] }
  0xee   : > { %v1417_v23 = vsub.f32 %v2624_v51, %v3835_v46  ;;  %v1394_v37 = vmul.f32 %v1390_v9, %v3965_v38  ;;  %v2908_v5 = vpop.eup %2907  ;;  %v4260_v32 = vadd.f32 %v1361_v14, %v4198_v56  ;;  %v1371_v20 = vmul.f32 %v1368_v55, %v1368_v55 }
  0xef   : > { %v1373_v57 = vsel %vm873_vm1, %v1370_v54, 0.0  ;;  %v1362_v22 = vmul.f32 %v4182_v25, %v1356_v19  ;;  %2612 = vst.msk [vmem:[%s3083_s0 + $0x78] sm:$0xf] %vm873_vm1, %v2908_v5  ;;  %v1369_v33 = vsub.f32 %v2908_v5, %v2906_v10  ;;  %v1397_v17 = vadd.f32 %v1395_v28, %v1392_v45 }
  0xf0   : > { %v1421_v59 = vmul.f32 %v1417_v23, %v3844_v60  ;;  %v1398_v38 = vadd.f32 %v1395_v28, %v1393_v21  ;;  %v1374_v41 = vsel %vm873_vm1, %v1371_v20, 0.0  ;;  %1384 = vst.msk [vmem:[#allocation2 + $0x18] sm:$0xf] %vm873_vm1, %v2908_v5  ;;  %v1399_v56 = vadd.f32 %v1395_v28, %v1394_v37 }
  0xf1   : > { %v1366_v50 = vadd.f32 %v1362_v22, %v4208_v0  ;;  %v4272_v39 = vstv %s4228_s25  ;;  %v2910_v25 = vpop.eup %2909  ;;  %v1375_v36 = vadd.f32 %v1374_v41, %v1373_v57  ;;  %v1372_v27 = vmul.f32 %v1369_v33, %v1369_v33  ;;  %s4600_s25 = sld [smem:[#allocation3 + $0x3b]] }
  0xf2   : > { %v1427_v43 = vmul.f32 %v4235_v16, %v1421_v59  ;;  %2911 = vtanh.f32 %v1397_v17  ;;  %2620 = vst.msk [vmem:[%s3083_s0 + $0x1c] sm:$0xf] %vm873_vm1, %v2910_v25  ;;  %v2625_v30 = vclamps-f32 %v1397_v17, 3.8002012  ;;  %v2626_v0 = vclamps-f32 %v1398_v38, 3.8002012 }
  0xf3   : > { %2913 = vtanh.f32 %v1398_v38  ;;  %v1449_v6 = vsub.f32 %v2910_v25, %v1448_v61  ;;  %v1376_v4 = vsel %vm873_vm1, %v1372_v27, 0.0  ;;  %v2627_v63 = vclamps-f32 %v1399_v56, 3.8002012 }
  0xf4   : > { %v1431_v8 = vadd.f32 %v1427_v43, %v4222_v24  ;;  %2915 = vtanh.f32 %v1399_v56  ;;  %v1377_v47 = vadd.f32 %v1376_v4, %v1375_v36  ;;  %v1418_v9 = vsub.f32 %v2625_v30, %v3835_v46  ;;  %v1477_v56 = vld [vmem:[%s3063_s10 + $0x80] sm:$0xf]  ;;  %v2639_v4 = vld [vmem:[%s3063_s10 + $0x44] sm:$0xf] }
  0xf5   : > { %v1419_v58 = vsub.f32 %v2626_v0, %v3835_v46  ;;  %v1450_v44 = vmul.f32 %v1449_v6, %v1449_v6  ;;  %v1420_v11 = vsub.f32 %v2627_v63, %v3835_v46  ;;  %v1466_v35 = vstv %s4250_s30  ;;  %v1478_v6 = vld [vmem:[%s3063_s10 + $0xc0] sm:$0xf]  ;;  %s4614_s30 = sld [smem:[#allocation3 + $0x2c]] }
  0xf6   : > { %v4284_v15 = vadd.f32 %v4244_v26, %v1431_v8  ;;  %v4289_v34 = vstv %s4256_s19  ;;  %v4292_v24 = vadd.f32 %v1377_v47, %v4231_v40  ;;  %v1422_v49 = vmul.f32 %v1418_v9, %v3844_v60  ;;  %s4619_s19 = sld [smem:[#allocation3 + $0x3c]] }
  0xf7   : > { %v1423_v3 = vmul.f32 %v1419_v58, %v3844_v60  ;;  %v4296_v42 = vadd.f32 %v1450_v44, %v1383_v31  ;;  %v1424_v62 = vmul.f32 %v1420_v11, %v3844_v60  ;;  %v4304_v48 = vstv %s4266_s6  ;;  %s4638_s6 = sld [smem:[#allocation3 + $0x2d]] }
  0xf8   : > { %v2912_v28 = vpop.eup %2911  ;;  %v1461_v46 = vmul.f32 %v4272_v39, %v4284_v15  ;;  %v1497_v1 = vmul.f32 %v4289_v34, %v4284_v15  ;;  %v1428_v40 = vmul.f32 %v4235_v16, %v1422_v49  ;;  %v4313_v60 = vstv %s4274_s20  ;;  %s4651_s20 = sld [smem:[#allocation3 + $0x3d]] }
  0xf9   : > { %v2914_v53 = vpop.eup %2913  ;;  %2621 = vst.msk [vmem:[%s3083_s0 + $0x3c] sm:$0xf] %vm873_vm1, %v2912_v28  ;;  %v1435_v18 = vsub.f32 %v2912_v28, %v2910_v25  ;;  %v1429_v2 = vmul.f32 %v4235_v16, %v1423_v3  ;;  %v1430_v10 = vmul.f32 %v4235_v16, %v1424_v62  ;;  %v1534_v58 = vmul.f32 %v4313_v60, %v4284_v15  ;;  %v2641_v3 = vld [vmem:[%s3063_s10 + $0xc4] sm:$0xf] }
  0xfa   : > { %v2916_v52 = vpop.eup %2915  ;;  %2622 = vst.msk [vmem:[%s3083_s0 + $0x5c] sm:$0xf] %vm873_vm1, %v2914_v53  ;;  %v1436_v31 = vsub.f32 %v2914_v53, %v2912_v28  ;;  %v1467_v51 = vadd.f32 %v1466_v35, %v1461_v46  ;;  %v1503_v54 = vadd.f32 %v4304_v48, %v1497_v1  ;;  %v1432_v14 = vadd.f32 %v1428_v40, %v4241_v29 }
  0xfb   : > { %v1438_v55 = vmul.f32 %v1435_v18, %v1435_v18  ;;  %v1433_v19 = vadd.f32 %v1429_v2, %v4260_v32  ;;  %2623 = vst.msk [vmem:[%s3083_s0 + $0x7c] sm:$0xf] %vm873_vm1, %v2916_v52  ;;  %v1437_v23 = vsub.f32 %v2916_v52, %v2914_v53  ;;  %v1434_v21 = vadd.f32 %v1430_v10, %v1366_v50  ;;  %s4371_s0 = sld [smem:[#allocation3 + $0x23]] }
  0xfc   : > { %v1439_v45 = vmul.f32 %v1436_v31, %v1436_v31  ;;  %1452 = vst.msk [vmem:[#allocation2 + $0x1c] sm:$0xf] %vm873_vm1, %v2916_v52  ;;  %v1479_v37 = vsub.f32 %v1467_v51, %v1475_v13  ;;  %v1516_v5 = vsub.f32 %v1503_v54, %v2638_v7  ;;  %v4328_v29 = vadd.f32 %v4244_v26, %v1432_v14 }
  0xfd   : > { %v1441_v16 = vsel %vm873_vm1, %v1438_v55, 0.0  ;;  %v4331_v57 = vadd.f32 %v4244_v26, %v1433_v19  ;;  %v1440_v32 = vmul.f32 %v1437_v23, %v1437_v23  ;;  %1471 = vst.msk [vmem:[%s3078_s29] sm:$0xf] %vm873_vm1, %v1467_v51  ;;  %v4337_v22 = vadd.f32 %v4244_v26, %v1434_v21  ;;  %v1476_v26 = vld [vmem:[%s3063_s10 + $0x40] sm:$0xf] }
  0xfe   : > { %v1442_v20 = vsel %vm873_vm1, %v1439_v45, 0.0  ;;  %v1483_v33 = vmul.f32 %v1479_v37, %v1479_v37  ;;  %2634 = vst.msk [vmem:[%s3078_s29 + $0x4] sm:$0xf] %vm873_vm1, %v1503_v54  ;;  %v1520_v59 = vmul.f32 %v1516_v5, %v1516_v5  ;;  %v1462_v61 = vmul.f32 %v4272_v39, %v4328_v29  ;;  %v2649_v23 = vld [vmem:[%s3063_s10 + $0x48] sm:$0xf] }
  0xff   : > { %v1443_v17 = vadd.f32 %v1442_v20, %v1441_v16  ;;  %v1444_v38 = vsel %vm873_vm1, %v1440_v32, 0.0  ;;  %v1463_v41 = vmul.f32 %v4272_v39, %v4331_v57  ;;  %v1464_v25 = vmul.f32 %v4272_v39, %v4337_v22  ;;  %v2640_v39 = vld [vmem:[%s3063_s10 + $0x84] sm:$0xf] }
 0x100   : > { %v1487_v50 = vsel %vm873_vm1, %v1483_v33, 0.0  ;;  %v1524_v36 = vsel %vm873_vm1, %v1520_v59, 0.0  ;;  %v1498_v27 = vmul.f32 %v4289_v34, %v4328_v29  ;;  %v1468_v30 = vadd.f32 %v1466_v35, %v1462_v61  ;;  %v2650_v33 = vld [vmem:[%s3063_s10 + $0x88] sm:$0xf] }
 0x101   : > { %v1445_v43 = vadd.f32 %v1444_v38, %v1443_v17  ;;  %v1469_v0 = vadd.f32 %v1466_v35, %v1463_v41  ;;  %v1499_v8 = vmul.f32 %v4289_v34, %v4331_v57  ;;  %v1470_v63 = vadd.f32 %v1466_v35, %v1464_v25  ;;  %v2651_v41 = vld [vmem:[%s3063_s10 + $0xc8] sm:$0xf] }
 0x102   : > { %v1504_v47 = vadd.f32 %v4304_v48, %v1498_v27  ;;  %v1500_v9 = vmul.f32 %v4289_v34, %v4337_v22  ;;  %1472 = vst.msk [vmem:[%s3078_s29 + $0x40] sm:$0xf] %vm873_vm1, %v1468_v30  ;;  %v1480_v11 = vsub.f32 %v1468_v30, %v1476_v26  ;;  %v1539_v46 = vstv %s4324_s4  ;;  %v2658_v30 = vld [vmem:[%s3063_s10 + $0xc] sm:$0xf]  ;;  %s4667_s4 = sld [smem:[#allocation3 + $0x2e]] }
 0x103   : > { %v4365_v44 = vadd.f32 %v1445_v43, %v4292_v24  ;;  %v1481_v49 = vsub.f32 %v1469_v0, %v1477_v56  ;;  %v1505_v35 = vadd.f32 %v4304_v48, %v1499_v8  ;;  %1473 = vst.msk [vmem:[%s3078_s29 + $0x80] sm:$0xf] %vm873_vm1, %v1469_v0  ;;  %v1482_v34 = vsub.f32 %v1470_v63, %v1478_v6  ;;  %v2648_v24 = vld [vmem:[%s3063_s10 + $0x8] sm:$0xf] }
 0x104   : > { %v1517_v28 = vsub.f32 %v1504_v47, %v2639_v4  ;;  %v1506_v62 = vadd.f32 %v4304_v48, %v1500_v9  ;;  %v1484_v1 = vmul.f32 %v1480_v11, %v1480_v11  ;;  %1474 = vst.msk [vmem:[%s3078_s29 + $0xc0] sm:$0xf] %vm873_vm1, %v1470_v63  ;;  %v1540_v18 = vadd.f32 %v1539_v46, %v1534_v58  ;;  %v2659_v63 = vld [vmem:[%s3063_s10 + $0x4c] sm:$0xf] }
 0x105   : > { %v1485_v53 = vmul.f32 %v1481_v49, %v1481_v49  ;;  %v1518_v40 = vsub.f32 %v1505_v35, %v2640_v39  ;;  %v1486_v2 = vmul.f32 %v1482_v34, %v1482_v34  ;;  %2635 = vst.msk [vmem:[%s3078_s29 + $0x44] sm:$0xf] %vm873_vm1, %v1504_v47  ;;  %v1535_v48 = vmul.f32 %v4313_v60, %v4328_v29 }
 0x106   : > { %v1521_v13 = vmul.f32 %v1517_v28, %v1517_v28  ;;  %v1519_v7 = vsub.f32 %v1506_v62, %v2641_v3  ;;  %v1488_v52 = vsel %vm873_vm1, %v1484_v1, 0.0  ;;  %2636 = vst.msk [vmem:[%s3078_s29 + $0x84] sm:$0xf] %vm873_vm1, %v1505_v35  ;;  %v1553_v51 = vsub.f32 %v1540_v18, %v2648_v24  ;;  %v2660_v28 = vld [vmem:[%s3063_s10 + $0x8c] sm:$0xf] }
 0x107   : > { %v1490_v31 = vsel %vm873_vm1, %v1485_v53, 0.0  ;;  %v1522_v10 = vmul.f32 %v1518_v40, %v1518_v40  ;;  %v1489_v54 = vadd.f32 %v1488_v52, %v1487_v50  ;;  %v1492_v14 = vsel %vm873_vm1, %v1486_v2, 0.0  ;;  %2637 = vst.msk [vmem:[%s3078_s29 + $0xc4] sm:$0xf] %vm873_vm1, %v1506_v62  ;;  %v2661_v62 = vld [vmem:[%s3063_s10 + $0xcc] sm:$0xf] }
 0x108   : > { %v1525_v55 = vsel %vm873_vm1, %v1521_v13, 0.0  ;;  %v1523_v19 = vmul.f32 %v1519_v7, %v1519_v7  ;;  %2644 = vst.msk [vmem:[%s3078_s29 + $0x8] sm:$0xf] %vm873_vm1, %v1540_v18  ;;  %v1557_v37 = vmul.f32 %v1553_v51, %v1553_v51  ;;  %v1541_v5 = vadd.f32 %v1539_v46, %v1535_v48 }
 0x109   : > { %v1526_v45 = vadd.f32 %v1525_v55, %v1524_v36  ;;  %v1527_v21 = vsel %vm873_vm1, %v1522_v10, 0.0  ;;  %v1491_v16 = vadd.f32 %v1490_v31, %v1489_v54  ;;  %v1536_v20 = vmul.f32 %v4313_v60, %v4331_v57  ;;  %v2668_v54 = vld [vmem:[%s3063_s10 + $0x10] sm:$0xf] }
 0x10a   : > { %v1529_v32 = vsel %vm873_vm1, %v1523_v19, 0.0  ;;  %v1537_v59 = vmul.f32 %v4313_v60, %v4337_v22  ;;  %v1561_v38 = vsel %vm873_vm1, %v1557_v37, 0.0  ;;  %2645 = vst.msk [vmem:[%s3078_s29 + $0x48] sm:$0xf] %vm873_vm1, %v1541_v5  ;;  %v1554_v61 = vsub.f32 %v1541_v5, %v2649_v23  ;;  %v2669_v37 = vld [vmem:[%s3063_s10 + $0x50] sm:$0xf] }
 0x10b   : > { %v1528_v17 = vadd.f32 %v1527_v21, %v1526_v45  ;;  %v1570_v50 = vstv %s4371_s0  ;;  %v1493_v26 = vadd.f32 %v1492_v14, %v1491_v16  ;;  %v1542_v56 = vadd.f32 %v1539_v46, %v1536_v20  ;;  %v2670_v5 = vld [vmem:[%s3063_s10 + $0x90] sm:$0xf]  ;;  %s4675_s0 = sld [smem:[#allocation3 + $0x3e]] }
 0x10c   : > { %v1543_v25 = vadd.f32 %v1539_v46, %v1537_v59  ;;  %v1571_v36 = vmul.f32 %v1570_v50, %v4284_v15  ;;  %v1558_v60 = vmul.f32 %v1554_v61, %v1554_v61  ;;  %v1576_v43 = vstv %s4380_s23  ;;  %s4686_s23 = sld [smem:[#allocation3 + $0x2f]] }
 0x10d   : > { %v1530_v27 = vadd.f32 %v1529_v32, %v1528_v17  ;;  %v1572_v0 = vmul.f32 %v1570_v50, %v4328_v29  ;;  %2646 = vst.msk [vmem:[%s3078_s29 + $0x88] sm:$0xf] %vm873_vm1, %v1542_v56  ;;  %v1555_v6 = vsub.f32 %v1542_v56, %v2650_v33  ;;  %v1573_v47 = vmul.f32 %v1570_v50, %v4331_v57 }
 0x10e   : > { %v1556_v4 = vsub.f32 %v1543_v25, %v2651_v41  ;;  %v1577_v8 = vadd.f32 %v1576_v43, %v1571_v36  ;;  %v1562_v9 = vsel %vm873_vm1, %v1558_v60, 0.0  ;;  %2647 = vst.msk [vmem:[%s3078_s29 + $0xc8] sm:$0xf] %vm873_vm1, %v1543_v25  ;;  %v1574_v11 = vmul.f32 %v1570_v50, %v4337_v22  ;;  %v2671_v25 = vld [vmem:[%s3063_s10 + $0xd0] sm:$0xf] }
 0x10f   : > { %v1531_v39 = vadd.f32 %v1530_v27, %v1493_v26  ;;  %v1578_v58 = vadd.f32 %v1576_v43, %v1572_v0  ;;  %v1563_v49 = vadd.f32 %v1562_v9, %v1561_v38  ;;  %v1559_v35 = vmul.f32 %v1555_v6, %v1555_v6 }
 0x110   : > { %v1560_v3 = vmul.f32 %v1556_v4, %v1556_v4  ;;  %2654 = vst.msk [vmem:[%s3078_s29 + $0xc] sm:$0xf] %vm873_vm1, %v1577_v8  ;;  %v1590_v34 = vsub.f32 %v1577_v8, %v2658_v30  ;;  %v1579_v24 = vadd.f32 %v1576_v43, %v1573_v47  ;;  %v1580_v1 = vadd.f32 %v1576_v43, %v1574_v11  ;;  %v2678_v47 = vld [vmem:[%s3063_s10 + $0x14] sm:$0xf] }
 0x111   : > { %2655 = vst.msk [vmem:[%s3078_s29 + $0x4c] sm:$0xf] %vm873_vm1, %v1578_v58  ;;  %v1591_v46 = vsub.f32 %v1578_v58, %v2659_v63  ;;  %v1607_v53 = vstv %s4398_s17  ;;  %v1564_v40 = vsel %vm873_vm1, %v1559_v35, 0.0  ;;  %v1613_v51 = vstv %s4412_s16  ;;  %s4699_s17 = sld [smem:[#allocation3 + $0x3f]] }
 0x112   : > { %v1566_v18 = vsel %vm873_vm1, %v1560_v3, 0.0  ;;  %v1594_v2 = vmul.f32 %v1590_v34, %v1590_v34  ;;  %v1608_v13 = vmul.f32 %v1607_v53, %v4284_v15  ;;  %v1565_v7 = vadd.f32 %v1564_v40, %v1563_v49  ;;  %2656 = vst.msk [vmem:[%s3078_s29 + $0x8c] sm:$0xf] %vm873_vm1, %v1579_v24  ;;  %v2679_v3 = vld [vmem:[%s3063_s10 + $0x54] sm:$0xf] }
 0x113   : > { %v1595_v48 = vmul.f32 %v1591_v46, %v1591_v46  ;;  %v1592_v52 = vsub.f32 %v1579_v24, %v2660_v28  ;;  %v1593_v31 = vsub.f32 %v1580_v1, %v2661_v62  ;;  %2657 = vst.msk [vmem:[%s3078_s29 + $0xcc] sm:$0xf] %vm873_vm1, %v1580_v1  ;;  %v1609_v14 = vmul.f32 %v1607_v53, %v4328_v29  ;;  %v2680_v24 = vld [vmem:[%s3063_s10 + $0x94] sm:$0xf] }
 0x114   : > { %v1598_v10 = vsel %vm873_vm1, %v1594_v2, 0.0  ;;  %v1610_v55 = vmul.f32 %v1607_v53, %v4331_v57  ;;  %v1567_v19 = vadd.f32 %v1566_v18, %v1565_v7  ;;  %v1614_v32 = vadd.f32 %v1613_v51, %v1608_v13  ;;  %v2688_v2 = vld [vmem:[%s3063_s10 + $0x18] sm:$0xf] }
 0x115   : > { %v1599_v23 = vsel %vm873_vm1, %v1595_v48, 0.0  ;;  %v1596_v45 = vmul.f32 %v1592_v52, %v1592_v52  ;;  %v1597_v21 = vmul.f32 %v1593_v31, %v1593_v31  ;;  %v1615_v20 = vadd.f32 %v1613_v51, %v1609_v14  ;;  %v2681_v31 = vld [vmem:[%s3063_s10 + $0xd4] sm:$0xf] }
 0x116   : > { %v1600_v16 = vadd.f32 %v1599_v23, %v1598_v10  ;;  %v1616_v33 = vadd.f32 %v1613_v51, %v1610_v55  ;;  %v1568_v59 = vadd.f32 %v1567_v19, %v1531_v39  ;;  %v1611_v61 = vmul.f32 %v1607_v53, %v4337_v22  ;;  %2664 = vst.msk [vmem:[%s3078_s29 + $0x10] sm:$0xf] %vm873_vm1, %v1614_v32 }
 0x117   : > { %v1601_v17 = vsel %vm873_vm1, %v1596_v45, 0.0  ;;  %v1603_v38 = vsel %vm873_vm1, %v1597_v21, 0.0  ;;  %v1627_v50 = vsub.f32 %v1614_v32, %v2668_v54  ;;  %v1628_v26 = vsub.f32 %v1615_v20, %v2669_v37  ;;  %2665 = vst.msk [vmem:[%s3078_s29 + $0x50] sm:$0xf] %vm873_vm1, %v1615_v20  ;;  %v2689_v32 = vld [vmem:[%s3063_s10 + $0x58] sm:$0xf] }
 0x118   : > { %v1602_v41 = vadd.f32 %v1601_v17, %v1600_v16  ;;  %v1629_v56 = vsub.f32 %v1616_v33, %v2670_v5  ;;  %v1617_v36 = vadd.f32 %v1613_v51, %v1611_v61  ;;  %v1644_v27 = vstv %s4421_s8  ;;  %2666 = vst.msk [vmem:[%s3078_s29 + $0x90] sm:$0xf] %vm873_vm1, %v1616_v33  ;;  %v2690_v20 = vld [vmem:[%s3063_s10 + $0x98] sm:$0xf] }
 0x119   : > { %v1650_v60 = vstv %s4427_s18  ;;  %v4466_v43 = vstv %s4436_s1  ;;  %v1631_v0 = vmul.f32 %v1627_v50, %v1627_v50  ;;  %v1632_v6 = vmul.f32 %v1628_v26, %v1628_v26 }
 0x11a   : > { %v1604_v30 = vadd.f32 %v1603_v38, %v1602_v41  ;;  %v1633_v4 = vmul.f32 %v1629_v56, %v1629_v56  ;;  %2667 = vst.msk [vmem:[%s3078_s29 + $0xd0] sm:$0xf] %vm873_vm1, %v1617_v36  ;;  %v1630_v8 = vsub.f32 %v1617_v36, %v2671_v25  ;;  %v1645_v63 = vmul.f32 %v1644_v27, %v4284_v15 }
 0x11b   : > { %v1646_v39 = vmul.f32 %v1644_v27, %v4328_v29  ;;  %v1647_v9 = vmul.f32 %v1644_v27, %v4331_v57  ;;  %v1635_v11 = vsel %vm873_vm1, %v1631_v0, 0.0  ;;  %v1636_v49 = vsel %vm873_vm1, %v1632_v6, 0.0  ;;  %v2691_v6 = vld [vmem:[%s3063_s10 + $0xd8] sm:$0xf] }
 0x11c   : > { %v1605_v58 = vadd.f32 %v1604_v30, %v1568_v59  ;;  %v1638_v35 = vsel %vm873_vm1, %v1633_v4, 0.0  ;;  %v1637_v34 = vadd.f32 %v1636_v49, %v1635_v11  ;;  %v1634_v28 = vmul.f32 %v1630_v8, %v1630_v8 }
 0x11d   : > { %v1651_v62 = vadd.f32 %v1650_v60, %v1645_v63  ;;  %v1652_v46 = vadd.f32 %v1650_v60, %v1646_v39  ;;  %v1653_v1 = vadd.f32 %v1650_v60, %v1647_v9  ;;  %v1648_v53 = vmul.f32 %v1644_v27, %v4337_v22  ;;  %v2698_v9 = vld [vmem:[%s3063_s10 + $0x1c] sm:$0xf] }
 0x11e   : > { %v1682_v40 = vmul.f32 %v4466_v43, %v4284_v15  ;;  %v1687_v18 = vstv %s4453_s14  ;;  %v1639_v13 = vadd.f32 %v1638_v35, %v1637_v34  ;;  %v1640_v7 = vsel %vm873_vm1, %v1634_v28, 0.0  ;;  %v2699_v28 = vld [vmem:[%s3063_s10 + $0x5c] sm:$0xf] }
 0x11f   : > { %2674 = vst.msk [vmem:[%s3078_s29 + $0x14] sm:$0xf] %vm873_vm1, %v1651_v62  ;;  %v1664_v48 = vsub.f32 %v1651_v62, %v2678_v47  ;;  %v1665_v52 = vsub.f32 %v1652_v46, %v2679_v3  ;;  %v1666_v10 = vsub.f32 %v1653_v1, %v2680_v24  ;;  %v1654_v51 = vadd.f32 %v1650_v60, %v1648_v53 }
 0x120   : > { %2675 = vst.msk [vmem:[%s3078_s29 + $0x54] sm:$0xf] %vm873_vm1, %v1652_v46  ;;  %v1688_v54 = vadd.f32 %v1687_v18, %v1682_v40  ;;  %v1683_v14 = vmul.f32 %v4466_v43, %v4328_v29  ;;  %v1641_v55 = vadd.f32 %v1640_v7, %v1639_v13  ;;  %v1684_v45 = vmul.f32 %v4466_v43, %v4331_v57  ;;  %v2700_v40 = vld [vmem:[%s3063_s10 + $0x9c] sm:$0xf] }
 0x121   : > { %v1668_v19 = vmul.f32 %v1664_v48, %v1664_v48  ;;  %v1669_v23 = vmul.f32 %v1665_v52, %v1665_v52  ;;  %2676 = vst.msk [vmem:[%s3078_s29 + $0x94] sm:$0xf] %vm873_vm1, %v1653_v1  ;;  %v1670_v21 = vmul.f32 %v1666_v10, %v1666_v10  ;;  %v1667_v37 = vsub.f32 %v1654_v51, %v2681_v31 }
 0x122   : > { %2677 = vst.msk [vmem:[%s3078_s29 + $0xd4] sm:$0xf] %vm873_vm1, %v1654_v51  ;;  %v1701_v5 = vsub.f32 %v1688_v54, %v2688_v2  ;;  %v1689_v16 = vadd.f32 %v1687_v18, %v1683_v14  ;;  %v1642_v33 = vadd.f32 %v1641_v55, %v1605_v58  ;;  %v1690_v38 = vadd.f32 %v1687_v18, %v1684_v45 }
 0x123   : > { %v1672_v59 = vsel %vm873_vm1, %v1668_v19, 0.0  ;;  %v1673_v17 = vsel %vm873_vm1, %v1669_v23, 0.0  ;;  %2684 = vst.msk [vmem:[%s3078_s29 + $0x18] sm:$0xf] %vm873_vm1, %v1688_v54  ;;  %v1675_v41 = vsel %vm873_vm1, %v1670_v21, 0.0  ;;  %v1671_v50 = vmul.f32 %v1667_v37, %v1667_v37 }
 0x124   : > { %v1674_v61 = vadd.f32 %v1673_v17, %v1672_v59  ;;  %v1705_v26 = vmul.f32 %v1701_v5, %v1701_v5  ;;  %2685 = vst.msk [vmem:[%s3078_s29 + $0x58] sm:$0xf] %vm873_vm1, %v1689_v16  ;;  %v1702_v56 = vsub.f32 %v1689_v16, %v2689_v32  ;;  %v1703_v25 = vsub.f32 %v1690_v38, %v2690_v20  ;;  %v2708_v23 = vld [vmem:[%s3063_s10 + $0x20] sm:$0xf] }
 0x125   : > { %2686 = vst.msk [vmem:[%s3078_s29 + $0x98] sm:$0xf] %vm873_vm1, %v1690_v38  ;;  %v1685_v36 = vmul.f32 %v4466_v43, %v4337_v22  ;;  %v1718_v27 = vstv %s4481_s9  ;;  %v1677_v30 = vsel %vm873_vm1, %v1671_v50, 0.0  ;;  %v1724_v39 = vstv %s4488_s2 }
 0x126   : > { %v1676_v60 = vadd.f32 %v1675_v41, %v1674_v61  ;;  %v1709_v0 = vsel %vm873_vm1, %v1705_v26, 0.0  ;;  %v1719_v4 = vmul.f32 %v1718_v27, %v4284_v15  ;;  %v1706_v8 = vmul.f32 %v1702_v56, %v1702_v56  ;;  %v2709_v61 = vld [vmem:[%s3063_s10 + $0x60] sm:$0xf] }
 0x127   : > { %v1707_v63 = vmul.f32 %v1703_v25, %v1703_v25  ;;  %v1691_v47 = vadd.f32 %v1687_v18, %v1685_v36  ;;  %v1720_v11 = vmul.f32 %v1718_v27, %v4328_v29  ;;  %v1721_v49 = vmul.f32 %v1718_v27, %v4331_v57  ;;  %v2701_v18 = vld [vmem:[%s3063_s10 + $0xdc] sm:$0xf]  ;;  %v2710_v36 = vld [vmem:[%s3063_s10 + $0xa0] sm:$0xf] }
 0x128   : > { %v1678_v43 = vadd.f32 %v1677_v30, %v1676_v60  ;;  %v1725_v58 = vadd.f32 %v1724_v39, %v1719_v4  ;;  %v1710_v35 = vsel %vm873_vm1, %v1706_v8, 0.0  ;;  %v1722_v62 = vmul.f32 %v1718_v27, %v4337_v22  ;;  %v2711_v27 = vld [vmem:[%s3063_s10 + $0xe0] sm:$0xf] }
 0x129   : > { %v1712_v3 = vsel %vm873_vm1, %v1707_v63, 0.0  ;;  %2687 = vst.msk [vmem:[%s3078_s29 + $0xd8] sm:$0xf] %vm873_vm1, %v1691_v47  ;;  %v1704_v34 = vsub.f32 %v1691_v47, %v2691_v6  ;;  %v1711_v24 = vadd.f32 %v1710_v35, %v1709_v0  ;;  %v1726_v53 = vadd.f32 %v1724_v39, %v1720_v11 }
 0x12a   : > { %v1679_v46 = vadd.f32 %v1678_v43, %v1642_v33  ;;  %2694 = vst.msk [vmem:[%s3078_s29 + $0x1c] sm:$0xf] %vm873_vm1, %v1725_v58  ;;  %v1738_v1 = vsub.f32 %v1725_v58, %v2698_v9  ;;  %v1727_v13 = vadd.f32 %v1724_v39, %v1721_v49  ;;  %v1728_v7 = vadd.f32 %v1724_v39, %v1722_v62  ;;  %v2718_v58 = vld [vmem:[%s3063_s10 + $0x24] sm:$0xf] }
 0x12b   : > { %v1708_v2 = vmul.f32 %v1704_v34, %v1704_v34  ;;  %v1755_v48 = vstv %s4510_s3  ;;  %v1713_v52 = vadd.f32 %v1712_v3, %v1711_v24  ;;  %2695 = vst.msk [vmem:[%s3078_s29 + $0x5c] sm:$0xf] %vm873_vm1, %v1726_v53  ;;  %v1739_v10 = vsub.f32 %v1726_v53, %v2699_v28  ;;  %v2719_v34 = vld [vmem:[%s3063_s10 + $0x64] sm:$0xf] }
 0x12c   : > { %v1742_v31 = vmul.f32 %v1738_v1, %v1738_v1  ;;  %v1756_v51 = vmul.f32 %v1755_v48, %v4284_v15  ;;  %2696 = vst.msk [vmem:[%s3078_s29 + $0x9c] sm:$0xf] %vm873_vm1, %v1727_v13  ;;  %v1740_v14 = vsub.f32 %v1727_v13, %v2700_v40  ;;  %v1741_v55 = vsub.f32 %v1728_v7, %v2701_v18  ;;  %v2720_v1 = vld [vmem:[%s3063_s10 + $0xa4] sm:$0xf] }
 0x12d   : > { %v1714_v54 = vsel %vm873_vm1, %v1708_v2, 0.0  ;;  %v1761_v19 = vstv %s4520_s15  ;;  %v1743_v37 = vmul.f32 %v1739_v10, %v1739_v10  ;;  %2697 = vst.msk [vmem:[%s3078_s29 + $0xdc] sm:$0xf] %vm873_vm1, %v1728_v7  ;;  %v1757_v20 = vmul.f32 %v1755_v48, %v4328_v29  ;;  %v2721_v10 = vld [vmem:[%s3063_s10 + $0xe4] sm:$0xf] }
 0x12e   : > { %v1715_v45 = vadd.f32 %v1714_v54, %v1713_v52  ;;  %v1746_v21 = vsel %vm873_vm1, %v1742_v31, 0.0  ;;  %v1762_v5 = vadd.f32 %v1761_v19, %v1756_v51  ;;  %v1744_v16 = vmul.f32 %v1740_v14, %v1740_v14 }
 0x12f   : > { %v1745_v32 = vmul.f32 %v1741_v55, %v1741_v55  ;;  %v1758_v33 = vmul.f32 %v1755_v48, %v4331_v57  ;;  %v1747_v17 = vsel %vm873_vm1, %v1743_v37, 0.0  ;;  %v1759_v41 = vmul.f32 %v1755_v48, %v4337_v22 }
 0x130   : > { %v1716_v59 = vadd.f32 %v1715_v45, %v1679_v46  ;;  %2704 = vst.msk [vmem:[%s3078_s29 + $0x20] sm:$0xf] %vm873_vm1, %v1762_v5  ;;  %v1775_v38 = vsub.f32 %v1762_v5, %v2708_v23  ;;  %v1748_v50 = vadd.f32 %v1747_v17, %v1746_v21  ;;  %v1749_v26 = vsel %vm873_vm1, %v1744_v16, 0.0 }
 0x131   : > { %v1751_v56 = vsel %vm873_vm1, %v1745_v32, 0.0  ;;  %v1763_v25 = vadd.f32 %v1761_v19, %v1757_v20  ;;  %v1764_v30 = vadd.f32 %v1761_v19, %v1758_v33  ;;  %v1765_v0 = vadd.f32 %v1761_v19, %v1759_v41  ;;  %v2728_v32 = vld [vmem:[%s3063_s10 + $0x28] sm:$0xf] }
 0x132   : > { %v1779_v60 = vmul.f32 %v1775_v38, %v1775_v38  ;;  %v1792_v6 = vstv %s4530_s21  ;;  %v1750_v4 = vadd.f32 %v1749_v26, %v1748_v50  ;;  %v1798_v47 = vstv %s4543_s13  ;;  %v2729_v38 = vld [vmem:[%s3063_s10 + $0x68] sm:$0xf] }
 0x133   : > { %2705 = vst.msk [vmem:[%s3078_s29 + $0x60] sm:$0xf] %vm873_vm1, %v1763_v25  ;;  %v1776_v8 = vsub.f32 %v1763_v25, %v2709_v61  ;;  %v1793_v63 = vmul.f32 %v1792_v6, %v4284_v15  ;;  %v1777_v9 = vsub.f32 %v1764_v30, %v2710_v36  ;;  %v1778_v43 = vsub.f32 %v1765_v0, %v2711_v27  ;;  %v2730_v25 = vld [vmem:[%s3063_s10 + $0xa8] sm:$0xf] }
 0x134   : > { %v1783_v39 = vsel %vm873_vm1, %v1779_v60, 0.0  ;;  %2706 = vst.msk [vmem:[%s3078_s29 + $0xa0] sm:$0xf] %vm873_vm1, %v1764_v30  ;;  %v1794_v11 = vmul.f32 %v1792_v6, %v4328_v29  ;;  %v1752_v49 = vadd.f32 %v1751_v56, %v1750_v4  ;;  %v1795_v28 = vmul.f32 %v1792_v6, %v4331_v57 }
 0x135   : > { %v1780_v35 = vmul.f32 %v1776_v8, %v1776_v8  ;;  %2707 = vst.msk [vmem:[%s3078_s29 + $0xe0] sm:$0xf] %vm873_vm1, %v1765_v0  ;;  %v1799_v3 = vadd.f32 %v1798_v47, %v1793_v63  ;;  %v1781_v62 = vmul.f32 %v1777_v9, %v1777_v9  ;;  %v1782_v46 = vmul.f32 %v1778_v43, %v1778_v43  ;;  %v2731_v8 = vld [vmem:[%s3063_s10 + $0xe8] sm:$0xf] }
 0x136   : > { %v1800_v24 = vadd.f32 %v1798_v47, %v1794_v11  ;;  %v1796_v53 = vmul.f32 %v1792_v6, %v4337_v22  ;;  %v1753_v40 = vadd.f32 %v1752_v49, %v1716_v59  ;;  %v1801_v13 = vadd.f32 %v1798_v47, %v1795_v28 }
 0x137   : > { %v1784_v18 = vsel %vm873_vm1, %v1780_v35, 0.0  ;;  %2714 = vst.msk [vmem:[%s3078_s29 + $0x24] sm:$0xf] %vm873_vm1, %v1799_v3  ;;  %v1812_v2 = vsub.f32 %v1799_v3, %v2718_v58  ;;  %v1786_v48 = vsel %vm873_vm1, %v1781_v62, 0.0  ;;  %v1788_v52 = vsel %vm873_vm1, %v1782_v46, 0.0 }
 0x138   : > { %v1785_v7 = vadd.f32 %v1784_v18, %v1783_v39  ;;  %2715 = vst.msk [vmem:[%s3078_s29 + $0x64] sm:$0xf] %vm873_vm1, %v1800_v24  ;;  %v1813_v31 = vsub.f32 %v1800_v24, %v2719_v34  ;;  %v1814_v54 = vsub.f32 %v1801_v13, %v2720_v1  ;;  %v1802_v14 = vadd.f32 %v1798_v47, %v1796_v53  ;;  %v2738_v35 = vld [vmem:[%s3063_s10 + $0x2c] sm:$0xf] }
 0x139   : > { %v1816_v51 = vmul.f32 %v1812_v2, %v1812_v2  ;;  %2716 = vst.msk [vmem:[%s3078_s29 + $0xa4] sm:$0xf] %vm873_vm1, %v1801_v13  ;;  %v1829_v55 = vstv %s4558_s22  ;;  %v1835_v21 = vstv %s4570_s5  ;;  %v1866_v63 = vstv %s4590_s12 }
 0x13a   : > { %v1787_v19 = vadd.f32 %v1786_v48, %v1785_v7  ;;  %v1817_v23 = vmul.f32 %v1813_v31, %v1813_v31  ;;  %v1830_v45 = vmul.f32 %v1829_v55, %v4284_v15  ;;  %v1818_v5 = vmul.f32 %v1814_v54, %v1814_v54  ;;  %2717 = vst.msk [vmem:[%s3078_s29 + $0xe4] sm:$0xf] %vm873_vm1, %v1802_v14  ;;  %v2739_v24 = vld [vmem:[%s3063_s10 + $0x6c] sm:$0xf] }
 0x13b   : > { %v1820_v37 = vsel %vm873_vm1, %v1816_v51, 0.0  ;;  %v1815_v16 = vsub.f32 %v1802_v14, %v2721_v10  ;;  %v1831_v20 = vmul.f32 %v1829_v55, %v4328_v29  ;;  %v1832_v61 = vmul.f32 %v1829_v55, %v4331_v57 }
 0x13c   : > { %v1789_v33 = vadd.f32 %v1788_v52, %v1787_v19  ;;  %v1821_v59 = vsel %vm873_vm1, %v1817_v23, 0.0  ;;  %v1836_v17 = vadd.f32 %v1835_v21, %v1830_v45  ;;  %v1823_v50 = vsel %vm873_vm1, %v1818_v5, 0.0  ;;  %v2740_v52 = vld [vmem:[%s3063_s10 + $0xac] sm:$0xf] }
 0x13d   : > { %v1822_v41 = vadd.f32 %v1821_v59, %v1820_v37  ;;  %v1819_v26 = vmul.f32 %v1815_v16, %v1815_v16  ;;  %v1837_v56 = vadd.f32 %v1835_v21, %v1831_v20  ;;  %v1838_v60 = vadd.f32 %v1835_v21, %v1832_v61  ;;  %v2741_v23 = vld [vmem:[%s3063_s10 + $0xec] sm:$0xf] }
 0x13e   : > { %v1790_v36 = vadd.f32 %v1789_v33, %v1753_v40  ;;  %2724 = vst.msk [vmem:[%s3078_s29 + $0x28] sm:$0xf] %vm873_vm1, %v1836_v17  ;;  %v1849_v27 = vsub.f32 %v1836_v17, %v2728_v32  ;;  %v1833_v30 = vmul.f32 %v1829_v55, %v4337_v22  ;;  %v1867_v43 = vmul.f32 %v1866_v63, %v4284_v15  ;;  %v2748_v32 = vld [vmem:[%s3063_s10 + $0x30] sm:$0xf] }
 0x13f   : > { %v1824_v0 = vadd.f32 %v1823_v50, %v1822_v41  ;;  %v1825_v6 = vsel %vm873_vm1, %v1819_v26, 0.0  ;;  %2725 = vst.msk [vmem:[%s3078_s29 + $0x68] sm:$0xf] %vm873_vm1, %v1837_v56  ;;  %v1850_v4 = vsub.f32 %v1837_v56, %v2729_v38  ;;  %v1851_v39 = vsub.f32 %v1838_v60, %v2730_v25  ;;  %v2749_v50 = vld [vmem:[%s3063_s10 + $0x70] sm:$0xf] }
 0x140   : > { %v1853_v47 = vmul.f32 %v1849_v27, %v1849_v27  ;;  %2726 = vst.msk [vmem:[%s3078_s29 + $0xa8] sm:$0xf] %vm873_vm1, %v1838_v60  ;;  %v1839_v9 = vadd.f32 %v1835_v21, %v1833_v30  ;;  %v1872_v49 = vstv %s4600_s25  ;;  %v1868_v3 = vmul.f32 %v1866_v63, %v4328_v29  ;;  %v2750_v27 = vld [vmem:[%s3063_s10 + $0xb0] sm:$0xf] }
 0x141   : > { %v1826_v58 = vadd.f32 %v1825_v6, %v1824_v0  ;;  %v1854_v11 = vmul.f32 %v1850_v4, %v1850_v4  ;;  %v1855_v28 = vmul.f32 %v1851_v39, %v1851_v39  ;;  %v1873_v46 = vadd.f32 %v1872_v49, %v1867_v43 }
 0x142   : > { %v1857_v34 = vsel %vm873_vm1, %v1853_v47, 0.0  ;;  %2727 = vst.msk [vmem:[%s3078_s29 + $0xe8] sm:$0xf] %vm873_vm1, %v1839_v9  ;;  %v1852_v62 = vsub.f32 %v1839_v9, %v2731_v8  ;;  %v1874_v40 = vadd.f32 %v1872_v49, %v1868_v3  ;;  %v1869_v18 = vmul.f32 %v1866_v63, %v4331_v57 }
 0x143   : > { %v1827_v1 = vadd.f32 %v1826_v58, %v1790_v36  ;;  %v1858_v53 = vsel %vm873_vm1, %v1854_v11, 0.0  ;;  %v1860_v13 = vsel %vm873_vm1, %v1855_v28, 0.0  ;;  %2734 = vst.msk [vmem:[%s3078_s29 + $0x2c] sm:$0xf] %vm873_vm1, %v1873_v46  ;;  %v1886_v48 = vsub.f32 %v1873_v46, %v2738_v35 }
 0x144   : > { %v1859_v2 = vadd.f32 %v1858_v53, %v1857_v34  ;;  %v1856_v7 = vmul.f32 %v1852_v62, %v1852_v62  ;;  %2735 = vst.msk [vmem:[%s3078_s29 + $0x6c] sm:$0xf] %vm873_vm1, %v1874_v40  ;;  %v1887_v31 = vsub.f32 %v1874_v40, %v2739_v24  ;;  %v1875_v10 = vadd.f32 %v1872_v49, %v1869_v18  ;;  %v2758_v34 = vld [vmem:[%s3063_s10 + $0x34] sm:$0xf] }
 0x145   : > { %v1870_v51 = vmul.f32 %v1866_v63, %v4337_v22  ;;  %v1903_v54 = vstv %s4614_s30  ;;  %v1890_v19 = vmul.f32 %v1886_v48, %v1886_v48  ;;  %v1909_v16 = vstv %s4619_s19  ;;  %v2751_v63 = vld [vmem:[%s3063_s10 + $0xf0] sm:$0xf]  ;;  %v2759_v40 = vld [vmem:[%s3063_s10 + $0x74] sm:$0xf] }
 0x146   : > { %v1861_v14 = vadd.f32 %v1860_v13, %v1859_v2  ;;  %v1862_v55 = vsel %vm873_vm1, %v1856_v7, 0.0  ;;  %v1904_v45 = vmul.f32 %v1903_v54, %v4284_v15  ;;  %v1891_v21 = vmul.f32 %v1887_v31, %v1887_v31  ;;  %2736 = vst.msk [vmem:[%s3078_s29 + $0xac] sm:$0xf] %vm873_vm1, %v1875_v10  ;;  %v2760_v2 = vld [vmem:[%s3063_s10 + $0xb4] sm:$0xf] }
 0x147   : > { %v1888_v37 = vsub.f32 %v1875_v10, %v2740_v52  ;;  %v1876_v5 = vadd.f32 %v1872_v49, %v1870_v51  ;;  %v1894_v33 = vsel %vm873_vm1, %v1890_v19, 0.0  ;;  %v1905_v17 = vmul.f32 %v1903_v54, %v4328_v29  ;;  %v2761_v10 = vld [vmem:[%s3063_s10 + $0xf4] sm:$0xf] }
 0x148   : > { %v1863_v20 = vadd.f32 %v1862_v55, %v1861_v14  ;;  %v1910_v59 = vadd.f32 %v1909_v16, %v1904_v45  ;;  %v1895_v38 = vsel %vm873_vm1, %v1891_v21, 0.0  ;;  %v1906_v26 = vmul.f32 %v1903_v54, %v4331_v57 }
 0x149   : > { %v1892_v61 = vmul.f32 %v1888_v37, %v1888_v37  ;;  %2737 = vst.msk [vmem:[%s3078_s29 + $0xec] sm:$0xf] %vm873_vm1, %v1876_v5  ;;  %v1889_v41 = vsub.f32 %v1876_v5, %v2741_v23  ;;  %v1896_v56 = vadd.f32 %v1895_v38, %v1894_v33  ;;  %v1911_v36 = vadd.f32 %v1909_v16, %v1905_v17 }
 0x14a   : > { %2744 = vst.msk [vmem:[%s3078_s29 + $0x30] sm:$0xf] %vm873_vm1, %v1910_v59  ;;  %v1923_v25 = vsub.f32 %v1910_v59, %v2748_v32  ;;  %v1912_v30 = vadd.f32 %v1909_v16, %v1906_v26  ;;  %v1907_v0 = vmul.f32 %v1903_v54, %v4337_v22  ;;  %v1940_v47 = vstv %s4638_s6  ;;  %v2769_v26 = vld [vmem:[%s3063_s10 + $0x78] sm:$0xf] }
 0x14b   : > { %v1897_v60 = vsel %vm873_vm1, %v1892_v61, 0.0  ;;  %v1893_v6 = vmul.f32 %v1889_v41, %v1889_v41  ;;  %2745 = vst.msk [vmem:[%s3078_s29 + $0x70] sm:$0xf] %vm873_vm1, %v1911_v36  ;;  %v1924_v8 = vsub.f32 %v1911_v36, %v2749_v50  ;;  %v1864_v39 = vadd.f32 %v1863_v20, %v1827_v1  ;;  %v2768_v20 = vld [vmem:[%s3063_s10 + $0x38] sm:$0xf] }
 0x14c   : > { %v1927_v4 = vmul.f32 %v1923_v25, %v1923_v25  ;;  %2746 = vst.msk [vmem:[%s3078_s29 + $0xb0] sm:$0xf] %vm873_vm1, %v1912_v30  ;;  %v1925_v9 = vsub.f32 %v1912_v30, %v2750_v27  ;;  %v1913_v43 = vadd.f32 %v1909_v16, %v1907_v0  ;;  %v1941_v58 = vmul.f32 %v1940_v47, %v4284_v15 }
 0x14d   : > { %v1898_v11 = vadd.f32 %v1897_v60, %v1896_v56  ;;  %v1928_v35 = vmul.f32 %v1924_v8, %v1924_v8  ;;  %v1946_v3 = vstv %s4651_s20  ;;  %v1942_v24 = vmul.f32 %v1940_v47, %v4328_v29  ;;  %v2770_v60 = vld [vmem:[%s3063_s10 + $0xb8] sm:$0xf] }
 0x14e   : > { %v1931_v49 = vsel %vm873_vm1, %v1927_v4, 0.0  ;;  %v1929_v28 = vmul.f32 %v1925_v9, %v1925_v9  ;;  %2747 = vst.msk [vmem:[%s3078_s29 + $0xf0] sm:$0xf] %vm873_vm1, %v1913_v43  ;;  %v1926_v62 = vsub.f32 %v1913_v43, %v2751_v63  ;;  %v1947_v46 = vadd.f32 %v1946_v3, %v1941_v58  ;;  %v2771_v63 = vld [vmem:[%s3063_s10 + $0xf8] sm:$0xf] }
 0x14f   : > { %v1899_v1 = vsel %vm873_vm1, %v1893_v6, 0.0  ;;  %v1932_v53 = vsel %vm873_vm1, %v1928_v35, 0.0  ;;  %v1943_v18 = vmul.f32 %v1940_v47, %v4331_v57  ;;  %v1944_v13 = vmul.f32 %v1940_v47, %v4337_v22 }
 0x150   : > { %v1933_v7 = vadd.f32 %v1932_v53, %v1931_v49  ;;  %v1934_v48 = vsel %vm873_vm1, %v1929_v28, 0.0  ;;  %v1930_v52 = vmul.f32 %v1926_v62, %v1926_v62  ;;  %2754 = vst.msk [vmem:[%s3078_s29 + $0x34] sm:$0xf] %vm873_vm1, %v1947_v46  ;;  %v1960_v31 = vsub.f32 %v1947_v46, %v2758_v34 }
 0x151   : > { %v1948_v51 = vadd.f32 %v1946_v3, %v1942_v24  ;;  %v1949_v54 = vadd.f32 %v1946_v3, %v1943_v18  ;;  %v1950_v14 = vadd.f32 %v1946_v3, %v1944_v13  ;;  %v1977_v55 = vstv %s4667_s4  ;;  %v2779_v13 = vld [vmem:[%s3063_s10 + $0x7c] sm:$0xf] }
 0x152   : > { %v1900_v19 = vadd.f32 %v1899_v1, %v1898_v11  ;;  %v1935_v23 = vadd.f32 %v1934_v48, %v1933_v7  ;;  %v1964_v45 = vmul.f32 %v1960_v31, %v1960_v31  ;;  %v1978_v21 = vmul.f32 %v1977_v55, %v4284_v15 }
 0x153   : > { %2755 = vst.msk [vmem:[%s3078_s29 + $0x74] sm:$0xf] %vm873_vm1, %v1948_v51  ;;  %v1961_v37 = vsub.f32 %v1948_v51, %v2759_v40  ;;  %v1962_v5 = vsub.f32 %v1949_v54, %v2760_v2  ;;  %v1963_v16 = vsub.f32 %v1950_v14, %v2761_v10  ;;  %v1983_v32 = vstv %s4675_s0  ;;  %v2778_v2 = vld [vmem:[%s3063_s10 + $0x3c] sm:$0xf] }
 0x154   : > { %v1936_v33 = vsel %vm873_vm1, %v1930_v52, 0.0  ;;  %v1968_v59 = vsel %vm873_vm1, %v1964_v45, 0.0  ;;  %2756 = vst.msk [vmem:[%s3078_s29 + $0xb4] sm:$0xf] %vm873_vm1, %v1949_v54  ;;  %v1984_v17 = vadd.f32 %v1983_v32, %v1978_v21  ;;  %v1979_v38 = vmul.f32 %v1977_v55, %v4328_v29  ;;  %v2780_v51 = vld [vmem:[%s3063_s10 + $0xbc] sm:$0xf] }
 0x155   : > { %v1965_v61 = vmul.f32 %v1961_v37, %v1961_v37  ;;  %v1966_v41 = vmul.f32 %v1962_v5, %v1962_v5  ;;  %2757 = vst.msk [vmem:[%s3078_s29 + $0xf4] sm:$0xf] %vm873_vm1, %v1950_v14  ;;  %v1967_v50 = vmul.f32 %v1963_v16, %v1963_v16  ;;  %v1980_v56 = vmul.f32 %v1977_v55, %v4331_v57 }
 0x156   : > { %v1901_v25 = vadd.f32 %v1900_v19, %v1864_v39  ;;  %2764 = vst.msk [vmem:[%s3078_s29 + $0x38] sm:$0xf] %vm873_vm1, %v1984_v17  ;;  %v1997_v36 = vsub.f32 %v1984_v17, %v2768_v20  ;;  %v1985_v27 = vadd.f32 %v1983_v32, %v1979_v38  ;;  %v1981_v30 = vmul.f32 %v1977_v55, %v4337_v22 }
 0x157   : > { %v1937_v0 = vadd.f32 %v1936_v33, %v1935_v23  ;;  %v1969_v6 = vsel %vm873_vm1, %v1965_v61, 0.0  ;;  %v1971_v4 = vsel %vm873_vm1, %v1966_v41, 0.0  ;;  %v1986_v8 = vadd.f32 %v1983_v32, %v1980_v56 }
 0x158   : > { %v1970_v47 = vadd.f32 %v1969_v6, %v1968_v59  ;;  %v2001_v39 = vmul.f32 %v1997_v36, %v1997_v36  ;;  %2765 = vst.msk [vmem:[%s3078_s29 + $0x78] sm:$0xf] %vm873_vm1, %v1985_v27  ;;  %v1998_v9 = vsub.f32 %v1985_v27, %v2769_v26  ;;  %v1987_v43 = vadd.f32 %v1983_v32, %v1981_v30 }
 0x159   : > { %v1973_v58 = vsel %vm873_vm1, %v1967_v50, 0.0  ;;  %2766 = vst.msk [vmem:[%s3078_s29 + $0xb8] sm:$0xf] %vm873_vm1, %v1986_v8  ;;  %v1999_v11 = vsub.f32 %v1986_v8, %v2770_v60  ;;  %v2014_v49 = vstv %s4686_s23  ;;  %v2020_v35 = vstv %s4699_s17 }
 0x15a   : > { %v1972_v3 = vadd.f32 %v1971_v4, %v1970_v47  ;;  %v2005_v34 = vsel %vm873_vm1, %v2001_v39, 0.0  ;;  %v2002_v28 = vmul.f32 %v1998_v9, %v1998_v9  ;;  %2767 = vst.msk [vmem:[%s3078_s29 + $0xf8] sm:$0xf] %vm873_vm1, %v1987_v43  ;;  %v2000_v62 = vsub.f32 %v1987_v43, %v2771_v63 }
 0x15b   : > { %v2003_v46 = vmul.f32 %v1999_v11, %v1999_v11  ;;  %v2015_v24 = vmul.f32 %v2014_v49, %v4284_v15  ;;  %v2016_v1 = vmul.f32 %v2014_v49, %v4328_v29  ;;  %v2017_v53 = vmul.f32 %v2014_v49, %v4331_v57  ;;  %v2781_v15 = vld [vmem:[%s3063_s10 + $0xfc] sm:$0xf] }
 0x15c   : > { %v2006_v40 = vsel %vm873_vm1, %v2002_v28, 0.0  ;;  %v2004_v18 = vmul.f32 %v2000_v62, %v2000_v62  ;;  %v2018_v7 = vmul.f32 %v2014_v49, %v4337_v22  ;;  %v1938_v29 = vadd.f32 %v1937_v0, %v1901_v25 }
 0x15d   : > { %v2007_v48 = vadd.f32 %v2006_v40, %v2005_v34  ;;  %v2008_v52 = vsel %vm873_vm1, %v2003_v46, 0.0  ;;  %v2021_v31 = vadd.f32 %v2020_v35, %v2015_v24  ;;  %v2022_v10 = vadd.f32 %v2020_v35, %v2016_v1 }
 0x15e   : > { %v1974_v54 = vadd.f32 %v1973_v58, %v1972_v3  ;;  %v2023_v57 = vadd.f32 %v2020_v35, %v2017_v53  ;;  %v2024_v14 = vadd.f32 %v2020_v35, %v2018_v7  ;;  %v2010_v19 = vsel %vm873_vm1, %v2004_v18, 0.0 }
 0x15f   : > { %v2009_v55 = vadd.f32 %v2008_v52, %v2007_v48  ;;  %2774 = vst.msk [vmem:[%s3078_s29 + $0x3c] sm:$0xf] %vm873_vm1, %v2021_v31  ;;  %v2034_v22 = vsub.f32 %v2021_v31, %v2778_v2  ;;  %v2035_v23 = vsub.f32 %v2022_v10, %v2779_v13 }
 0x160   : > { %2775 = vst.msk [vmem:[%s3078_s29 + $0x7c] sm:$0xf] %vm873_vm1, %v2022_v10  ;;  %v2036_v45 = vsub.f32 %v2023_v57, %v2780_v51  ;;  %v2037_v21 = vsub.f32 %v2024_v14, %v2781_v15  ;;  %v1975_v16 = vadd.f32 %v1974_v54, %v1938_v29 }
 0x161   : > { %v2038_v37 = vmul.f32 %v2034_v22, %v2034_v22  ;;  %v2039_v5 = vmul.f32 %v2035_v23, %v2035_v23  ;;  %2776 = vst.msk [vmem:[%s3078_s29 + $0xbc] sm:$0xf] %vm873_vm1, %v2023_v57  ;;  %v2011_v32 = vadd.f32 %v2010_v19, %v2009_v55 }
 0x162   : > { %v2040_v20 = vmul.f32 %v2036_v45, %v2036_v45  ;;  %2777 = vst.msk [vmem:[%s3078_s29 + $0xfc] sm:$0xf] %vm873_vm1, %v2024_v14  ;;  %v2041_v33 = vmul.f32 %v2037_v21, %v2037_v21 }
 0x163   : > { %v2042_v59 = vsel %vm873_vm1, %v2038_v37, 0.0  ;;  %v2043_v17 = vsel %vm873_vm1, %v2039_v5, 0.0  ;;  %v2012_v50 = vadd.f32 %v2011_v32, %v1975_v16 }
 0x164   : > { %v2044_v38 = vadd.f32 %v2043_v17, %v2042_v59  ;;  %v2045_v61 = vsel %vm873_vm1, %v2040_v20, 0.0  ;;  %v2047_v41 = vsel %vm873_vm1, %v2041_v33, 0.0 }
 0x166   : > { %v2046_v26 = vadd.f32 %v2045_v61, %v2044_v38  ;;  %2079 = sbr.rel (%p2448_p10) target bundleno = 366 (0x16e), region = 44 }
 0x168   : > { %v2048_v56 = vadd.f32 %v2047_v41, %v2046_v26 }
 0x16a   : > { %v2049_v25 = vadd.f32 %v2048_v56, %v2012_v50 }
 0x16b   : > { %2783 = vst.msk [vmem:[%s3088_s11 + $0x4] sm:$0xf] %vm873_vm1, %v3978_v12 }
 0x16c   : > { %2080 = vst.msk [vmem:[%s3088_s11] sm:$0xf] %vm873_vm1, %v2049_v25 }
 0x16d   : > { %2784 = vst.msk [vmem:[%s3088_s11 + $0x8] sm:$0xf] %vm873_vm1, %v4365_v44 }
 0x16e PF: > { %p2785_p11 = scmp.le.s32.totalorder %s2958_s24, 0 }
 0x170   : > { %2088 = sbr.rel (%p2785_p11) target bundleno = 379 (0x17b), region = 48 }
 0x175   : > { %v2089_v36 = vld [vmem:[%s3088_s11] sm:$0xf]  ;;  %v2786_v27 = vld [vmem:[%s3088_s11 + $0x4] sm:$0xf]  ;;  %v2788_v60 = vld [vmem:[%s3088_s11 + $0x8] sm:$0xf]  ;;  %v2098_v30 = vadd.f32 %v4296_v42, %v4365_v44 }
 0x176   : > { %v2090_v0 = vadd.f32 %v2089_v36, %v2049_v25  ;;  %v2094_v6 = vadd.f32 %v2786_v27, %v3978_v12 }
 0x177   : > { %v2099_v4 = vadd.f32 %v2788_v60, %v2098_v30 }
 0x178   : > { %2091 = vst.msk [vmem:[%s3088_s11] sm:$0xf] %vm873_vm1, %v2090_v0 }
 0x179   : > { %2787 = vst.msk [vmem:[%s3088_s11 + $0x4] sm:$0xf] %vm873_vm1, %v2094_v6 }
 0x17a   : > { %2789 = vst.msk [vmem:[%s3088_s11 + $0x8] sm:$0xf] %vm873_vm1, %v2099_v4 }
 0x17b PF: > { %s19_s28 = sadd.s32 1, %s2974_s28   ;;  %s4890_s10 = sld [smem:[#allocation6_spill]] }
 0x17c   : > { %p16_p12 = scmp.ge.s32.totalorder %s19_s28, 6   ;;  %s4891_s29 = sld [smem:[#allocation7_spill]] }
 0x17d   : > { %s4892_s24 = smov %s2966_s26  ;;  %s4893_s25 = smov %s2970_s27 }
 0x17e   :  { %18 = sbr.rel (!%p16_p12) target bundleno = 11 (0xb), region = 178 }
 0x181   : > { %s4894_s26 = smov %s4890_s10 }
 0x182   : > { %s4895_s27 = smov %s4891_s29 }
 0x183   :  { %2226 = vsyncpa [#allocation4], 1 }
 0x184   :  { %2228 = vsyncpa [#allocation4 + $0x1], 1 }

</bundles_post_ra>
